<compile_context>
chip_gen: v6e
topology: v6e:2x2x1
jax: 0.10.0
libtpu: 0.0.40
codegen_flags: <defaults>
</compile_context>

<pallas_src>
import functools

import numpy as np
import jax
import jax.numpy as jnp
from jax import lax
from jax.experimental import pallas as pl
from jax.experimental.pallas import tpu as pltpu


def _round_up(x, m):
    return ((x + m - 1) // m) * m


# ----------------------------------------------------------------------------
# Hardware query (cached, with a conservative v7x fallback)
# ----------------------------------------------------------------------------
@functools.lru_cache(maxsize=1)
def _vmem_capacity_bytes():
    try:
        cap = int(pltpu.get_tpu_info().vmem_capacity_bytes)
        if cap > 0:
            return cap
    except Exception:
        pass
    return 64 << 20  # conservative: v7x per-TensorCore VMEM


# ----------------------------------------------------------------------------
# Deterministic "parameter" construction (glue, plain numpy, float64 math)
# ----------------------------------------------------------------------------
def _hz_to_mel(f):
    f = np.asarray(f, dtype=np.float64)
    f_sp = 200.0 / 3.0
    mels = f / f_sp
    min_log_hz = 1000.0
    min_log_mel = min_log_hz / f_sp
    logstep = np.log(6.4) / 27.0
    return np.where(
        f >= min_log_hz,
        min_log_mel + np.log(np.maximum(f, 1e-10) / min_log_hz) / logstep,
        mels,
    )


def _mel_to_hz(m):
    m = np.asarray(m, dtype=np.float64)
    f_sp = 200.0 / 3.0
    min_log_hz = 1000.0
    min_log_mel = min_log_hz / f_sp
    logstep = np.log(6.4) / 27.0
    return np.where(
        m >= min_log_mel,
        min_log_hz * np.exp(logstep * (m - min_log_mel)),
        f_sp * m,
    )


def mel_filterbank(sr, n_fft, n_mels):
    """librosa.filters.mel (htk=False, norm='slaney'), shape [n_mels, 1+n_fft//2]."""
    fmin, fmax = 0.0, sr / 2.0
    n_freq = 1 + n_fft // 2
    mel_pts = np.linspace(_hz_to_mel(fmin), _hz_to_mel(fmax), n_mels + 2)
    mel_f = _mel_to_hz(mel_pts)
    fftfreqs = np.linspace(0.0, sr / 2.0, n_freq)
    fdiff = np.diff(mel_f)
    ramps = mel_f[:, None] - fftfreqs[None, :]
    lower = -ramps[:-2] / fdiff[:-1][:, None]
    upper = ramps[2:] / fdiff[1:][:, None]
    weights = np.maximum(0.0, np.minimum(lower, upper))
    enorm = 2.0 / (mel_f[2 : n_mels + 2] - mel_f[:n_mels])
    weights *= enorm[:, None]
    return weights.astype(np.float32)


def dft_matrices(n_fft):
    """Real DFT matrices cos/(-sin) of shape [n_fft, 1+n_fft//2] (float64 math)."""
    n_freq = 1 + n_fft // 2
    n = np.arange(n_fft)[:, None].astype(np.float64)
    f = np.arange(n_freq)[None, :].astype(np.float64)
    ang = 2.0 * np.pi * n * f / n_fft
    return np.cos(ang), -np.sin(ang)


def hann_window(n_fft):
    """Periodic Hann window (librosa / scipy fftbins=True)."""
    n = np.arange(n_fft).astype(np.float64)
    return 0.5 * (1.0 - np.cos(2.0 * np.pi * n / n_fft))


def build_constants(sample_rate, n_fft, num_mels):
    """Window-folded, zero-padded operands.

    Returns:
      dft:  [n_fft, 2*n_freq_pad] = [win*cos | win*(-sin)], zero-padded lanes.
      melT: [n_freq_pad, mels_pad] = mel filterbank transposed, zero-padded.
    (x*w) @ C == x @ (diag(w) C) exactly, so folding the window is exact; zero
    padding only adds columns whose squares / weights are zero.
    """
    n_freq = 1 + n_fft // 2
    n_freq_pad = _round_up(n_freq, 128)
    mels_pad = _round_up(num_mels, 128)

    win = hann_window(n_fft)                                  # [n_fft] f64
    cos_m, sin_m = dft_matrices(n_fft)                        # [n_fft, n_freq] f64
    dft = np.zeros((n_fft, 2 * n_freq_pad), np.float32)
    dft[:, :n_freq] = (cos_m * win[:, None]).astype(np.float32)
    dft[:, n_freq_pad : n_freq_pad + n_freq] = (sin_m * win[:, None]).astype(np.float32)

    mel_fb = mel_filterbank(sample_rate, n_fft, num_mels)     # [n_mels, n_freq]
    melT = np.zeros((n_freq_pad, mels_pad), np.float32)
    melT[:n_freq, :num_mels] = mel_fb.T
    return dft, melT


# ----------------------------------------------------------------------------
# Framing without a gather: hop-strided reshape + contiguous slices
# ----------------------------------------------------------------------------
def _frame_signal(y_pad, n_fft, hop, n_frames):
    """frames[f, :] = y_pad[f*hop : f*hop + n_fft], built from ceil(n_fft/hop)
    contiguous slices of the hop-strided view (no scalar gather)."""
    n_blocks = -(-n_fft // hop)                   # ceil(n_fft / hop)
    rows = n_frames + n_blocks - 1
    need = rows * hop
    pad = max(0, need - y_pad.shape[0])
    y_ext = jnp.pad(y_pad, (0, pad)) if pad else y_pad
    strided = y_ext[:need].reshape(rows, hop)     # strided[k, :] = y[k*hop : (k+1)*hop]
    blocks = []
    for j in range(n_blocks):
        w = min(hop, n_fft - j * hop)             # last column block may be partial
        blocks.append(lax.slice(strided, (j, 0), (j + n_frames, w)))
    return jnp.concatenate(blocks, axis=1)        # [n_frames, n_fft]


# ----------------------------------------------------------------------------
# Pallas kernel: frames -> 10*log10(max(amin, mel_power))   (fused epilogue)
# ----------------------------------------------------------------------------
def mel_db_kernel(frames_ref, dft_ref, melT_ref, out_ref, *, n_freq_pad):
    # frames_ref: (t_tile, n_fft)         un-windowed frames (Hann folded into dft)
    # dft_ref:    (n_fft, 2*n_freq_pad)   [win*cos | win*(-sin)], zero-padded lanes
    # melT_ref:   (n_freq_pad, mels_pad)  mel filterbank^T, zero-padded
    # out_ref:    (t_tile, mels_pad)      lane-dense (128-multiple) output
    z = jnp.dot(frames_ref[...], dft_ref[...],
                precision=lax.Precision.HIGHEST,
                preferred_element_type=jnp.float32)            # [T, 2*n_freq_pad]
    zz = z * z
    power = zz[:, :n_freq_pad] + zz[:, n_freq_pad:]            # |STFT|^2 (tile-aligned)
    mel_power = jnp.dot(power, melT_ref[...],
                        precision=lax.Precision.HIGHEST,
                        preferred_element_type=jnp.float32)    # mel projection
    # Fused power_to_db numerator: 10*log10(max(amin, S)).  The ref=max
    # subtraction and top_db clamp run as tiny XLA ops on the sliced real
    # region in the wrapper -> no second kernel / HBM round-trip.
    amin = jnp.float32(1e-10)
    ten_over_ln10 = jnp.float32(10.0 / np.log(10.0))
    out_ref[...] = ten_over_ln10 * jnp.log(jnp.maximum(amin, mel_power))


def _const_spec(shape):
    """BlockSpec for a grid-invariant operand; single-buffer when supported
    (halves the resident VMEM of the large folded-DFT operand)."""
    try:
        return pl.BlockSpec(shape, lambda i: (0, 0),
                            pipeline_mode=pl.Buffered(buffer_count=1))
    except (TypeError, AttributeError):
        return pl.BlockSpec(shape, lambda i: (0, 0))


# ----------------------------------------------------------------------------
# Wrapper
# ----------------------------------------------------------------------------
@functools.partial(jax.jit, static_argnums=(1, 2, 3, 4))
def mel_spectrogram(x, sample_rate, fft_size, hop_length, num_mels):
    """Equivalent of MelSpectrogram.forward.  Returns [1, num_mels, n_frames]."""
    n_fft = fft_size
    n_freq = 1 + n_fft // 2
    n_freq_pad = _round_up(n_freq, 128)
    mels_pad = _round_up(num_mels, 128)

    # --- glue: flatten, center-pad (reflect, requires len > n_fft//2), frame ---
    y = jnp.reshape(x, (-1,)).astype(jnp.float32)
    y_pad = jnp.pad(y, (n_fft // 2, n_fft // 2), mode="reflect")
    n_frames = 1 + (y_pad.shape[0] - n_fft) // hop_length
    frames = _frame_signal(y_pad, n_fft, hop_length, n_frames)   # no gather
    # TODO(synk): for very long clips, frame inside the kernel from y_pad
    # (memory_space=pl.ANY + manual DMA of (t_tile-1)*hop + n_fft samples per
    # tile) to remove the ~n_fft/hop duplication of HBM bytes entirely.

    # --- time tiling: bigger tiles on 128-MiB-VMEM chips, >=2 parallel steps
    #     whenever n_frames > 128 so both v7x TensorCores are used ---
    vmem_cap = _vmem_capacity_bytes()
    max_t_tile = 512 if vmem_cap >= (96 << 20) else 256
    t8 = _round_up(n_frames, 8)
    if t8 <= 128:
        t_tile = t8
    elif t8 <= 2 * max_t_tile:
        t_tile = _round_up(-(-t8 // 2), 128)      # two ~equal "parallel" tiles
    else:
        t_tile = max_t_tile
    t_pad = _round_up(n_frames, t_tile)
    frames = jnp.pad(frames, ((0, t_pad - n_frames), (0, 0)))    # zero frames

    # --- deterministic, window-folded, padded constants ---
    dft_np, melT_np = build_constants(sample_rate, n_fft, num_mels)
    dft = jnp.asarray(dft_np)                                    # [n_fft, 2*n_freq_pad]
    melT = jnp.asarray(melT_np)                                  # [n_freq_pad, mels_pad]
    # TODO(synk): on v5e, bf16 inputs (keeping f32 accumulation) give ~3x MXU
    # throughput; validate the ~0.01-0.1 dB delta against librosa first.

    # --- VMEM budget: double-buffered tiles + single-buffered constants +
    #     intermediates + slack, capped at ~80% of detected VMEM capacity ---
    tile_bytes = 4 * t_tile * (n_fft + mels_pad)        # pipelined in/out tiles
    z_bytes = 4 * t_tile * 3 * n_freq_pad               # z / power temporaries
    const_bytes = 4 * (dft_np.size + melT_np.size)      # folded DFT + mel^T
    need = 2 * tile_bytes + z_bytes + const_bytes + (4 << 20)
    vmem_clamp = min(max(int(0.8 * vmem_cap), 40 << 20), 100 << 20)
    vmem_limit = int(min(max(need, 32 << 20), vmem_clamp))

    kernel = functools.partial(mel_db_kernel, n_freq_pad=n_freq_pad)
    mel_db_raw = pl.pallas_call(
        kernel,
        out_shape=jax.ShapeDtypeStruct((t_pad, mels_pad), jnp.float32),
        grid=(t_pad // t_tile,),
        in_specs=[
            pl.BlockSpec((t_tile, n_fft), lambda i: (i, 0)),
            _const_spec((n_fft, 2 * n_freq_pad)),
            _const_spec((n_freq_pad, mels_pad)),
        ],
        out_specs=pl.BlockSpec((t_tile, mels_pad), lambda i: (i, 0)),
        compiler_params=pltpu.CompilerParams(
            dimension_semantics=("parallel",),
            vmem_limit_bytes=vmem_limit),
    )(frames, dft, melT)

    # --- power_to_db(ref=np.max, top_db=80) epilogue on the real region:
    #     max/sub/clamp on [n_frames, num_mels] are tiny XLA ops.  With
    #     ref=max(S), log_spec.max()==0 so the top_db clamp is max(., -80). ---
    mel_db_unref = mel_db_raw[:n_frames, :num_mels]
    ref_db = jnp.max(mel_db_unref)      # == 10*log10(max(amin, max(S))) (monotone)
    mel_db = jnp.maximum(mel_db_unref - ref_db, jnp.float32(-80.0))

    # glue: librosa layout [n_mels, n_frames], then unsqueeze(0)
    return mel_db.T[None, :, :]


# ----------------------------------------------------------------------------
if __name__ == "__main__":
    SAMPLE_RATE = 16000
    FFT_SIZE = 256       # small but shape-consistent with the module's params
    HOP_LENGTH = 64
    NUM_MELS = 40

    key = jax.random.PRNGKey(0)
    x = jax.random.normal(key, (2, 512), dtype=jnp.float32)  # audio, flattened inside

    out = mel_spectrogram(x, SAMPLE_RATE, FFT_SIZE, HOP_LENGTH, NUM_MELS)
    out = jax.block_until_ready(out)

    expected_frames = 1 + x.size // HOP_LENGTH
    assert out.shape == (1, NUM_MELS, expected_frames), out.shape
    assert out.dtype == jnp.float32
    assert bool(jnp.all(jnp.isfinite(out)))
    assert bool(jnp.all(out <= 0.0)) and bool(jnp.all(out >= -80.0))
    assert abs(float(jnp.max(out))) < 1e-4   # ref = np.max => peak is 0 dB
    print("KERNEL_OK")
</pallas_src>

<mosaic_0001>
module attributes {stable_mosaic.version = 11 : i64} {
  func.func @mel_db_kernel(%arg0: i32, %arg1: memref<24x256xf32, #tpu.memory_space<vmem>>, %arg2: memref<256x512xf32, #tpu.memory_space<vmem>>, %arg3: memref<256x128xf32, #tpu.memory_space<vmem>>, %arg4: memref<24x128xf32, #tpu.memory_space<vmem>>) attributes {dimension_semantics = [#tpu.dimension_semantics<parallel>], iteration_bounds = array<i64: 1>, scalar_prefetch = 0 : i64, scratch_operands = 0 : i64, tpu.core_type = #tpu.core_type<tc>, window_params = [{transform_indices = @transform_0, window_bounds = array<i64: 24, 256>}, {pipeline_mode = #tpu.pipeline_mode<synchronous>, transform_indices = @transform_1, window_bounds = array<i64: 256, 512>}, {pipeline_mode = #tpu.pipeline_mode<synchronous>, transform_indices = @transform_2, window_bounds = array<i64: 256, 128>}, {transform_indices = @transform_3, window_bounds = array<i64: 24, 128>}]} {
    %c0 = arith.constant 0 : index
    %c0_0 = arith.constant 0 : index
    %0 = vector.load %arg1[%c0, %c0_0] : memref<24x256xf32, #tpu.memory_space<vmem>>, vector<24x256xf32>
    %c0_1 = arith.constant 0 : index
    %c0_2 = arith.constant 0 : index
    %1 = vector.load %arg2[%c0_1, %c0_2] : memref<256x512xf32, #tpu.memory_space<vmem>>, vector<256x512xf32>
    %cst = arith.constant dense<0.000000e+00> : vector<24x512xf32>
    %2 = tpu.matmul %0, %1, %cst {dimension_numbers = #tpu.dot_dimension_numbers<[1], [0], [0], [1], [0, 0, 1, 1], [], []>, precision = #tpu.contract_precision<fp32>} : vector<24x256xf32>, vector<256x512xf32>, vector<24x512xf32> -> vector<24x512xf32>
    %3 = arith.mulf %2, %2 : vector<24x512xf32>
    %4 = vector.extract_strided_slice %3 {offsets = [0, 0], sizes = [24, 256], strides = [1, 1]} : vector<24x512xf32> to vector<24x256xf32>
    %5 = vector.extract_strided_slice %3 {offsets = [0, 256], sizes = [24, 256], strides = [1, 1]} : vector<24x512xf32> to vector<24x256xf32>
    %6 = arith.addf %4, %5 : vector<24x256xf32>
    %c0_3 = arith.constant 0 : index
    %c0_4 = arith.constant 0 : index
    %7 = vector.load %arg3[%c0_3, %c0_4] : memref<256x128xf32, #tpu.memory_space<vmem>>, vector<256x128xf32>
    %cst_5 = arith.constant dense<0.000000e+00> : vector<24x128xf32>
    %8 = tpu.matmul %6, %7, %cst_5 {dimension_numbers = #tpu.dot_dimension_numbers<[1], [0], [0], [1], [0, 0, 1, 1], [], []>, precision = #tpu.contract_precision<fp32>} : vector<24x256xf32>, vector<256x128xf32>, vector<24x128xf32> -> vector<24x128xf32>
    %cst_6 = arith.constant 1.000000e-10 : f32
    %9 = vector.broadcast %cst_6 : f32 to vector<24x128xf32>
    %10 = arith.maximumf %9, %8 : vector<24x128xf32>
    %11 = math.log %10 : vector<24x128xf32>
    %cst_7 = arith.constant 4.34294462 : f32
    %12 = vector.broadcast %cst_7 : f32 to vector<24x128xf32>
    %13 = arith.mulf %12, %11 : vector<24x128xf32>
    %c0_8 = arith.constant 0 : index
    %c0_9 = arith.constant 0 : index
    %14 = vector.load %arg4[%c0_8, %c0_9] : memref<24x128xf32, #tpu.memory_space<vmem>>, vector<24x128xf32>
    tpu.vector_store %arg4[%c0_8, %c0_9], %13 {strides = array<i32>} : memref<24x128xf32, #tpu.memory_space<vmem>>, vector<24x128xf32>,
    return
  }
  func.func @transform_0(%arg0: i32) -> (i32, i32) {
    %c0_i32 = arith.constant 0 : i32
    %c0_i32_0 = arith.constant 0 : i32
    return %arg0, %c0_i32 : i32, i32
  }
  func.func @transform_1(%arg0: i32) -> (i32, i32) {
    %c0_i32 = arith.constant 0 : i32
    %c0_i32_0 = arith.constant 0 : i32
    %c0_i32_1 = arith.constant 0 : i32
    return %c0_i32, %c0_i32_0 : i32, i32
  }
  func.func @transform_2(%arg0: i32) -> (i32, i32) {
    %c0_i32 = arith.constant 0 : i32
    %c0_i32_0 = arith.constant 0 : i32
    %c0_i32_1 = arith.constant 0 : i32
    return %c0_i32, %c0_i32_0 : i32, i32
  }
  func.func @transform_3(%arg0: i32) -> (i32, i32) {
    %c0_i32 = arith.constant 0 : i32
    %c0_i32_0 = arith.constant 0 : i32
    return %arg0, %c0_i32 : i32, i32
  }
}

</mosaic_0001>

<bundles_post_ra>
// kernel: mel_spectrogram.1
= control target key start
LH: loop header
LB: loop body
LE: loop exit
PB: predicated region body
PF: predicated region fallthrough
CT: control target
= control target key end

     0   :  { %8 = vsyncpa [#allocation3], 0  ;;  %s4299_s12 = smov [#allocation2]   ;;  %s7551_s0 = inlined_call_operand.vmem [shape: f32[24,256], index: 0, kind: input, shape index: {}]   ;;  %s7552_s1 = inlined_call_operand.hbm [shape: f32[256,512], index: 1, kind: input, shape index: {}]   ;;  %s7553_s2 = inlined_call_operand.vmem [shape: f32[256,128], index: 2, kind: input, shape index: {}]   ;;  %s7554_s3 = inlined_call_operand.vmem [shape: f32[24,128], index: 3, kind: output, shape index: {}]  }
   0x1   :  { %s16_s13 = sshll.u32 %s4299_s12, 4  ;;  %s17_s13 = int_to_ptr.vmem [resolvable:$true] %s16_s13 }
   0x2   :  { %s4285_s14 = scalar_lea.vmem %s17_s13, 16384  ;;  %p4290_p1 = scmp.lt.s32.totalorder %s17_s13, %s17_s13 }
   0x3   :  { %p4286_p0 = scmp.ne.s32.totalorder %s17_s13, %s4285_s14  ;;  %p4291_p2 = scmp.lt.s32.totalorder %s4285_s14, %s4285_s14 }
   0x5   :  { %p4292_p3 = por %p4291_p2, %p4290_p1 }
   0x7   :  { %p4293_p4 = pnand %p4292_p3, %p4286_p0 }
   0x9   :  { %4296 = shalt.err (!%p4293_p4)
}
   0xa   :  { %s4300_s15 = smov 512   ;;  %s4301_s16 = smov 32  }
   0xb   :  { %22 = dma.hbm_to_vmem [thread:$0]  %s7552_s1, 16384, %s17_s13, [#allocation3], %s4300_s15, %s4300_s15, %s4301_s16  }
   0xc   :  { %4297 = dma.done.wait [#allocation3], 16384  }
   0xd   :  { %4298 = vsyncadd [#allocation3], 4294950912  ;;  %v95_v0 = vld [vmem:[#allocation2 + $0x1e8] sm:$0xff]  ;;  %v94_v1 = vld [vmem:[#allocation2 + $0x1e0] sm:$0xff] }
   0xe   :  { %v91_v2 = vld [vmem:[#allocation2 + $0x1c8] sm:$0xff]  ;;  %v4325_v3 = vand.u32 4294901760, %v95_v0  ;;  %v4327_v4 = vand.u32 4294901760, %v94_v1  ;;  %v90_v6 = vld [vmem:[#allocation2 + $0x1c0] sm:$0xff] }
   0xf   :  { %v4329_v5 = vand.u32 4294901760, %v91_v2  ;;  %v87_v7 = vld [vmem:[#allocation2 + $0x1a8] sm:$0xff]  ;;  %v86_v8 = vld [vmem:[#allocation2 + $0x1a0] sm:$0xff]  ;;  %v4331_v9 = vand.u32 4294901760, %v90_v6 }
  0x10   :  { %v4333_v10 = vand.u32 4294901760, %v87_v7  ;;  %v4335_v11 = vand.u32 4294901760, %v86_v8  ;;  %v83_v12 = vld [vmem:[#allocation2 + $0x188] sm:$0xff]  ;;  %v82_v13 = vld [vmem:[#allocation2 + $0x180] sm:$0xff]  ;;  %163 = vmatprep.subr.mxu0 %v4325_v3  ;;  %v4345_v18 = vsub.f32 %v95_v0, %v4325_v3  ;;  %v4358_v23 = vsub.f32 %v94_v1, %v4327_v4 }
  0x11   :  { %v79_v14 = vld [vmem:[#allocation2 + $0x168] sm:$0xff]  ;;  %v4338_v15 = vand.u32 4294901760, %v83_v12  ;;  %v4340_v16 = vand.u32 4294901760, %v82_v13  ;;  %v4347_v19 = vld [vmem:[#allocation2 + $0x160] sm:$0xff]  ;;  %165 = vmatpush1.msra.mxu0 %v4327_v4  ;;  %v4364_v25 = vsub.f32 %v91_v2, %v4329_v5  ;;  %v4378_v31 = vsub.f32 %v90_v6, %v4331_v9 }
  0x12   :  { %v4342_v17 = vand.u32 4294901760, %v79_v14  ;;  %v4349_v20 = vld [vmem:[#allocation2 + $0x148] sm:$0xff]  ;;  %v4351_v21 = vld [vmem:[#allocation2 + $0x140] sm:$0xff]  ;;  %v4355_v22 = vand.u32 4294901760, %v4347_v19  ;;  %167 = vmatprep.subr.mxu0 %v4329_v5  ;;  %v7568_v29 = vand.u32 4294901760, %v4345_v18  ;;  %v7566_v33 = vand.u32 4294901760, %v4358_v23 }
  0x13   :  { %8153 = vst [vmem:[#allocation5_spill] sm:$0xff] %v4340_v16  ;;  %v4361_v24 = vand.u32 4294901760, %v4349_v20  ;;  %v4366_v26 = vld [vmem:[#allocation2 + $0x128] sm:$0xff]  ;;  %v4368_v27 = vld [vmem:[#allocation2 + $0x120] sm:$0xff]  ;;  %v4375_v30 = vand.u32 4294901760, %v4351_v21  ;;  %169 = vmatpush1.msra.mxu0 %v4331_v9  ;;  %v7565_v34 = vand.u32 4294901760, %v4364_v25  ;;  %v4387_v35 = vsub.f32 %v87_v7, %v4333_v10 }
  0x14   :  { %8154 = vst [vmem:[#allocation6_spill] sm:$0xff] %v4342_v17  ;;  %8155 = vst [vmem:[#allocation7_spill] sm:$0xff] %v4355_v22  ;;  %v4370_v28 = vld [vmem:[#allocation2 + $0x108] sm:$0xff]  ;;  %v4381_v32 = vand.u32 4294901760, %v4366_v26  ;;  %v4390_v36 = vand.u32 4294901760, %v4368_v27  ;;  %v4392_v37 = vld [vmem:[#allocation2 + $0x100] sm:$0xff]  ;;  %171 = vmatprep.subr.mxu0 %v4333_v10  ;;  %v342_v38 = vsub.f32 %v4345_v18, %v7568_v29  ;;  %v4400_v40 = vsub.f32 %v86_v8, %v4335_v11 }
  0x15   :  { %8156 = vst [vmem:[#allocation8_spill] sm:$0xff] %v4361_v24  ;;  %8157 = vst [vmem:[#allocation9_spill] sm:$0xff] %v4375_v30  ;;  %v7563_v39 = vand.u32 4294901760, %v4378_v31  ;;  %v4403_v41 = vand.u32 4294901760, %v4370_v28  ;;  %173 = vmatpush1.msra.mxu0 %v4335_v11  ;;  %v348_v42 = vsub.f32 %v4358_v23, %v7566_v33  ;;  %v354_v43 = vsub.f32 %v4364_v25, %v7565_v34  ;;  %v4416_v46 = vld [vmem:[#allocation2 + $0xe8] sm:$0xff]  ;;  %v4426_v51 = vld [vmem:[#allocation2 + $0xe0] sm:$0xff] }
  0x16   :  { %8158 = vst [vmem:[#allocation10_spill] sm:$0xff] %v4381_v32  ;;  %8159 = vst [vmem:[#allocation11_spill] sm:$0xff] %v4390_v36  ;;  %v7561_v44 = vand.u32 4294901760, %v4387_v35  ;;  %v4414_v45 = vsub.f32 %v83_v12, %v4338_v15  ;;  %175 = vmatprep.subr.mxu0 %v4338_v15  ;;  %v343_v47 = vand.u32 4294901760, %v342_v38  ;;  %v7560_v49 = vand.u32 4294901760, %v4400_v40  ;;  %v4433_v56 = vld [vmem:[#allocation2 + $0xc8] sm:$0xff] }
  0x17   :  { %8160 = vst [vmem:[#allocation12_spill] sm:$0xff] %v4403_v41  ;;  %v360_v48 = vsub.f32 %v4378_v31, %v7563_v39  ;;  %v4424_v50 = vand.u32 4294901760, %v4392_v37  ;;  %177 = vmatpush1.msra.mxu0 %v4340_v16  ;;  %v349_v52 = vand.u32 4294901760, %v348_v42  ;;  %v355_v53 = vand.u32 4294901760, %v354_v43  ;;  %v4445_v61 = vld [vmem:[#allocation2 + $0xc0] sm:$0xff]  ;;  %v4457_v2 = vld [vmem:[#allocation2 + $0xa8] sm:$0xff] }
  0x18   :  { %v366_v54 = vsub.f32 %v4387_v35, %v7561_v44  ;;  %v7558_v55 = vand.u32 4294901760, %v4414_v45  ;;  %179 = vmatprep.subr.mxu0 %v4342_v17  ;;  %344 = vmatprep.subr.mxu1 %v343_v47  ;;  %v372_v58 = vsub.f32 %v4400_v40, %v7560_v49  ;;  %v4440_v59 = vsub.f32 %v82_v13, %v4340_v16  ;;  %v4468_v13 = vld [vmem:[#allocation2 + $0xa0] sm:$0xff]  ;;  %v4548_v39 = vld [vmem:[#allocation2 + $0x48] sm:$0xff] }
  0x19   :  { %8161 = vst [vmem:[#allocation13_spill] sm:$0xff] %v4424_v50  ;;  %v361_v57 = vand.u32 4294901760, %v360_v48  ;;  %v4443_v60 = vand.u32 4294901760, %v4416_v46  ;;  %181 = vmatpush1.msra.mxu0 %v4355_v22  ;;  %350 = vmatpush1.msra.mxu1 %v349_v52  ;;  %v4452_v0 = vsub.f32 %v79_v14, %v4342_v17  ;;  %v4455_v1 = vand.u32 4294901760, %v4426_v51  ;;  %v4535_v49 = vld [vmem:[#allocation2 + $0x60] sm:$0xff] }
  0x1a   :  { %v367_v62 = vand.u32 4294901760, %v366_v54  ;;  %v378_v63 = vsub.f32 %v4414_v45, %v7558_v55  ;;  %183 = vmatprep.subr.mxu0 %v4361_v24  ;;  %356 = vmatprep.subr.mxu1 %v355_v53  ;;  %v373_v6 = vand.u32 4294901760, %v372_v58  ;;  %v7556_v7 = vand.u32 4294901760, %v4440_v59  ;;  %v4558_v34 = vld [vmem:[#allocation2 + $0x40] sm:$0xff] }
  0x1b   :  { %8162 = vst [vmem:[#allocation14_spill] sm:$0xff] %v4443_v60  ;;  %8163 = vst [vmem:[#allocation15_spill] sm:$0xff] %v4455_v1  ;;  %v4463_v8 = vsub.f32 %v4347_v19, %v4355_v22  ;;  %v4466_v12 = vand.u32 4294901760, %v4433_v56  ;;  %185 = vmatpush1.msra.mxu0 %v4375_v30  ;;  %362 = vmatpush1.msra.mxu1 %v361_v57  ;;  %v7555_v38 = vand.u32 4294901760, %v4452_v0  ;;  %v4477_v43 = vand.u32 4294901760, %v4445_v61 }
  0x1c   :  { %v379_v14 = vand.u32 4294901760, %v378_v63  ;;  %v4474_v42 = vsub.f32 %v4349_v20, %v4361_v24  ;;  %187 = vmatprep.subr.mxu0 %v4381_v32  ;;  %368 = vmatprep.subr.mxu1 %v367_v62  ;;  %v384_v19 = vsub.f32 %v4440_v59, %v7556_v7  ;;  %v4486_v48 = vsub.f32 %v4351_v21, %v4375_v30  ;;  %v4491_v20 = vld [vmem:[#allocation2 + $0x88] sm:$0xff] }
  0x1d   :  { %8164 = vst [vmem:[#allocation16_spill] sm:$0xff] %v4466_v12  ;;  %8165 = vst [vmem:[#allocation17_spill] sm:$0xff] %v4477_v43  ;;  %v7557_v47 = vand.u32 4294901760, %v4463_v8  ;;  %v4489_v52 = vand.u32 4294901760, %v4457_v2  ;;  %189 = vmatpush1.msra.mxu0 %v4390_v36  ;;  %374 = vmatpush1.msra.mxu1 %v373_v6  ;;  %v390_v53 = vsub.f32 %v4452_v0, %v7555_v38  ;;  %v4503_v21 = vand.u32 4294901760, %v4468_v13  ;;  %v4514_v38 = vld [vmem:[#allocation2 + $0x80] sm:$0xff] }
  0x1e   :  { %v7559_v54 = vand.u32 4294901760, %v4474_v42  ;;  %v4500_v57 = vsub.f32 %v4366_v26, %v4381_v32  ;;  %191 = vmatprep.subr.mxu0 %v4403_v41  ;;  %380 = vmatprep.subr.mxu1 %v379_v14  ;;  %v385_v58 = vand.u32 4294901760, %v384_v19  ;;  %v7562_v63 = vand.u32 4294901760, %v4486_v48 }
  0x1f   :  { %8166 = vst [vmem:[#allocation18_spill] sm:$0xff] %v4489_v52  ;;  %8167 = vst [vmem:[#allocation19_spill] sm:$0xff] %v4503_v21  ;;  %v396_v62 = vsub.f32 %v4463_v8, %v7557_v47  ;;  %v4512_v6 = vsub.f32 %v4368_v27, %v4390_v36  ;;  %193 = vmatpush1.msra.mxu0 %v4424_v50  ;;  %v391_v26 = vand.u32 4294901760, %v390_v53  ;;  %v4522_v7 = vand.u32 4294901760, %v4491_v20  ;;  %v4524_v47 = vld [vmem:[#allocation2 + $0x68] sm:$0xff] }
  0x20   :  { %v402_v14 = vsub.f32 %v4474_v42, %v7559_v54  ;;  %v7564_v19 = vand.u32 4294901760, %v4500_v57  ;;  %386 = vmatpush1.msra.mxu1 %v385_v58  ;;  %195 = vmatprep.subr.mxu0 %v4443_v60  ;;  %v408_v55 = vsub.f32 %v4486_v48, %v7562_v63  ;;  %v4533_v54 = vsub.f32 %v4370_v28, %v4403_v41  ;;  %v4638_v36 = vld [vmem:[#allocation2 + $0x3e8] sm:$0xff] }
  0x21   :  { %8168 = vst [vmem:[#allocation20_spill] sm:$0xff] %v4522_v7  ;;  %v397_v27 = vand.u32 4294901760, %v396_v62  ;;  %v7567_v53 = vand.u32 4294901760, %v4512_v6  ;;  %392 = vmatprep.subr.mxu1 %v391_v26  ;;  %197 = vmatpush1.msra.mxu0 %v4455_v1  ;;  %v4542_v62 = vand.u32 4294901760, %v4514_v38  ;;  %v4546_v63 = vsub.f32 %v4392_v37, %v4424_v50 }
  0x22   :  { %v403_v44 = vand.u32 4294901760, %v402_v14  ;;  %v414_v58 = vsub.f32 %v4500_v57, %v7564_v19  ;;  %199 = vmatprep.subr.mxu0 %v4466_v12  ;;  %v409_v28 = vand.u32 4294901760, %v408_v55  ;;  %v7571_v14 = vand.u32 4294901760, %v4533_v54 }
  0x23   :  { %8169 = vst [vmem:[#allocation21_spill] sm:$0xff] %v4542_v62  ;;  %398 = vmatpush1.msra.mxu1 %v397_v27  ;;  %v420_v26 = vsub.f32 %v4512_v6, %v7567_v53  ;;  %v4556_v19 = vand.u32 4294901760, %v4524_v47  ;;  %201 = vmatpush1.msra.mxu0 %v4477_v43  ;;  %v7574_v27 = vand.u32 4294901760, %v4546_v63  ;;  %v4564_v55 = vsub.f32 %v4416_v46, %v4443_v60  ;;  %v4569_v53 = vld [vmem:[#allocation2 + $0x28] sm:$0xff] }
  0x24   :  { %404 = vmatprep.subr.mxu1 %v403_v44  ;;  %v415_v37 = vand.u32 4294901760, %v414_v58  ;;  %v4567_v33 = vand.u32 4294901760, %v4535_v49  ;;  %203 = vmatprep.subr.mxu0 %v4489_v52  ;;  %v426_v44 = vsub.f32 %v4533_v54, %v7571_v14  ;;  %v4577_v58 = vsub.f32 %v4426_v51, %v4455_v1  ;;  %v4594_v51 = vld [vmem:[#allocation2 + $0x20] sm:$0xff] }
  0x25   :  { %8170 = vst [vmem:[#allocation22_spill] sm:$0xff] %v4556_v19  ;;  %8171 = vst [vmem:[#allocation23_spill] sm:$0xff] %v4564_v55  ;;  %410 = vmatpush1.msra.mxu1 %v409_v28  ;;  %v421_v29 = vand.u32 4294901760, %v420_v26  ;;  %v4580_v46 = vand.u32 4294901760, %v4548_v39  ;;  %205 = vmatpush1.msra.mxu0 %v4503_v21  ;;  %v432_v28 = vsub.f32 %v4546_v63, %v7574_v27  ;;  %v4592_v14 = vand.u32 4294901760, %v4558_v34 }
  0x26   :  { %8172 = vst [vmem:[#allocation24_spill] sm:$0xff] %v4567_v33  ;;  %8173 = vst [vmem:[#allocation25_spill] sm:$0xff] %v4577_v58  ;;  %416 = vmatprep.subr.mxu1 %v415_v37  ;;  %v4589_v60 = vsub.f32 %v4433_v56, %v4466_v12  ;;  %207 = vmatprep.subr.mxu0 %v4522_v7  ;;  %v427_v37 = vand.u32 4294901760, %v426_v44  ;;  %v4600_v27 = vsub.f32 %v4445_v61, %v4477_v43  ;;  %v4605_v56 = vld [vmem:[#allocation2 + $0x8] sm:$0xff]  ;;  %v4628_v44 = vld [vmem:[#allocation2] sm:$0xff] }
  0x27   :  { %8174 = vst [vmem:[#allocation26_spill] sm:$0xff] %v4580_v46  ;;  %8176 = vst [vmem:[#allocation28_spill] sm:$0xff] %v4592_v14  ;;  %422 = vmatpush1.msra.mxu1 %v421_v29  ;;  %v4603_v26 = vand.u32 4294901760, %v4569_v53  ;;  %209 = vmatpush1.msra.mxu0 %v4542_v62  ;;  %v433_v12 = vand.u32 4294901760, %v432_v28  ;;  %v8179_v50 = vand.u32 4294901760, %v4564_v55  ;;  %v4614_v1 = vsub.f32 %v4457_v2, %v4489_v52 }
  0x28   :  { %8175 = vst [vmem:[#allocation27_spill] sm:$0xff] %v4589_v60  ;;  %8177 = vst [vmem:[#allocation29_spill] sm:$0xff] %v4600_v27  ;;  %428 = vmatprep.subr.mxu1 %v427_v37  ;;  %211 = vmatprep.subr.mxu0 %v4556_v19  ;;  %v8181_v61 = vand.u32 4294901760, %v4577_v58  ;;  %v4622_v28 = vand.u32 4294901760, %v4594_v51  ;;  %v8184_v37 = vand.u32 4294901760, %v4589_v60  ;;  %v4636_v41 = vand.u32 4294901760, %v4605_v56 }
  0x29   :  { %8178 = vst [vmem:[#allocation30_spill] sm:$0xff] %v4603_v26  ;;  %v438_v29 = vsub.f32 %v4564_v55, %v8179_v50  ;;  %8180 = vst [vmem:[#allocation31_spill] sm:$0xff] %v4614_v1  ;;  %v4626_v50 = vsub.f32 %v4468_v13, %v4503_v21  ;;  %434 = vmatpush1.msra.mxu1 %v433_v12  ;;  %213 = vmatpush1.msra.mxu0 %v4567_v33  ;;  %v8186_v13 = vand.u32 4294901760, %v4600_v27 }
  0x2a   :  { %v444_v43 = vsub.f32 %v4577_v58, %v8181_v61  ;;  %8182 = vst [vmem:[#allocation32_spill] sm:$0xff] %v4622_v28  ;;  %v450_v52 = vsub.f32 %v4589_v60, %v8184_v37  ;;  %8185 = vst [vmem:[#allocation34_spill] sm:$0xff] %v4636_v41  ;;  %215 = vmatprep.subr.mxu0 %v4580_v46  ;;  %v4647_v21 = vsub.f32 %v4491_v20, %v4522_v7  ;;  %v4649_v37 = vld [vmem:[#allocation2 + $0x3e0] sm:$0xff] }
  0x2b   :  { %8183 = vst [vmem:[#allocation33_spill] sm:$0xff] %v4626_v50  ;;  %v439_v2 = vand.u32 4294901760, %v438_v29  ;;  %v456_v12 = vsub.f32 %v4600_v27, %v8186_v13  ;;  %217 = vmatpush1.msra.mxu0 %v4592_v14  ;;  %v4656_v24 = vand.u32 4294901760, %v4628_v44  ;;  %v4660_v13 = vsub.f32 %v4514_v38, %v4542_v62  ;;  %v4662_v29 = vld [vmem:[#allocation2 + $0x3c8] sm:$0xff] }
  0x2c   :  { %v445_v32 = vand.u32 4294901760, %v444_v43  ;;  %8187 = vst [vmem:[#allocation35_spill] sm:$0xff] %v4647_v21  ;;  %v451_v61 = vand.u32 4294901760, %v450_v52  ;;  %v8188_v43 = vand.u32 4294901760, %v4614_v1  ;;  %219 = vmatprep.subr.mxu0 %v4603_v26  ;;  %v8191_v52 = vand.u32 4294901760, %v4626_v50 }
  0x2d   :  { %440 = vmatprep.subr.mxu1 %v439_v2  ;;  %8189 = vst [vmem:[#allocation36_spill] sm:$0xff] %v4656_v24  ;;  %8190 = vst [vmem:[#allocation37_spill] sm:$0xff] %v4660_v13  ;;  %v457_v20 = vand.u32 4294901760, %v456_v12  ;;  %221 = vmatpush1.msra.mxu0 %v4622_v28  ;;  %v4678_v12 = vsub.f32 %v4524_v47, %v4556_v19  ;;  %v4681_v62 = vand.u32 4294901760, %v4649_v37  ;;  %v4694_v47 = vand.u32 4294901760, %v4662_v29 }
  0x2e   :  { %v462_v30 = vsub.f32 %v4614_v1, %v8188_v43  ;;  %446 = vmatpush1.msra.mxu1 %v445_v32  ;;  %v468_v2 = vsub.f32 %v4626_v50, %v8191_v52  ;;  %v4670_v43 = vand.u32 4294901760, %v4638_v36  ;;  %v4672_v1 = vld [vmem:[#allocation2 + $0x3c0] sm:$0xff]  ;;  %v4683_v52 = vld [vmem:[#allocation2 + $0x3a8] sm:$0xff]  ;;  %223 = vmatprep.subr.mxu0 %v4636_v41  ;;  %v4691_v32 = vsub.f32 %v4535_v49, %v4567_v33 }
  0x2f   :  { %452 = vmatprep.subr.mxu1 %v451_v61  ;;  %8193 = vst [vmem:[#allocation39_spill] sm:$0xff] %v4678_v12  ;;  %8194 = vst [vmem:[#allocation40_spill] sm:$0xff] %v4681_v62  ;;  %v8195_v61 = vand.u32 4294901760, %v4647_v21  ;;  %225 = vmatpush1.msra.mxu0 %v4656_v24  ;;  %v8198_v19 = vand.u32 4294901760, %v4660_v13  ;;  %v4703_v50 = vsub.f32 %v4548_v39, %v4580_v46  ;;  %v4708_v49 = vld [vmem:[#allocation2 + $0x3a0] sm:$0xff]  ;;  %v4719_v39 = vld [vmem:[#allocation2 + $0x388] sm:$0xff] }
  0x30   :  { %8192 = vst [vmem:[#allocation38_spill] sm:$0xff] %v4670_v43  ;;  %v463_v38 = vand.u32 4294901760, %v462_v30  ;;  %458 = vmatpush1.msra.mxu1 %v457_v20  ;;  %v469_v7 = vand.u32 4294901760, %v468_v2  ;;  %8196 = vst [vmem:[#allocation41_spill] sm:$0xff] %v4691_v32  ;;  %227 = vmatprep.subr.mxu0 %v4670_v43  ;;  %v4717_v2 = vand.u32 4294901760, %v4683_v52 }
  0x31   :  { %v474_v30 = vsub.f32 %v4647_v21, %v8195_v61  ;;  %8197 = vst [vmem:[#allocation42_spill] sm:$0xff] %v4694_v47  ;;  %v480_v20 = vsub.f32 %v4660_v13, %v8198_v19  ;;  %8199 = vst [vmem:[#allocation43_spill] sm:$0xff] %v4703_v50  ;;  %v4706_v61 = vand.u32 4294901760, %v4672_v1  ;;  %v4714_v19 = vsub.f32 %v4558_v34, %v4592_v14 }
  0x32   :  { %464 = vmatprep.subr.mxu1 %v463_v38  ;;  %v7617_v38 = vand.u32 4294901760, %v4691_v32  ;;  %8202 = vst [vmem:[#allocation46_spill] sm:$0xff] %v4717_v2  ;;  %v8203_v13 = vand.u32 4294901760, %v4678_v12  ;;  %229 = vmatpush2.msra.mxu0 %v4681_v62  ;;  %v4736_v14 = vand.u32 4294901760, %v4708_v49 }
  0x33   :  { %8200 = vst [vmem:[#allocation44_spill] sm:$0xff] %v4706_v61  ;;  %470 = vmatpush1.msra.mxu1 %v469_v7  ;;  %v475_v33 = vand.u32 4294901760, %v474_v30  ;;  %8201 = vst [vmem:[#allocation45_spill] sm:$0xff] %v4714_v19  ;;  %v481_v46 = vand.u32 4294901760, %v480_v20  ;;  %v4728_v30 = vsub.f32 %v4569_v53, %v4603_v26  ;;  %231 = vmatprep.subr.mxu0 %v4694_v47  ;;  %v4742_v7 = vld [vmem:[#allocation2 + $0x380] sm:$0xff]  ;;  %v4750_v20 = vand.u32 4294901760, %v4719_v39 }
  0x34   :  { %v486_v21 = vsub.f32 %v4678_v12, %v8203_v13  ;;  %v492_v34 = vsub.f32 %v4691_v32, %v7617_v38  ;;  %8205 = vst [vmem:[#allocation48_spill] sm:$0xff] %v4736_v14  ;;  %v4740_v13 = vsub.f32 %v4594_v51, %v4622_v28  ;;  %233 = vmatpush2.msra.mxu0 %v4706_v61  ;;  %v4752_v32 = vld [vmem:[#allocation2 + $0x368] sm:$0xff]  ;;  %v8209_v51 = vand.u32 4294901760, %v4714_v19 }
  0x35   :  { %8204 = vst [vmem:[#allocation47_spill] sm:$0xff] %v4728_v30  ;;  %476 = vmatprep.subr.mxu1 %v475_v33  ;;  %v8207_v33 = vand.u32 4294901760, %v4703_v50  ;;  %8208 = vst [vmem:[#allocation50_spill] sm:$0xff] %v4750_v20  ;;  %235 = vmatprep.subr.mxu0 %v4717_v2 }
  0x36   :  { %8206 = vst [vmem:[#allocation49_spill] sm:$0xff] %v4740_v13  ;;  %482 = vmatpush1.msra.mxu1 %v481_v46  ;;  %v487_v53 = vand.u32 4294901760, %v486_v21  ;;  %v493_v12 = vand.u32 4294901760, %v492_v34  ;;  %v504_v28 = vsub.f32 %v4714_v19, %v8209_v51  ;;  %v4761_v46 = vsub.f32 %v4605_v56, %v4636_v41  ;;  %237 = vmatpush2.msra.mxu0 %v4736_v14  ;;  %v4776_v19 = vld [vmem:[#allocation2 + $0x348] sm:$0xff] }
  0x37   :  { %v498_v26 = vsub.f32 %v4703_v50, %v8207_v33  ;;  %v4763_v33 = vld [vmem:[#allocation2 + $0x360] sm:$0xff]  ;;  %v8211_v50 = vand.u32 4294901760, %v4728_v30  ;;  %v4770_v51 = vand.u32 4294901760, %v4742_v7  ;;  %v4774_v21 = vsub.f32 %v4628_v44, %v4656_v24  ;;  %239 = vmatprep.subr.mxu0 %v4750_v20  ;;  %v4797_v24 = vld [vmem:[#allocation2 + $0x328] sm:$0xff] }
  0x38   :  { %8210 = vst [vmem:[#allocation51_spill] sm:$0xff] %v4761_v46  ;;  %488 = vmatprep.subr.mxu1 %v487_v53  ;;  %v505_v56 = vand.u32 4294901760, %v504_v28  ;;  %v8214_v53 = vand.u32 4294901760, %v4740_v13  ;;  %v4784_v41 = vand.u32 4294901760, %v4752_v32  ;;  %v4792_v28 = vsub.f32 %v4638_v36, %v4670_v43 }
  0x39   :  { %v499_v38 = vand.u32 4294901760, %v498_v26  ;;  %v510_v34 = vsub.f32 %v4728_v30, %v8211_v50  ;;  %8212 = vst [vmem:[#allocation52_spill] sm:$0xff] %v4770_v51  ;;  %8213 = vst [vmem:[#allocation53_spill] sm:$0xff] %v4774_v21  ;;  %494 = vmatpush1.msra.mxu1 %v493_v12  ;;  %v4786_v30 = vld [vmem:[#allocation2 + $0x340] sm:$0xff]  ;;  %241 = vmatpush2.msra.mxu0 %v4770_v51  ;;  %v7640_v12 = vand.u32 4294901760, %v4774_v21  ;;  %v4808_v36 = vand.u32 4294901760, %v4776_v19 }
  0x3a   :  { %v516_v26 = vsub.f32 %v4740_v13, %v8214_v53  ;;  %8215 = vst [vmem:[#allocation54_spill] sm:$0xff] %v4784_v41  ;;  %8216 = vst [vmem:[#allocation55_spill] sm:$0xff] %v4792_v28  ;;  %v4795_v53 = vand.u32 4294901760, %v4763_v33  ;;  %v8218_v13 = vand.u32 4294901760, %v4761_v46  ;;  %243 = vmatprep.subr.mxu0 %v4784_v41 }
  0x3b   :  { %500 = vmatprep.subr.mxu1 %v499_v38  ;;  %v511_v44 = vand.u32 4294901760, %v510_v34  ;;  %v4805_v34 = vsub.f32 %v4649_v37, %v4681_v62  ;;  %8220 = vst [vmem:[#allocation58_spill] sm:$0xff] %v4808_v36  ;;  %v528_v43 = vsub.f32 %v4774_v21, %v7640_v12  ;;  %v4822_v37 = vld [vmem:[#allocation2 + $0x320] sm:$0xff]  ;;  %v4828_v12 = vsub.f32 %v4672_v1, %v4706_v61 }
  0x3c   :  { %8217 = vst [vmem:[#allocation56_spill] sm:$0xff] %v4795_v53  ;;  %506 = vmatpush1.msra.mxu1 %v505_v56  ;;  %v517_v50 = vand.u32 4294901760, %v516_v26  ;;  %v522_v38 = vsub.f32 %v4761_v46, %v8218_v13  ;;  %245 = vmatpush2.msra.mxu0 %v4795_v53  ;;  %v4817_v13 = vsub.f32 %v4662_v29, %v4694_v47  ;;  %v4820_v26 = vand.u32 4294901760, %v4786_v30  ;;  %v4833_v29 = vld [vmem:[#allocation2 + $0x308] sm:$0xff] }
  0x3d   :  { %8219 = vst [vmem:[#allocation57_spill] sm:$0xff] %v4805_v34  ;;  %512 = vmatprep.subr.mxu1 %v511_v44  ;;  %v7651_v44 = vand.u32 4294901760, %v4805_v34  ;;  %247 = vmatprep.subr.mxu0 %v4808_v36  ;;  %8223 = vst [vmem:[#allocation61_spill] sm:$0xff] %v4828_v12  ;;  %v4831_v56 = vand.u32 4294901760, %v4797_v24  ;;  %v529_v47 = vand.u32 4294901760, %v528_v43  ;;  %v8225_v21 = vand.u32 4294901760, %v4792_v28 }
  0x3e   :  { %8221 = vst [vmem:[#allocation59_spill] sm:$0xff] %v4817_v13  ;;  %8222 = vst [vmem:[#allocation60_spill] sm:$0xff] %v4820_v26  ;;  %518 = vmatpush1.msra.mxu1 %v517_v50  ;;  %v523_v62 = vand.u32 4294901760, %v522_v38  ;;  %249 = vmatpush2.msra.mxu0 %v4820_v26  ;;  %v4842_v38 = vsub.f32 %v4683_v52, %v4717_v2  ;;  %v4850_v43 = vand.u32 4294901760, %v4822_v37  ;;  %v4856_v50 = vld [vmem:[#allocation2 + $0x300] sm:$0xff]  ;;  %v4863_v61 = vand.u32 4294901760, %v4833_v29 }
  0x3f   :  { %8224 = vst [vmem:[#allocation62_spill] sm:$0xff] %v4831_v56  ;;  %v534_v46 = vsub.f32 %v4792_v28, %v8225_v21  ;;  %v540_v1 = vsub.f32 %v4805_v34, %v7651_v44  ;;  %251 = vmatprep.subr.mxu0 %v4831_v56  ;;  %v4854_v21 = vsub.f32 %v4708_v49, %v4736_v14  ;;  %v4865_v34 = vld [vmem:[#allocation2 + $0x2e8] sm:$0xff]  ;;  %v8231_v27 = vand.u32 4294901760, %v4828_v12 }
  0x40   :  { %8226 = vst [vmem:[#allocation63_spill] sm:$0xff] %v4842_v38  ;;  %524 = vmatprep.subr.mxu1 %v523_v62  ;;  %8227 = vst [vmem:[#allocation64_spill] sm:$0xff] %v4850_v43  ;;  %v8229_v62 = vand.u32 4294901760, %v4817_v13  ;;  %253 = vmatpush2.msra.mxu0 %v4850_v43  ;;  %v8233_v14 = vand.u32 4294901760, %v4842_v38 }
  0x41   :  { %8228 = vst [vmem:[#allocation65_spill] sm:$0xff] %v4854_v21  ;;  %530 = vmatpush1.msra.mxu1 %v529_v47  ;;  %v535_v52 = vand.u32 4294901760, %v534_v46  ;;  %8230 = vst [vmem:[#allocation66_spill] sm:$0xff] %v4863_v61  ;;  %v541_v28 = vand.u32 4294901760, %v540_v1  ;;  %v552_v49 = vsub.f32 %v4828_v12, %v8231_v27  ;;  %v4874_v46 = vsub.f32 %v4719_v39, %v4750_v20  ;;  %v4889_v12 = vld [vmem:[#allocation2 + $0x2c8] sm:$0xff] }
  0x42   :  { %v546_v2 = vsub.f32 %v4817_v13, %v8229_v62  ;;  %v4876_v62 = vld [vmem:[#allocation2 + $0x2e0] sm:$0xff]  ;;  %v558_v1 = vsub.f32 %v4842_v38, %v8233_v14  ;;  %255 = vmatprep.subr.mxu0 %v4863_v61  ;;  %v4883_v27 = vand.u32 4294901760, %v4856_v50  ;;  %v4887_v47 = vsub.f32 %v4742_v7, %v4770_v51 }
  0x43   :  { %8232 = vst [vmem:[#allocation67_spill] sm:$0xff] %v4874_v46  ;;  %536 = vmatprep.subr.mxu1 %v535_v52  ;;  %v553_v39 = vand.u32 4294901760, %v552_v49  ;;  %v8236_v52 = vand.u32 4294901760, %v4854_v21  ;;  %v4896_v14 = vand.u32 4294901760, %v4865_v34  ;;  %v4898_v38 = vld [vmem:[#allocation2 + $0x2c0] sm:$0xff]  ;;  %v4907_v49 = vand.u32 4294901760, %v4876_v62 }
  0x44   :  { %v547_v44 = vand.u32 4294901760, %v546_v2  ;;  %8234 = vst [vmem:[#allocation68_spill] sm:$0xff] %v4883_v27  ;;  %8235 = vst [vmem:[#allocation69_spill] sm:$0xff] %v4887_v47  ;;  %542 = vmatpush2.msra.mxu1 %v541_v28  ;;  %v559_v13 = vand.u32 4294901760, %v558_v1  ;;  %257 = vmatpush2.msra.mxu0 %v4883_v27  ;;  %v7674_v7 = vand.u32 4294901760, %v4887_v47  ;;  %v4904_v28 = vsub.f32 %v4752_v32, %v4784_v41 }
  0x45   :  { %v564_v2 = vsub.f32 %v4854_v21, %v8236_v52  ;;  %8237 = vst [vmem:[#allocation70_spill] sm:$0xff] %v4896_v14  ;;  %8239 = vst [vmem:[#allocation72_spill] sm:$0xff] %v4907_v49  ;;  %v4909_v52 = vld [vmem:[#allocation2 + $0x2a8] sm:$0xff]  ;;  %v8240_v51 = vand.u32 4294901760, %v4874_v46  ;;  %259 = vmatprep.subr.mxu0 %v4896_v14  ;;  %v4917_v1 = vsub.f32 %v4763_v33, %v4795_v53  ;;  %v4920_v32 = vand.u32 4294901760, %v4889_v12  ;;  %v4934_v33 = vld [vmem:[#allocation2 + $0x2a0] sm:$0xff] }
  0x46   :  { %548 = vmatprep.subr.mxu1 %v547_v44  ;;  %8238 = vst [vmem:[#allocation71_spill] sm:$0xff] %v4904_v28  ;;  %v576_v41 = vsub.f32 %v4887_v47, %v7674_v7  ;;  %261 = vmatpush2.msra.mxu0 %v4907_v49  ;;  %v4940_v7 = vsub.f32 %v4786_v30, %v4820_v26  ;;  %v8247_v47 = vand.u32 4294901760, %v4904_v28 }
  0x47   :  { %554 = vmatpush2.msra.mxu1 %v553_v39  ;;  %v565_v20 = vand.u32 4294901760, %v564_v2  ;;  %v570_v44 = vsub.f32 %v4874_v46, %v8240_v51  ;;  %8241 = vst [vmem:[#allocation73_spill] sm:$0xff] %v4917_v1  ;;  %8242 = vst [vmem:[#allocation74_spill] sm:$0xff] %v4920_v32  ;;  %v4929_v51 = vsub.f32 %v4776_v19, %v4808_v36  ;;  %v4932_v2 = vand.u32 4294901760, %v4898_v38  ;;  %v4945_v19 = vld [vmem:[#allocation2 + $0x288] sm:$0xff] }
  0x48   :  { %560 = vmatprep.subr.mxu1 %v559_v13  ;;  %v7685_v13 = vand.u32 4294901760, %v4917_v1  ;;  %263 = vmatprep.subr.mxu0 %v4920_v32  ;;  %8245 = vst [vmem:[#allocation77_spill] sm:$0xff] %v4940_v7  ;;  %v4943_v39 = vand.u32 4294901760, %v4909_v52  ;;  %v577_v36 = vand.u32 4294901760, %v576_v41  ;;  %v582_v46 = vsub.f32 %v4904_v28, %v8247_v47 }
  0x49   :  { %8243 = vst [vmem:[#allocation75_spill] sm:$0xff] %v4929_v51  ;;  %8244 = vst [vmem:[#allocation76_spill] sm:$0xff] %v4932_v2  ;;  %566 = vmatpush2.msra.mxu1 %v565_v20  ;;  %v571_v53 = vand.u32 4294901760, %v570_v44  ;;  %265 = vmatpush2.msra.mxu0 %v4932_v2  ;;  %v4954_v44 = vsub.f32 %v4797_v24, %v4831_v56  ;;  %v4962_v41 = vand.u32 4294901760, %v4934_v33  ;;  %v4968_v20 = vld [vmem:[#allocation2 + $0x280] sm:$0xff]  ;;  %v4975_v26 = vand.u32 4294901760, %v4945_v19 }
  0x4a   :  { %8246 = vst [vmem:[#allocation78_spill] sm:$0xff] %v4943_v39  ;;  %v588_v30 = vsub.f32 %v4917_v1, %v7685_v13  ;;  %267 = vmatprep.subr.mxu0 %v4943_v39  ;;  %v4966_v47 = vsub.f32 %v4822_v37, %v4850_v43  ;;  %v583_v24 = vand.u32 4294901760, %v582_v46  ;;  %v4977_v1 = vld [vmem:[#allocation2 + $0x268] sm:$0xff]  ;;  %v8253_v21 = vand.u32 4294901760, %v4940_v7 }
  0x4b   :  { %8248 = vst [vmem:[#allocation79_spill] sm:$0xff] %v4954_v44  ;;  %572 = vmatprep.subr.mxu1 %v571_v53  ;;  %8249 = vst [vmem:[#allocation80_spill] sm:$0xff] %v4962_v41  ;;  %v8251_v53 = vand.u32 4294901760, %v4929_v51  ;;  %269 = vmatpush2.msra.mxu0 %v4962_v41  ;;  %v4986_v46 = vsub.f32 %v4833_v29, %v4863_v61  ;;  %v8255_v43 = vand.u32 4294901760, %v4954_v44 }
  0x4c   :  { %8250 = vst [vmem:[#allocation81_spill] sm:$0xff] %v4966_v47  ;;  %578 = vmatpush2.msra.mxu1 %v577_v36  ;;  %8252 = vst [vmem:[#allocation82_spill] sm:$0xff] %v4975_v26  ;;  %v589_v28 = vand.u32 4294901760, %v588_v30  ;;  %v600_v37 = vsub.f32 %v4940_v7, %v8253_v21  ;;  %271 = vmatprep.subr.mxu0 %v4975_v26  ;;  %v4995_v21 = vand.u32 4294901760, %v4968_v20  ;;  %v5001_v7 = vld [vmem:[#allocation2 + $0x248] sm:$0xff] }
  0x4d   :  { %v594_v56 = vsub.f32 %v4929_v51, %v8251_v53  ;;  %8254 = vst [vmem:[#allocation83_spill] sm:$0xff] %v4986_v46  ;;  %v4988_v53 = vld [vmem:[#allocation2 + $0x260] sm:$0xff]  ;;  %584 = vmatprep.subr.mxu1 %v583_v24  ;;  %v606_v30 = vsub.f32 %v4954_v44, %v8255_v43  ;;  %v4999_v36 = vsub.f32 %v4856_v50, %v4883_v27  ;;  %v8258_v24 = vand.u32 4294901760, %v4966_v47 }
  0x4e   :  { %8256 = vst [vmem:[#allocation84_spill] sm:$0xff] %v4995_v21  ;;  %590 = vmatpush2.msra.mxu1 %v589_v28  ;;  %v601_v29 = vand.u32 4294901760, %v600_v37  ;;  %v5008_v43 = vand.u32 4294901760, %v4977_v1  ;;  %v5010_v44 = vld [vmem:[#allocation2 + $0x240] sm:$0xff]  ;;  %273 = vmatpush2.msra.mxu0 %v4995_v21  ;;  %v5016_v28 = vsub.f32 %v4865_v34, %v4896_v14  ;;  %v5019_v37 = vand.u32 4294901760, %v4988_v53 }
  0x4f   :  { %v595_v13 = vand.u32 4294901760, %v594_v56  ;;  %8257 = vst [vmem:[#allocation85_spill] sm:$0xff] %v4999_v36  ;;  %v612_v56 = vsub.f32 %v4966_v47, %v8258_v24  ;;  %v607_v51 = vand.u32 4294901760, %v606_v30  ;;  %v7708_v50 = vand.u32 4294901760, %v4999_v36  ;;  %v5021_v24 = vld [vmem:[#allocation2 + $0x228] sm:$0xff] }
  0x50   :  { %8259 = vst [vmem:[#allocation86_spill] sm:$0xff] %v5016_v28  ;;  %v8260_v27 = vand.u32 4294901760, %v4986_v46  ;;  %275 = vmatprep.subr.mxu0 %v5008_v43  ;;  %v5029_v30 = vsub.f32 %v4876_v62, %v4907_v49  ;;  %v5032_v34 = vand.u32 4294901760, %v5001_v7  ;;  %v5046_v62 = vld [vmem:[#allocation2 + $0x220] sm:$0xff] }
  0x51   :  { %596 = vmatprep.subr.mxu1 %v595_v13  ;;  %v613_v61 = vand.u32 4294901760, %v612_v56  ;;  %v624_v14 = vsub.f32 %v4999_v36, %v7708_v50  ;;  %277 = vmatpush2.msra.mxu0 %v5019_v37  ;;  %v5044_v56 = vand.u32 4294901760, %v5010_v44  ;;  %v5052_v50 = vsub.f32 %v4898_v38, %v4932_v2 }
  0x52   :  { %602 = vmatpush2.msra.mxu1 %v601_v29  ;;  %v618_v13 = vsub.f32 %v4986_v46, %v8260_v27  ;;  %8261 = vst [vmem:[#allocation87_spill] sm:$0xff] %v5029_v30  ;;  %8262 = vst [vmem:[#allocation88_spill] sm:$0xff] %v5032_v34  ;;  %v5041_v27 = vsub.f32 %v4889_v12, %v4920_v32  ;;  %279 = vmatprep.subr.mxu0 %v5032_v34  ;;  %v5055_v29 = vand.u32 4294901760, %v5021_v24  ;;  %v5057_v12 = vld [vmem:[#allocation2 + $0x208] sm:$0xff] }
  0x53   :  { %608 = vmatprep.subr.mxu1 %v607_v51  ;;  %8264 = vst [vmem:[#allocation90_spill] sm:$0xff] %v5044_v56  ;;  %v7719_v51 = vand.u32 4294901760, %v5029_v30  ;;  %8265 = vst [vmem:[#allocation91_spill] sm:$0xff] %v5052_v50  ;;  %v625_v32 = vand.u32 4294901760, %v624_v14  ;;  %v8267_v36 = vand.u32 4294901760, %v5016_v28  ;;  %281 = vmatpush2.msra.mxu0 %v5044_v56  ;;  %v5074_v14 = vand.u32 4294901760, %v5046_v62 }
  0x54   :  { %8263 = vst [vmem:[#allocation89_spill] sm:$0xff] %v5041_v27  ;;  %614 = vmatpush2.msra.mxu1 %v613_v61  ;;  %v619_v49 = vand.u32 4294901760, %v618_v13  ;;  %8266 = vst [vmem:[#allocation92_spill] sm:$0xff] %v5055_v29  ;;  %v5066_v13 = vsub.f32 %v4909_v52, %v4943_v39  ;;  %283 = vmatprep.subr.mxu0 %v5055_v29  ;;  %v5080_v61 = vld [vmem:[#allocation2 + $0x200] sm:$0xff]  ;;  %v5087_v2 = vand.u32 4294901760, %v5057_v12 }
  0x55   :  { %v630_v46 = vsub.f32 %v5016_v28, %v8267_v36  ;;  %v636_v38 = vsub.f32 %v5029_v30, %v7719_v51  ;;  %v5078_v36 = vsub.f32 %v4934_v33, %v4962_v41  ;;  %v29_v30 = vld [vmem:[%s7551_s0 + $0x8] sm:$0xff]  ;;  %v8270_v33 = vand.u32 4294901760, %v5052_v50  ;;  %285 = vmatpush2.msra.mxu0 %v5074_v14 }
  0x56   :  { %8268 = vst [vmem:[#allocation93_spill] sm:$0xff] %v5066_v13  ;;  %620 = vmatprep.subr.mxu1 %v619_v49  ;;  %v8269_v49 = vand.u32 4294901760, %v5041_v27  ;;  %287 = vmatprep.subr.mxu0 %v5087_v2 }
  0x57   :  { %626 = vmatpush2.msra.mxu1 %v625_v32  ;;  %v631_v52 = vand.u32 4294901760, %v630_v46  ;;  %v637_v28 = vand.u32 4294901760, %v636_v38  ;;  %v648_v41 = vsub.f32 %v5052_v50, %v8270_v33  ;;  %v5099_v46 = vsub.f32 %v4945_v19, %v4975_v26 }
  0x58   :  { %v642_v39 = vsub.f32 %v5041_v27, %v8269_v49  ;;  %v28_v49 = vld [vmem:[%s7551_s0] sm:$0xff]  ;;  %v8272_v38 = vand.u32 4294901760, %v5066_v13  ;;  %v5109_v33 = vand.u32 4294901760, %v5080_v61  ;;  %v5113_v32 = vsub.f32 %v4968_v20, %v4995_v21 }
  0x59   :  { %8271 = vst [vmem:[#allocation94_spill] sm:$0xff] %v5099_v46  ;;  %632 = vmatprep.subr.mxu1 %v631_v52  ;;  %v649_v19 = vand.u32 4294901760, %v648_v41  ;;  %v8273_v26 = vand.u32 4294901760, %v5078_v36  ;;  %v5119_v50 = vand.u32 4294901760, %v29_v30  ;;  %v5125_v20 = vsub.f32 %v4977_v1, %v5008_v43 }
  0x5a   :  { %v643_v51 = vand.u32 4294901760, %v642_v39  ;;  %v654_v27 = vsub.f32 %v5066_v13, %v8272_v38  ;;  %638 = vmatpush2.msra.mxu1 %v637_v28  ;;  %v7737_v39 = vand.u32 4294901760, %v5099_v46  ;;  %289 = vmatpush2.msra.mxu0 %v5109_v33  ;;  %v7736_v13 = vand.u32 4294901760, %v5113_v32 }
  0x5b   :  { %v660_v52 = vsub.f32 %v5078_v36, %v8273_v26  ;;  %8274 = vst [vmem:[#allocation95_spill] sm:$0xff] %v5119_v50  ;;  %v5127_v28 = vand.u32 4294901760, %v28_v49  ;;  %v5133_v21 = vsub.f32 %v29_v30, %v5119_v50  ;;  %750 = vmatprep.subr.mxu0 %v4345_v18  ;;  %v5149_v30 = vsub.f32 %v5001_v7, %v5032_v34 }
  0x5c   :  { %644 = vmatprep.subr.mxu1 %v643_v51  ;;  %v655_v38 = vand.u32 4294901760, %v654_v27  ;;  %v666_v26 = vsub.f32 %v5099_v46, %v7737_v39  ;;  %v5138_v27 = vsub.f32 %v4988_v53, %v5019_v37  ;;  %v672_v1 = vsub.f32 %v5113_v32, %v7736_v13  ;;  %724 = vmatprep.mubr.f32.mxu1 %v5119_v50 }
  0x5d   :  { %8275 = vst [vmem:[#allocation96_spill] sm:$0xff] %v5127_v28  ;;  %650 = vmatpush2.msra.mxu1 %v649_v19  ;;  %v661_v41 = vand.u32 4294901760, %v660_v52  ;;  %8276 = vst [vmem:[#allocation97_spill] sm:$0xff] %v5133_v21  ;;  %v7740_v51 = vand.u32 4294901760, %v5125_v20  ;;  %v5145_v19 = vsub.f32 %v28_v49, %v5127_v28  ;;  %v5153_v53 = vand.u32 4294901760, %v5133_v21 }
  0x5e   :  { %656 = vmatprep.subr.mxu1 %v655_v38  ;;  %v667_v52 = vand.u32 4294901760, %v666_v26  ;;  %v7745_v38 = vand.u32 4294901760, %v5138_v27  ;;  %v5158_v13 = vsub.f32 %v5010_v44, %v5044_v56  ;;  %v673_v39 = vand.u32 4294901760, %v672_v1 }
  0x5f   :  { %8277 = vst [vmem:[#allocation98_spill] sm:$0xff] %v5145_v19  ;;  %662 = vmatpush2.msra.mxu1 %v661_v41  ;;  %8278 = vst [vmem:[#allocation99_spill] sm:$0xff] %v5153_v53  ;;  %v678_v49 = vsub.f32 %v5125_v20, %v7740_v51  ;;  %v5164_v7 = vand.u32 4294901760, %v5145_v19  ;;  %v7752_v41 = vand.u32 4294901760, %v5149_v30  ;;  %v293_v26 = vsub.f32 %v5133_v21, %v5153_v53 }
  0x60   :  { %668 = vmatprep.subr.mxu1 %v667_v52  ;;  %v684_v50 = vsub.f32 %v5138_v27, %v7745_v38  ;;  %v5175_v1 = vsub.f32 %v5021_v24, %v5055_v29  ;;  %v5184_v53 = vsub.f32 %v5046_v62, %v5074_v14  ;;  %v8281_v34 = vand.u32 4294901760, %v5158_v13 }
  0x61   :  { %8279 = vst [vmem:[#allocation100_spill] sm:$0xff] %v5164_v7  ;;  %674 = vmatpush2.msra.mxu1 %v673_v39  ;;  %v679_v51 = vand.u32 4294901760, %v678_v49  ;;  %v299_v56 = vsub.f32 %v5145_v19, %v5164_v7  ;;  %v690_v52 = vsub.f32 %v5149_v30, %v7752_v41  ;;  %v5186_v38 = vand.u32 4294901760, %v293_v26 }
  0x62   :  { %v685_v44 = vand.u32 4294901760, %v684_v50  ;;  %v696_v24 = vsub.f32 %v5158_v13, %v8281_v34  ;;  %v7756_v39 = vand.u32 4294901760, %v5175_v1  ;;  %v7755_v29 = vand.u32 4294901760, %v5184_v53 }
  0x63   :  { %8280 = vst [vmem:[#allocation101_spill] sm:$0xff] %v5186_v38  ;;  %680 = vmatprep.subr.mxu1 %v679_v51  ;;  %v5192_v49 = vand.u32 4294901760, %v299_v56  ;;  %v691_v7 = vand.u32 4294901760, %v690_v52  ;;  %v5197_v41 = vsub.f32 %v5057_v12, %v5087_v2  ;;  %295 = vmatprep.mubr.f32.mxu0 %v5186_v38  ;;  %v5205_v62 = vsub.f32 %v5080_v61, %v5109_v33  ;;  %v8297_v38 = vld [vmem:[#allocation15_spill] sm:$0xff] }
  0x64   :  { %686 = vmatpush2.msra.mxu1 %v685_v44  ;;  %v697_v50 = vand.u32 4294901760, %v696_v24  ;;  %v702_v34 = vsub.f32 %v5175_v1, %v7756_v39  ;;  %v708_v56 = vsub.f32 %v5184_v53, %v7755_v29  ;;  %v8294_v29 = vld [vmem:[#allocation39_spill] sm:$0xff]  ;;  %v8295_v39 = vld [vmem:[#allocation14_spill] sm:$0xff] }
  0x65   :  { %8282 = vst [vmem:[#allocation102_spill] sm:$0xff] %v5192_v49  ;;  %301 = vmatmul.mubr.f32.vlgmr.msra.gmra.mxu0 %v5192_v49  ;;  %692 = vmatprep.subr.mxu1 %v691_v7  ;;  %v7754_v12 = vand.u32 4294901760, %v5197_v41  ;;  %v7753_v26 = vand.u32 4294901760, %v5205_v62  ;;  %v8296_v49 = vld [vmem:[#allocation41_spill] sm:$0xff] }
  0x66   :  { %753 = vmatpush1.msra.mxu0 %v4358_v23  ;;  %698 = vmatpush2.msra.mxu1 %v697_v50  ;;  %v703_v51 = vand.u32 4294901760, %v702_v34  ;;  %v709_v44 = vand.u32 4294901760, %v708_v56  ;;  %v8283_v50 = vld [vmem:[#allocation8_spill] sm:$0xff]  ;;  %v8284_v34 = vld [vmem:[#allocation29_spill] sm:$0xff] }
  0x67   :  { %756 = vmatprep.subr.mxu0 %v4364_v25  ;;  %v714_v61 = vsub.f32 %v5197_v41, %v7754_v12  ;;  %v720_v7 = vsub.f32 %v5205_v62, %v7753_v26  ;;  %v8285_v56 = vld [vmem:[#allocation9_spill] sm:$0xff] }
  0x68   :  { %759 = vmatpush1.msra.mxu0 %v4378_v31  ;;  %704 = vmatprep.subr.mxu1 %v703_v51  ;;  %v8286_v51 = vld [vmem:[#allocation31_spill] sm:$0xff]  ;;  %v8292_v26 = vld [vmem:[#allocation37_spill] sm:$0xff] }
  0x69   :  { %762 = vmatprep.subr.mxu0 %v4387_v35  ;;  %710 = vmatpush2.msra.mxu1 %v709_v44  ;;  %v715_v52 = vand.u32 4294901760, %v714_v61  ;;  %v721_v24 = vand.u32 4294901760, %v720_v7  ;;  %v8287_v44 = vld [vmem:[#allocation10_spill] sm:$0xff]  ;;  %v8288_v61 = vld [vmem:[#allocation33_spill] sm:$0xff]  ;;  %v8289_v7 = vld [vmem:[#allocation11_spill] sm:$0xff] }
  0x6a   :  { %765 = vmatpush1.msra.mxu0 %v4400_v40  ;;  %v8293_v12 = vld [vmem:[#allocation13_spill] sm:$0xff] }
  0x6b   :  { %716 = vmatprep.subr.mxu1 %v715_v52  ;;  %768 = vmatprep.subr.mxu0 %v4414_v45  ;;  %v8290_v52 = vld [vmem:[#allocation35_spill] sm:$0xff] }
  0x6c   :  { %722 = vmatpush2.msra.mxu1 %v721_v24  ;;  %771 = vmatpush1.msra.mxu0 %v4440_v59  ;;  %v8291_v24 = vld [vmem:[#allocation12_spill] sm:$0xff] }
  0x6d   :  { %726 = vmatmul.mubr.f32.vlgmr.msra.gmra.mxu1 %v5127_v28  ;;  %774 = vmatprep.subr.mxu0 %v4452_v0  ;;  %v8298_v28 = vld [vmem:[#allocation43_spill] sm:$0xff] }
  0x6e   :  { %972 = vmatprep.subr.mxu1 %v4325_v3  ;;  %777 = vmatpush1.msra.mxu0 %v4463_v8 }
  0x6f   :  { %974 = vmatpush1.msra.mxu1 %v4327_v4  ;;  %780 = vmatprep.subr.mxu0 %v4474_v42 }
  0x70   :  { %976 = vmatprep.subr.mxu1 %v4329_v5  ;;  %783 = vmatpush1.msra.mxu0 %v4486_v48 }
  0x71   :  { %978 = vmatpush1.msra.mxu1 %v4331_v9  ;;  %786 = vmatprep.subr.mxu0 %v4500_v57 }
  0x72   :  { %980 = vmatprep.subr.mxu1 %v4333_v10  ;;  %789 = vmatpush1.msra.mxu0 %v4512_v6 }
  0x73   :  { %982 = vmatpush1.msra.mxu1 %v4335_v11  ;;  %792 = vmatprep.subr.mxu0 %v4533_v54 }
  0x74   :  { %984 = vmatprep.subr.mxu1 %v4338_v15  ;;  %795 = vmatpush1.msra.mxu0 %v4546_v63 }
  0x75   :  { %986 = vmatpush1.msra.mxu1 %v4340_v16  ;;  %798 = vmatprep.subr.mxu0 %v4564_v55  ;;  %v8361_v55 = vld [vmem:[#allocation60_spill] sm:$0xff]  ;;  %v8363_v16 = vld [vmem:[#allocation62_spill] sm:$0xff] }
  0x76   :  { %988 = vmatprep.subr.mxu1 %v4342_v17  ;;  %801 = vmatpush1.msra.mxu0 %v4577_v58 }
  0x77   :  { %990 = vmatpush1.msra.mxu1 %v4355_v22  ;;  %804 = vmatprep.subr.mxu0 %v4589_v60  ;;  %v8340_v60 = vld [vmem:[#allocation44_spill] sm:$0xff] }
  0x78   :  { %992 = vmatprep.subr.mxu1 %v8283_v50  ;;  %807 = vmatpush1.msra.mxu0 %v8284_v34  ;;  %v8337_v50 = vld [vmem:[#allocation42_spill] sm:$0xff] }
  0x79   :  { %994 = vmatpush1.msra.mxu1 %v8285_v56  ;;  %810 = vmatprep.subr.mxu0 %v8286_v51  ;;  %v8326_v51 = vld [vmem:[#allocation69_spill] sm:$0xff] }
  0x7a   :  { %996 = vmatprep.subr.mxu1 %v8287_v44  ;;  %813 = vmatpush1.msra.mxu0 %v8288_v61  ;;  %v8299_v61 = vld [vmem:[#allocation16_spill] sm:$0xff] }
  0x7b   :  { %998 = vmatpush1.msra.mxu1 %v8289_v7  ;;  %816 = vmatprep.subr.mxu0 %v8290_v52  ;;  %v8300_v7 = vld [vmem:[#allocation45_spill] sm:$0xff]  ;;  %v8323_v44 = vld [vmem:[#allocation32_spill] sm:$0xff] }
  0x7c   :  { %1000 = vmatprep.subr.mxu1 %v8291_v24  ;;  %819 = vmatpush1.msra.mxu0 %v8292_v26  ;;  %v8301_v52 = vld [vmem:[#allocation17_spill] sm:$0xff]  ;;  %v8302_v24 = vld [vmem:[#allocation47_spill] sm:$0xff]  ;;  %v8303_v26 = vld [vmem:[#allocation18_spill] sm:$0xff] }
  0x7d   :  { %1002 = vmatpush1.msra.mxu1 %v8293_v12  ;;  %822 = vmatprep.subr.mxu0 %v8294_v29  ;;  %v8304_v12 = vld [vmem:[#allocation49_spill] sm:$0xff]  ;;  %v8305_v29 = vld [vmem:[#allocation19_spill] sm:$0xff] }
  0x7e   :  { %1004 = vmatprep.subr.mxu1 %v8295_v39  ;;  %825 = vmatpush1.msra.mxu0 %v8296_v49  ;;  %v8306_v39 = vld [vmem:[#allocation51_spill] sm:$0xff]  ;;  %v8307_v49 = vld [vmem:[#allocation20_spill] sm:$0xff] }
  0x7f   :  { %1006 = vmatpush1.msra.mxu1 %v8297_v38  ;;  %828 = vmatprep.subr.mxu0 %v8298_v28  ;;  %v8308_v38 = vld [vmem:[#allocation53_spill] sm:$0xff] }
  0x80   :  { %1008 = vmatprep.subr.mxu1 %v8299_v61  ;;  %831 = vmatpush1.msra.mxu0 %v8300_v7  ;;  %v8309_v28 = vld [vmem:[#allocation21_spill] sm:$0xff]  ;;  %v8310_v61 = vld [vmem:[#allocation55_spill] sm:$0xff] }
  0x81   :  { %1010 = vmatpush1.msra.mxu1 %v8301_v52  ;;  %834 = vmatprep.subr.mxu0 %v8302_v24  ;;  %v31_v24 = vld [vmem:[%s7551_s0 + $0x18] sm:$0xff]  ;;  %v8311_v52 = vld [vmem:[#allocation22_spill] sm:$0xff]  ;;  %v8319_v7 = vld [vmem:[#allocation63_spill] sm:$0xff] }
  0x82   :  { %1012 = vmatprep.subr.mxu1 %v8303_v26  ;;  %837 = vmatpush1.msra.mxu0 %v8304_v12  ;;  %v8312_v26 = vld [vmem:[#allocation57_spill] sm:$0xff]  ;;  %v8313_v12 = vld [vmem:[#allocation24_spill] sm:$0xff] }
  0x83   :  { %1014 = vmatpush1.msra.mxu1 %v8305_v29  ;;  %840 = vmatprep.subr.mxu0 %v8306_v39  ;;  %v8314_v29 = vld [vmem:[#allocation59_spill] sm:$0xff]  ;;  %v8318_v39 = vld [vmem:[#allocation28_spill] sm:$0xff] }
  0x84   :  { %1016 = vmatprep.subr.mxu1 %v8307_v49  ;;  %843 = vmatpush1.msra.mxu0 %v8308_v38  ;;  %v30_v38 = vld [vmem:[%s7551_s0 + $0x10] sm:$0xff]  ;;  %v8315_v49 = vld [vmem:[#allocation26_spill] sm:$0xff] }
  0x85   :  { %1018 = vmatpush1.msra.mxu1 %v8309_v28  ;;  %846 = vmatprep.subr.mxu0 %v8310_v61  ;;  %v8316_v28 = vld [vmem:[#allocation61_spill] sm:$0xff]  ;;  %v5288_v61 = vand.u32 4294901760, %v31_v24 }
  0x86   :  { %1020 = vmatprep.subr.mxu1 %v8311_v52  ;;  %849 = vmatpush2.msra.mxu0 %v8312_v26  ;;  %v8320_v52 = vld [vmem:[#allocation30_spill] sm:$0xff]  ;;  %v8321_v26 = vld [vmem:[#allocation65_spill] sm:$0xff] }
  0x87   :  { %1022 = vmatpush1.msra.mxu1 %v8313_v12  ;;  %852 = vmatprep.subr.mxu0 %v8314_v29  ;;  %8317 = vst [vmem:[#allocation103_spill] sm:$0xff] %v5288_v61  ;;  %v5294_v12 = vand.u32 4294901760, %v30_v38  ;;  %v33_v29 = vld [vmem:[%s7551_s0 + $0x28] sm:$0xff] }
  0x88   :  { %1024 = vmatprep.subr.mxu1 %v8315_v49  ;;  %855 = vmatpush2.msra.mxu0 %v8316_v28  ;;  %v8324_v49 = vld [vmem:[#allocation67_spill] sm:$0xff]  ;;  %v8325_v28 = vld [vmem:[#allocation34_spill] sm:$0xff]  ;;  %v5311_v56 = vand.u32 4294901760, %v33_v29 }
  0x89   :  { %1026 = vmatpush1.msra.mxu1 %v8318_v39  ;;  %858 = vmatprep.subr.mxu0 %v8319_v7  ;;  %8322 = vst [vmem:[#allocation104_spill] sm:$0xff] %v5294_v12  ;;  %v5304_v7 = vsub.f32 %v31_v24, %v5288_v61  ;;  %v8329_v39 = vld [vmem:[#allocation71_spill] sm:$0xff] }
  0x8a   :  { %1028 = vmatprep.subr.mxu1 %v8320_v52  ;;  %861 = vmatpush2.msra.mxu0 %v8321_v26  ;;  %v32_v26 = vld [vmem:[%s7551_s0 + $0x20] sm:$0xff]  ;;  %v8328_v52 = vld [vmem:[#allocation36_spill] sm:$0xff]  ;;  %8330 = vst [vmem:[#allocation106_spill] sm:$0xff] %v5311_v56  ;;  %v8335_v24 = vld [vmem:[#allocation75_spill] sm:$0xff] }
  0x8b   :  { %1030 = vmatpush1.msra.mxu1 %v8323_v44  ;;  %864 = vmatprep.subr.mxu0 %v8324_v49  ;;  %8327 = vst [vmem:[#allocation105_spill] sm:$0xff] %v5304_v7  ;;  %v8331_v44 = vld [vmem:[#allocation38_spill] sm:$0xff]  ;;  %v8332_v49 = vld [vmem:[#allocation73_spill] sm:$0xff]  ;;  %v5320_v34 = vand.u32 4294901760, %v32_v26 }
  0x8c   :  { %1032 = vmatprep.subr.mxu1 %v8325_v28  ;;  %867 = vmatpush2.msra.mxu0 %v8326_v51  ;;  %v5316_v28 = vsub.f32 %v30_v38, %v5294_v12  ;;  %v8334_v51 = vld [vmem:[#allocation40_spill] sm:$0xff]  ;;  %v5330_v38 = vsub.f32 %v33_v29, %v5311_v56 }
  0x8d   :  { %1034 = vmatpush1.msra.mxu1 %v8328_v52  ;;  %870 = vmatprep.subr.mxu0 %v8329_v39  ;;  %8336 = vst [vmem:[#allocation108_spill] sm:$0xff] %v5320_v34  ;;  %v8338_v52 = vld [vmem:[#allocation77_spill] sm:$0xff]  ;;  %v5325_v39 = vand.u32 4294901760, %v5304_v7 }
  0x8e   :  { %1036 = vmatprep.subr.mxu1 %v8331_v44  ;;  %873 = vmatpush2.msra.mxu0 %v8332_v49  ;;  %8333 = vst [vmem:[#allocation107_spill] sm:$0xff] %v5316_v28  ;;  %v8341_v44 = vld [vmem:[#allocation79_spill] sm:$0xff]  ;;  %8342 = vst [vmem:[#allocation110_spill] sm:$0xff] %v5330_v38  ;;  %v8343_v49 = vld [vmem:[#allocation46_spill] sm:$0xff]  ;;  %v5349_v22 = vand.u32 4294901760, %v5330_v38 }
  0x8f   :  { %1038 = vmatpush2.msra.mxu1 %v8334_v51  ;;  %876 = vmatprep.subr.mxu0 %v8335_v24  ;;  %8339 = vst [vmem:[#allocation109_spill] sm:$0xff] %v5325_v39  ;;  %v5335_v24 = vand.u32 4294901760, %v5316_v28  ;;  %v5340_v51 = vsub.f32 %v32_v26, %v5320_v34  ;;  %v309_v29 = vsub.f32 %v5304_v7, %v5325_v39 }
  0x90   :  { %1040 = vmatprep.subr.mxu1 %v8337_v50  ;;  %879 = vmatpush2.msra.mxu0 %v8338_v52  ;;  %v8345_v50 = vld [vmem:[#allocation48_spill] sm:$0xff]  ;;  %v8346_v52 = vld [vmem:[#allocation83_spill] sm:$0xff]  ;;  %8352 = vst [vmem:[#allocation113_spill] sm:$0xff] %v5349_v22 }
  0x91   :  { %1042 = vmatpush2.msra.mxu1 %v8340_v60  ;;  %882 = vmatprep.subr.mxu0 %v8341_v44  ;;  %8344 = vst [vmem:[#allocation111_spill] sm:$0xff] %v5335_v24  ;;  %8347 = vst [vmem:[#allocation112_spill] sm:$0xff] %v5340_v51  ;;  %v8348_v60 = vld [vmem:[#allocation50_spill] sm:$0xff]  ;;  %v8349_v44 = vld [vmem:[#allocation85_spill] sm:$0xff]  ;;  %v315_v26 = vsub.f32 %v5316_v28, %v5335_v24  ;;  %v5358_v58 = vand.u32 4294901760, %v5340_v51  ;;  %v5362_v17 = vand.u32 4294901760, %v309_v29 }
  0x92   :  { %1044 = vmatprep.subr.mxu1 %v8343_v49  ;;  %885 = vmatpush2.msra.mxu0 %v4966_v47  ;;  %v8350_v49 = vld [vmem:[#allocation52_spill] sm:$0xff]  ;;  %v8351_v47 = vld [vmem:[#allocation86_spill] sm:$0xff] }
  0x93   :  { %1046 = vmatpush2.msra.mxu1 %v8345_v50  ;;  %888 = vmatprep.subr.mxu0 %v8346_v52  ;;  %v8353_v50 = vld [vmem:[#allocation54_spill] sm:$0xff]  ;;  %v8354_v52 = vld [vmem:[#allocation87_spill] sm:$0xff]  ;;  %8357 = vst [vmem:[#allocation114_spill] sm:$0xff] %v5358_v58  ;;  %v331_v29 = vsub.f32 %v5340_v51, %v5358_v58 }
  0x94   :  { %1048 = vmatprep.subr.mxu1 %v8348_v60  ;;  %891 = vmatpush2.msra.mxu0 %v8349_v44  ;;  %v8355_v60 = vld [vmem:[#allocation56_spill] sm:$0xff]  ;;  %v8356_v44 = vld [vmem:[#allocation89_spill] sm:$0xff] }
  0x95   :  { %1050 = vmatpush2.msra.mxu1 %v8350_v49  ;;  %894 = vmatprep.subr.mxu0 %v8351_v47  ;;  %v8358_v49 = vld [vmem:[#allocation58_spill] sm:$0xff]  ;;  %v8359_v47 = vld [vmem:[#allocation91_spill] sm:$0xff] }
  0x96   :  { %1052 = vmatprep.subr.mxu1 %v8353_v50  ;;  %897 = vmatpush2.msra.mxu0 %v8354_v52  ;;  %8360 = vst [vmem:[#allocation58_spill] sm:$0xff] %v5362_v17  ;;  %v8362_v50 = vld [vmem:[#allocation93_spill] sm:$0xff]  ;;  %v325_v52 = vsub.f32 %v5330_v38, %v5349_v22 }
  0x97   :  { %1054 = vmatpush2.msra.mxu1 %v8355_v60  ;;  %900 = vmatprep.subr.mxu0 %v8356_v44  ;;  %v5370_v44 = vand.u32 4294901760, %v315_v26  ;;  %v8365_v60 = vld [vmem:[#allocation64_spill] sm:$0xff]  ;;  %v8369_v26 = vld [vmem:[#allocation70_spill] sm:$0xff] }
  0x98   :  { %1056 = vmatprep.subr.mxu1 %v8358_v49  ;;  %903 = vmatpush2.msra.mxu0 %v8359_v47  ;;  %v8366_v47 = vld [vmem:[#allocation66_spill] sm:$0xff] }
  0x99   :  { %1058 = vmatpush2.msra.mxu1 %v8361_v55  ;;  %906 = vmatprep.subr.mxu0 %v8362_v50  ;;  %8364 = vst [vmem:[#allocation60_spill] sm:$0xff] %v5370_v44  ;;  %v8367_v50 = vld [vmem:[#allocation68_spill] sm:$0xff] }
  0x9a   :  { %1060 = vmatprep.subr.mxu1 %v8363_v16  ;;  %909 = vmatpush2.msra.mxu0 %v5078_v36  ;;  %v5380_v16 = vand.u32 4294901760, %v325_v52  ;;  %v8373_v52 = vld [vmem:[#allocation76_spill] sm:$0xff] }
  0x9b   :  { %1062 = vmatpush2.msra.mxu1 %v8365_v60  ;;  %912 = vmatprep.subr.mxu0 %v5099_v46  ;;  %v5386_v46 = vand.u32 4294901760, %v331_v29  ;;  %v8371_v60 = vld [vmem:[#allocation72_spill] sm:$0xff]  ;;  %v8374_v29 = vld [vmem:[#allocation78_spill] sm:$0xff] }
  0x9c   :  { %1064 = vmatprep.subr.mxu1 %v8366_v47  ;;  %311 = vmatprep.mubr.f32.mxu0 %v5362_v17  ;;  %8368 = vst [vmem:[#allocation66_spill] sm:$0xff] %v5380_v16  ;;  %v8372_v17 = vld [vmem:[#allocation74_spill] sm:$0xff] }
  0x9d   :  { %915 = vmatpush2.msra.mxu0 %v5113_v32  ;;  %1066 = vmatpush2.msra.mxu1 %v8367_v50  ;;  %8370 = vst [vmem:[#allocation68_spill] sm:$0xff] %v5386_v46 }
  0x9e   :  { %317 = vmatmul.mubr.f32.gmra.mxu0 %v5370_v44  ;;  %918 = vmatprep.subr.mxu0 %v5125_v20  ;;  %v8375_v44 = vld [vmem:[#allocation80_spill] sm:$0xff] }
  0x9f   :  { %1068 = vmatprep.subr.mxu1 %v8369_v26  ;;  %921 = vmatpush2.msra.mxu0 %v5138_v27 }
  0xa0   :  { %1070 = vmatpush2.msra.mxu1 %v8371_v60  ;;  %924 = vmatprep.subr.mxu0 %v5149_v30 }
  0xa1   :  { %1072 = vmatprep.subr.mxu1 %v8372_v17  ;;  %327 = vmatprep.mubr.f32.mxu0 %v5380_v16  ;;  %v8376_v16 = vld [vmem:[#allocation82_spill] sm:$0xff] }
  0xa2   :  { %927 = vmatpush2.msra.mxu0 %v5158_v13  ;;  %1074 = vmatpush2.msra.mxu1 %v8373_v52 }
  0xa3   :  { %333 = vmatmul.mubr.f32.gmra.mxu0 %v5386_v46  ;;  %732 = vmatprep.mubr.f32.mxu1 %v5288_v61  ;;  %v8377_v46 = vld [vmem:[#allocation84_spill] sm:$0xff]  ;;  %v8379_v61 = vand.u32 4294901760, %v4358_v23  ;;  %v8385_v23 = vand.u32 4294901760, %v4387_v35 }
  0xa4   :  { %930 = vmatprep.subr.mxu0 %v5175_v1  ;;  %1076 = vmatprep.subr.mxu1 %v8374_v29  ;;  %v8390_v35 = vld [vmem:[#allocation100_spill] sm:$0xff] }
  0xa5   :  { %734 = vmatmul.mubr.f32.gmra.mxu1 %v5294_v12  ;;  %933 = vmatpush2.msra.mxu0 %v5184_v53  ;;  %v8378_v12 = vand.u32 4294901760, %v4345_v18  ;;  %v8384_v18 = vld [vmem:[#allocation92_spill] sm:$0xff] }
  0xa6   :  { %1078 = vmatpush2.msra.mxu1 %v8375_v44  ;;  %936 = vmatprep.subr.mxu0 %v5197_v41 }
  0xa7   :  { %1080 = vmatprep.subr.mxu1 %v8376_v16  ;;  %939 = vmatpush2.msra.mxu0 %v5205_v62 }
  0xa8   :  { %942 = vmatprep.mubr.f32.mxu0 %v5133_v21  ;;  %1082 = vmatpush2.msra.mxu1 %v8377_v46  ;;  %v8380_v21 = vand.u32 4294901760, %v4364_v25  ;;  %v8381_v46 = vld [vmem:[#allocation88_spill] sm:$0xff]  ;;  %v8386_v25 = vand.u32 4294901760, %v4400_v40  ;;  %v8391_v40 = vand.u32 4294901760, %v4452_v0  ;;  %v8399_v0 = vld [vmem:[#allocation5_spill] sm:$0xff] }
  0xa9   :  { %740 = vmatprep.mubr.f32.mxu1 %v5311_v56  ;;  %945 = vmatmul.mubr.f32.vlgmr.msra.gmra.mxu0 %v5145_v19  ;;  %v8382_v19 = vld [vmem:[#allocation90_spill] sm:$0xff]  ;;  %v8383_v56 = vand.u32 4294901760, %v4378_v31  ;;  %v8388_v31 = vld [vmem:[#allocation99_spill] sm:$0xff] }
  0xaa   :  { %1084 = vmatprep.subr.mxu1 %v5008_v43  ;;  %1139 = vmatprep.subr.mxu0 %v8378_v12  ;;  %v8389_v12 = vand.u32 4294901760, %v4440_v59  ;;  %v8394_v59 = vand.u32 4294901760, %v4486_v48 }
  0xab   :  { %742 = vmatmul.mubr.f32.gmra.mxu1 %v5320_v34  ;;  %1143 = vmatpush1.msra.mxu0 %v8379_v61 }
  0xac   :  { %1086 = vmatpush2.msra.mxu1 %v5019_v37  ;;  %1147 = vmatprep.subr.mxu0 %v8380_v21  ;;  %v8387_v21 = vand.u32 4294901760, %v4414_v45  ;;  %v8392_v45 = vand.u32 4294901760, %v4463_v8 }
  0xad   :  { %1088 = vmatprep.subr.mxu1 %v8381_v46  ;;  %952 = vmatprep.mubr.f32.mxu0 %v5304_v7  ;;  %v53_v7 = vld [vmem:[#allocation2 + $0x98] sm:$0xff] }
  0xae   :  { %1090 = vmatpush2.msra.mxu1 %v8382_v19  ;;  %1151 = vmatpush1.msra.mxu0 %v8383_v56  ;;  %v8393_v56 = vand.u32 4294901760, %v4474_v42  ;;  %v8402_v42 = vld [vmem:[#allocation6_spill] sm:$0xff] }
  0xaf   :  { %955 = vmatmul.mubr.f32.gmra.mxu0 %v5316_v28  ;;  %1092 = vmatprep.subr.mxu1 %v8384_v18 }
  0xb0   :  { %1155 = vmatprep.subr.mxu0 %v8385_v23  ;;  %1094 = vmatpush2.msra.mxu1 %v5074_v14  ;;  %v8411_v23 = vld [vmem:[#allocation9_spill] sm:$0xff] }
  0xb1   :  { %1159 = vmatpush1.msra.mxu0 %v8386_v25  ;;  %1096 = vmatprep.subr.mxu1 %v5087_v2  ;;  %v8412_v25 = vld [vmem:[#allocation31_spill] sm:$0xff] }
  0xb2   :  { %1163 = vmatprep.subr.mxu0 %v8387_v21  ;;  %962 = vmatprep.mubr.f32.mxu0 %v5330_v38  ;;  %v8413_v21 = vand.u32 4294901760, %v8412_v25  ;;  %v8436_v25 = vld [vmem:[#allocation47_spill] sm:$0xff] }
  0xb3   :  { %1098 = vmatpush2.msra.mxu1 %v5109_v33  ;;  %1102 = vmatprep.mubr.f32.mxu1 %v8388_v31  ;;  %v60_v31 = vld [vmem:[#allocation2 + $0xd0] sm:$0xff] }
  0xb4   :  { %1167 = vmatpush1.msra.mxu0 %v8389_v12  ;;  %1106 = vmatmul.mubr.f32.vlgmr.msra.gmra.mxu1 %v8390_v35  ;;  %v8414_v12 = vld [vmem:[#allocation10_spill] sm:$0xff] }
  0xb5   :  { %965 = vmatmul.mubr.f32.gmra.mxu0 %v5340_v51  ;;  %1171 = vmatprep.subr.mxu0 %v8391_v40  ;;  %v8415_v40 = vld [vmem:[#allocation33_spill] sm:$0xff] }
  0xb6   :  { %1418 = vmatprep.subr.mxu1 %v4325_v3  ;;  %1175 = vmatpush1.msra.mxu0 %v8392_v45  ;;  %v8395_v3 = vand.u32 4294901760, %v4500_v57  ;;  %v8416_v45 = vand.u32 4294901760, %v8415_v40  ;;  %v8439_v40 = vld [vmem:[#allocation49_spill] sm:$0xff] }
  0xb7   :  { %1420 = vmatpush1.msra.mxu1 %v4327_v4  ;;  %1179 = vmatprep.subr.mxu0 %v8393_v56  ;;  %v8396_v4 = vand.u32 4294901760, %v4512_v6  ;;  %v8408_v6 = vld [vmem:[#allocation8_spill] sm:$0xff]  ;;  %v8417_v56 = vld [vmem:[#allocation11_spill] sm:$0xff] }
  0xb8   :  { %1422 = vmatprep.subr.mxu1 %v4329_v5  ;;  %1114 = vmatprep.mubr.f32.mxu1 %v5325_v39  ;;  %v8397_v5 = vand.u32 4294901760, %v4533_v54  ;;  %v8405_v54 = vld [vmem:[#allocation7_spill] sm:$0xff] }
  0xb9   :  { %1183 = vmatpush1.msra.mxu0 %v8394_v59  ;;  %1424 = vmatpush1.msra.mxu1 %v4331_v9  ;;  %v8398_v9 = vand.u32 4294901760, %v4546_v63  ;;  %v8409_v63 = vld [vmem:[#allocation29_spill] sm:$0xff]  ;;  %v8418_v59 = vld [vmem:[#allocation35_spill] sm:$0xff] }
  0xba   :  { %1118 = vmatmul.mubr.f32.gmra.mxu1 %v5335_v24  ;;  %1187 = vmatprep.subr.mxu0 %v8395_v3  ;;  %v8410_v61 = vand.u32 4294901760, %v8409_v63  ;;  %v8419_v3 = vand.u32 4294901760, %v8418_v59  ;;  %v8433_v63 = vld [vmem:[#allocation45_spill] sm:$0xff]  ;;  %v8442_v59 = vld [vmem:[#allocation51_spill] sm:$0xff]  ;;  %v8549_v24 = vld [vmem:[#allocation96_spill] sm:$0xff] }
  0xbb   :  { %1426 = vmatprep.subr.mxu1 %v4333_v10  ;;  %1191 = vmatpush1.msra.mxu0 %v8396_v4  ;;  %v8400_v10 = vld [vmem:[#allocation23_spill] sm:$0xff]  ;;  %v8420_v4 = vld [vmem:[#allocation12_spill] sm:$0xff] }
  0xbc   :  { %1428 = vmatpush1.msra.mxu1 %v4335_v11  ;;  %1195 = vmatprep.subr.mxu0 %v8397_v5  ;;  %v8401_v8 = vand.u32 4294901760, %v8400_v10  ;;  %v8403_v11 = vld [vmem:[#allocation25_spill] sm:$0xff]  ;;  %v8424_v10 = vld [vmem:[#allocation39_spill] sm:$0xff] }
  0xbd   :  { %1430 = vmatprep.subr.mxu1 %v4338_v15  ;;  %1126 = vmatprep.mubr.f32.mxu1 %v5349_v22  ;;  %v8404_v48 = vand.u32 4294901760, %v8403_v11  ;;  %v8406_v15 = vld [vmem:[#allocation27_spill] sm:$0xff]  ;;  %v8421_v5 = vld [vmem:[#allocation37_spill] sm:$0xff]  ;;  %v8546_v22 = vld [vmem:[#allocation84_spill] sm:$0xff] }
  0xbe   :  { %1199 = vmatpush1.msra.mxu0 %v8398_v9  ;;  %1432 = vmatpush1.msra.mxu1 %v8399_v0  ;;  %v8407_v57 = vand.u32 4294901760, %v8406_v15  ;;  %v8422_v9 = vand.u32 4294901760, %v8421_v5  ;;  %v8423_v0 = vld [vmem:[#allocation13_spill] sm:$0xff]  ;;  %v8430_v15 = vld [vmem:[#allocation43_spill] sm:$0xff] }
  0xbf   :  { %1130 = vmatmul.mubr.f32.gmra.mxu1 %v5358_v58  ;;  %1203 = vmatprep.subr.mxu0 %v8401_v8  ;;  %v8425_v8 = vand.u32 4294901760, %v8424_v10  ;;  %v8427_v11 = vld [vmem:[#allocation41_spill] sm:$0xff]  ;;  %v8448_v10 = vld [vmem:[#allocation55_spill] sm:$0xff] }
  0xc0   :  { %1434 = vmatprep.subr.mxu1 %v8402_v42  ;;  %1207 = vmatpush1.msra.mxu0 %v8404_v48  ;;  %v8426_v42 = vld [vmem:[#allocation14_spill] sm:$0xff]  ;;  %v8428_v48 = vand.u32 4294901760, %v8427_v11  ;;  %v8445_v5 = vld [vmem:[#allocation53_spill] sm:$0xff]  ;;  %v64_v58 = vld [vmem:[#allocation2 + $0xf0] sm:$0xff] }
  0xc1   :  { %1436 = vmatpush1.msra.mxu1 %v8405_v54  ;;  %1211 = vmatprep.subr.mxu0 %v8407_v57  ;;  %v8429_v54 = vld [vmem:[#allocation15_spill] sm:$0xff]  ;;  %v8431_v57 = vand.u32 4294901760, %v8430_v15  ;;  %v8451_v11 = vld [vmem:[#allocation57_spill] sm:$0xff] }
  0xc2   :  { %1438 = vmatprep.subr.mxu1 %v8408_v6  ;;  %1215 = vmatpush1.msra.mxu0 %v8410_v61  ;;  %v8432_v6 = vld [vmem:[#allocation16_spill] sm:$0xff]  ;;  %v8434_v61 = vand.u32 4294901760, %v8433_v63  ;;  %v8454_v15 = vld [vmem:[#allocation59_spill] sm:$0xff]  ;;  %v8457_v63 = vld [vmem:[#allocation61_spill] sm:$0xff] }
  0xc3   :  { %1440 = vmatpush1.msra.mxu1 %v8411_v23  ;;  %1219 = vmatprep.subr.mxu0 %v8413_v21  ;;  %v8435_v23 = vld [vmem:[#allocation17_spill] sm:$0xff]  ;;  %v8437_v21 = vand.u32 4294901760, %v8436_v25  ;;  %v8460_v25 = vld [vmem:[#allocation63_spill] sm:$0xff] }
  0xc4   :  { %1442 = vmatprep.subr.mxu1 %v8414_v12  ;;  %1223 = vmatpush1.msra.mxu0 %v8416_v45  ;;  %v8438_v12 = vld [vmem:[#allocation18_spill] sm:$0xff]  ;;  %v8440_v45 = vand.u32 4294901760, %v8439_v40  ;;  %v8463_v40 = vld [vmem:[#allocation65_spill] sm:$0xff] }
  0xc5   :  { %1444 = vmatpush1.msra.mxu1 %v8417_v56  ;;  %1227 = vmatprep.subr.mxu0 %v8419_v3  ;;  %v8441_v56 = vld [vmem:[#allocation19_spill] sm:$0xff]  ;;  %v8443_v3 = vand.u32 4294901760, %v8442_v59 }
  0xc6   :  { %1446 = vmatprep.subr.mxu1 %v8420_v4  ;;  %1231 = vmatpush1.msra.mxu0 %v8422_v9  ;;  %v8444_v4 = vld [vmem:[#allocation20_spill] sm:$0xff]  ;;  %v8446_v9 = vand.u32 4294901760, %v8445_v5  ;;  %v8466_v59 = vld [vmem:[#allocation67_spill] sm:$0xff]  ;;  %v8469_v5 = vld [vmem:[#allocation69_spill] sm:$0xff] }
  0xc7   :  { %1448 = vmatpush1.msra.mxu1 %v8423_v0  ;;  %1235 = vmatprep.subr.mxu0 %v8425_v8  ;;  %v8447_v0 = vld [vmem:[#allocation21_spill] sm:$0xff]  ;;  %v8449_v8 = vand.u32 4294901760, %v8448_v10  ;;  %v8472_v10 = vld [vmem:[#allocation71_spill] sm:$0xff] }
  0xc8   :  { %1450 = vmatprep.subr.mxu1 %v8426_v42  ;;  %1239 = vmatpush1.msra.mxu0 %v8428_v48  ;;  %v8450_v42 = vld [vmem:[#allocation22_spill] sm:$0xff]  ;;  %v8452_v48 = vand.u32 4294901760, %v8451_v11  ;;  %v8475_v11 = vld [vmem:[#allocation73_spill] sm:$0xff] }
  0xc9   :  { %1452 = vmatpush1.msra.mxu1 %v8429_v54  ;;  %1243 = vmatprep.subr.mxu0 %v8431_v57  ;;  %v8453_v54 = vld [vmem:[#allocation24_spill] sm:$0xff]  ;;  %v8455_v57 = vand.u32 4294901760, %v8454_v15 }
  0xca   :  { %1454 = vmatprep.subr.mxu1 %v8432_v6  ;;  %1247 = vmatpush1.msra.mxu0 %v8434_v61  ;;  %v8456_v6 = vld [vmem:[#allocation26_spill] sm:$0xff]  ;;  %v8458_v61 = vand.u32 4294901760, %v8457_v63  ;;  %v8477_v15 = vld [vmem:[#allocation40_spill] sm:$0xff] }
  0xcb   :  { %1456 = vmatpush1.msra.mxu1 %v8435_v23  ;;  %1251 = vmatprep.subr.mxu0 %v8437_v21  ;;  %v8459_v23 = vld [vmem:[#allocation28_spill] sm:$0xff]  ;;  %v8461_v21 = vand.u32 4294901760, %v8460_v25  ;;  %v8480_v63 = vld [vmem:[#allocation42_spill] sm:$0xff]  ;;  %v96_v25 = vld [vmem:[#allocation2 + $0x1f0] sm:$0xff] }
  0xcc   :  { %1458 = vmatprep.subr.mxu1 %v8438_v12  ;;  %1255 = vmatpush1.msra.mxu0 %v8440_v45  ;;  %v8462_v12 = vld [vmem:[#allocation30_spill] sm:$0xff]  ;;  %v8464_v45 = vand.u32 4294901760, %v8463_v40 }
  0xcd   :  { %1460 = vmatpush1.msra.mxu1 %v8441_v56  ;;  %1259 = vmatprep.subr.mxu0 %v8443_v3  ;;  %v8465_v56 = vld [vmem:[#allocation32_spill] sm:$0xff]  ;;  %v8467_v3 = vand.u32 4294901760, %v8466_v59  ;;  %v8487_v59 = vld [vmem:[#allocation46_spill] sm:$0xff] }
  0xce   :  { %1462 = vmatprep.subr.mxu1 %v8444_v4  ;;  %1263 = vmatpush1.msra.mxu0 %v8446_v9  ;;  %v8468_v4 = vld [vmem:[#allocation34_spill] sm:$0xff]  ;;  %v8470_v9 = vand.u32 4294901760, %v8469_v5  ;;  %v8490_v5 = vld [vmem:[#allocation48_spill] sm:$0xff] }
  0xcf   :  { %1464 = vmatpush1.msra.mxu1 %v8447_v0  ;;  %1267 = vmatprep.subr.mxu0 %v8449_v8  ;;  %v8471_v0 = vld [vmem:[#allocation36_spill] sm:$0xff]  ;;  %v8473_v8 = vand.u32 4294901760, %v8472_v10  ;;  %v5561_v10 = vand.u32 4294901760, %v96_v25 }
  0xd0   :  { %1466 = vmatprep.subr.mxu1 %v8450_v42  ;;  %1271 = vmatpush2.msra.mxu0 %v8452_v48  ;;  %v8474_v42 = vld [vmem:[#allocation38_spill] sm:$0xff]  ;;  %v8476_v48 = vand.u32 4294901760, %v8475_v11  ;;  %v8495_v11 = vld [vmem:[#allocation85_spill] sm:$0xff] }
  0xd1   :  { %1468 = vmatpush1.msra.mxu1 %v8453_v54  ;;  %1275 = vmatprep.subr.mxu0 %v8455_v57  ;;  %v97_v54 = vld [vmem:[#allocation2 + $0x1f8] sm:$0xff]  ;;  %v8478_v57 = vld [vmem:[#allocation75_spill] sm:$0xff]  ;;  %8493 = vst [vmem:[#allocation72_spill] sm:$0xff] %v5561_v10 }
  0xd2   :  { %1470 = vmatprep.subr.mxu1 %v8456_v6  ;;  %1279 = vmatpush2.msra.mxu0 %v8458_v61  ;;  %v8479_v6 = vand.u32 4294901760, %v8478_v57  ;;  %v8481_v61 = vld [vmem:[#allocation77_spill] sm:$0xff]  ;;  %v8498_v57 = vld [vmem:[#allocation52_spill] sm:$0xff] }
  0xd3   :  { %1472 = vmatpush1.msra.mxu1 %v8459_v23  ;;  %1283 = vmatprep.subr.mxu0 %v8461_v21  ;;  %v8482_v23 = vand.u32 4294901760, %v8481_v61  ;;  %v8483_v21 = vld [vmem:[#allocation44_spill] sm:$0xff] }
  0xd4   :  { %1474 = vmatprep.subr.mxu1 %v8462_v12  ;;  %1287 = vmatpush2.msra.mxu0 %v8464_v45  ;;  %v8484_v12 = vld [vmem:[#allocation79_spill] sm:$0xff]  ;;  %v5553_v45 = vand.u32 4294901760, %v97_v54  ;;  %v89_v61 = vld [vmem:[#allocation2 + $0x1b8] sm:$0xff] }
  0xd5   :  { %1476 = vmatpush1.msra.mxu1 %v8465_v56  ;;  %1291 = vmatprep.subr.mxu0 %v8467_v3  ;;  %v8485_v40 = vand.u32 4294901760, %v8484_v12  ;;  %v93_v56 = vld [vmem:[#allocation2 + $0x1d8] sm:$0xff]  ;;  %v8488_v3 = vld [vmem:[#allocation81_spill] sm:$0xff]  ;;  %v8502_v12 = vld [vmem:[#allocation87_spill] sm:$0xff] }
  0xd6   :  { %1478 = vmatprep.subr.mxu1 %v8468_v4  ;;  %1295 = vmatpush2.msra.mxu0 %v8470_v9  ;;  %8486 = vst [vmem:[#allocation70_spill] sm:$0xff] %v5553_v45  ;;  %v8489_v4 = vand.u32 4294901760, %v8488_v3  ;;  %v8491_v9 = vld [vmem:[#allocation83_spill] sm:$0xff] }
  0xd7   :  { %1480 = vmatpush1.msra.mxu1 %v8471_v0  ;;  %1299 = vmatprep.subr.mxu0 %v8473_v8  ;;  %v8492_v0 = vand.u32 4294901760, %v8491_v9  ;;  %v92_v8 = vld [vmem:[#allocation2 + $0x1d0] sm:$0xff] }
  0xd8   :  { %1482 = vmatprep.subr.mxu1 %v8474_v42  ;;  %1303 = vmatpush2.msra.mxu0 %v8476_v48  ;;  %v8494_v42 = vld [vmem:[#allocation50_spill] sm:$0xff]  ;;  %v8496_v48 = vand.u32 4294901760, %v8495_v11  ;;  %v88_v3 = vld [vmem:[#allocation2 + $0x1b0] sm:$0xff] }
  0xd9   :  { %1484 = vmatpush2.msra.mxu1 %v8477_v15  ;;  %1307 = vmatprep.subr.mxu0 %v8479_v6  ;;  %v5566_v15 = vand.u32 4294901760, %v93_v56  ;;  %v8499_v6 = vld [vmem:[#allocation86_spill] sm:$0xff]  ;;  %v84_v11 = vld [vmem:[#allocation2 + $0x190] sm:$0xff] }
  0xda   :  { %1486 = vmatprep.subr.mxu1 %v8480_v63  ;;  %1311 = vmatpush2.msra.mxu0 %v8482_v23  ;;  %v8500_v63 = vand.u32 4294901760, %v8499_v6  ;;  %v5572_v23 = vsub.f32 %v97_v54, %v5553_v45  ;;  %v8508_v54 = vld [vmem:[#allocation91_spill] sm:$0xff] }
  0xdb   :  { %1488 = vmatpush2.msra.mxu1 %v8483_v21  ;;  %1315 = vmatprep.subr.mxu0 %v8485_v40  ;;  %8497 = vst [vmem:[#allocation74_spill] sm:$0xff] %v5566_v15  ;;  %v8501_v21 = vld [vmem:[#allocation54_spill] sm:$0xff]  ;;  %v8503_v40 = vand.u32 4294901760, %v8502_v12  ;;  %v5591_v6 = vsub.f32 %v93_v56, %v5566_v15  ;;  %v5596_v12 = vand.u32 4294901760, %v88_v3  ;;  %v5607_v56 = vand.u32 4294901760, %v84_v11 }
  0xdc   :  { %1490 = vmatprep.subr.mxu1 %v8487_v59  ;;  %1319 = vmatpush2.msra.mxu0 %v8489_v4  ;;  %v5577_v59 = vand.u32 4294901760, %v92_v8  ;;  %v8505_v4 = vld [vmem:[#allocation56_spill] sm:$0xff] }
  0xdd   :  { %1492 = vmatpush2.msra.mxu1 %v8490_v5  ;;  %1323 = vmatprep.subr.mxu0 %v8492_v0  ;;  %v8506_v5 = vld [vmem:[#allocation89_spill] sm:$0xff]  ;;  %v5583_v0 = vsub.f32 %v96_v25, %v5561_v10  ;;  %8513 = vst [vmem:[#allocation80_spill] sm:$0xff] %v5596_v12  ;;  %v7782_v25 = vand.u32 4294901760, %v5572_v23  ;;  %8517 = vst [vmem:[#allocation88_spill] sm:$0xff] %v5607_v56 }
  0xde   :  { %1494 = vmatprep.subr.mxu1 %v8494_v42  ;;  %1327 = vmatpush2.msra.mxu0 %v8496_v48  ;;  %8504 = vst [vmem:[#allocation76_spill] sm:$0xff] %v5577_v59  ;;  %v8507_v9 = vand.u32 4294901760, %v8506_v5  ;;  %v85_v42 = vld [vmem:[#allocation2 + $0x198] sm:$0xff]  ;;  %v8509_v48 = vand.u32 4294901760, %v8508_v54 }
  0xdf   :  { %1496 = vmatpush2.msra.mxu1 %v8498_v57  ;;  %1331 = vmatprep.subr.mxu0 %v8500_v63  ;;  %v5588_v57 = vand.u32 4294901760, %v89_v61  ;;  %v8511_v63 = vld [vmem:[#allocation93_spill] sm:$0xff]  ;;  %v5605_v5 = vand.u32 4294901760, %v85_v42  ;;  %v8518_v54 = vld [vmem:[#allocation64_spill] sm:$0xff] }
  0xe0   :  { %1498 = vmatprep.subr.mxu1 %v8501_v21  ;;  %1335 = vmatpush2.msra.mxu0 %v8503_v40  ;;  %v8512_v21 = vand.u32 4294901760, %v8511_v63  ;;  %v8514_v40 = vld [vmem:[#allocation62_spill] sm:$0xff] }
  0xe1   :  { %1500 = vmatpush2.msra.mxu1 %v8505_v4  ;;  %1339 = vmatprep.subr.mxu0 %v8507_v9  ;;  %8510 = vst [vmem:[#allocation78_spill] sm:$0xff] %v5588_v57  ;;  %v5603_v4 = vsub.f32 %v92_v8, %v5577_v59  ;;  %8516 = vst [vmem:[#allocation82_spill] sm:$0xff] %v5605_v5  ;;  %v80_v9 = vld [vmem:[#allocation2 + $0x170] sm:$0xff]  ;;  %v77_v8 = vld [vmem:[#allocation2 + $0x158] sm:$0xff] }
  0xe2   :  { %1502 = vmatprep.subr.mxu1 %v8358_v49  ;;  %1343 = vmatpush2.msra.mxu0 %v8509_v48  ;;  %v8515_v49 = vand.u32 4294901760, %v5078_v36  ;;  %v8519_v48 = vld [vmem:[#allocation94_spill] sm:$0xff]  ;;  %v8521_v36 = vand.u32 4294901760, %v5113_v32  ;;  %v5633_v32 = vand.u32 4294901760, %v80_v9 }
  0xe3   :  { %1504 = vmatpush2.msra.mxu1 %v8361_v55  ;;  %1347 = vmatprep.subr.mxu0 %v8512_v21  ;;  %v81_v55 = vld [vmem:[#allocation2 + $0x178] sm:$0xff]  ;;  %v8520_v63 = vand.u32 4294901760, %v8519_v48  ;;  %v7781_v21 = vand.u32 4294901760, %v5583_v0  ;;  %v5624_v48 = vsub.f32 %v88_v3, %v5596_v12  ;;  %v5643_v3 = vsub.f32 %v85_v42, %v5605_v5 }
  0xe4   :  { %1506 = vmatprep.subr.mxu1 %v8514_v40  ;;  %1351 = vmatpush2.msra.mxu0 %v8515_v49  ;;  %v7783_v40 = vand.u32 4294901760, %v5591_v6  ;;  %v5618_v49 = vsub.f32 %v89_v61, %v5588_v57  ;;  %8524 = vst [vmem:[#allocation92_spill] sm:$0xff] %v5633_v32  ;;  %v8534_v42 = vand.u32 4294901760, %v5184_v53 }
  0xe5   :  { %1508 = vmatpush2.msra.mxu1 %v8518_v54  ;;  %1355 = vmatprep.subr.mxu0 %v8520_v63  ;;  %v8522_v54 = vand.u32 4294901760, %v5125_v20  ;;  %v5626_v63 = vand.u32 4294901760, %v81_v55  ;;  %v5639_v20 = vsub.f32 %v84_v11, %v5607_v56  ;;  %v8529_v11 = vand.u32 4294901760, %v5158_v13 }
  0xe6   :  { %1510 = vmatprep.subr.mxu1 %v8366_v47  ;;  %1359 = vmatpush2.msra.mxu0 %v8521_v36  ;;  %v5631_v47 = vsub.f32 %v5572_v23, %v7782_v25  ;;  %v76_v36 = vld [vmem:[#allocation2 + $0x150] sm:$0xff]  ;;  %v8531_v25 = vand.u32 4294901760, %v5175_v1  ;;  %v5671_v13 = vsub.f32 %v80_v9, %v5633_v32  ;;  %v8541_v9 = vand.u32 4294901760, %v5205_v62 }
  0xe7   :  { %1512 = vmatpush2.msra.mxu1 %v8367_v50  ;;  %1363 = vmatprep.subr.mxu0 %v8522_v54  ;;  %8523 = vst [vmem:[#allocation90_spill] sm:$0xff] %v5626_v63  ;;  %v8525_v50 = vand.u32 4294901760, %v5138_v27  ;;  %8526 = vst [vmem:[#allocation5_spill] sm:$0xff] %v5639_v20  ;;  %v8527_v54 = vand.u32 4294901760, %v5149_v30  ;;  %v5653_v27 = vand.u32 4294901760, %v77_v8  ;;  %v5663_v30 = vand.u32 4294901760, %v76_v36 }
  0xe8   :  { %1514 = vmatprep.subr.mxu1 %v8369_v26  ;;  %v5651_v26 = vsub.f32 %v5583_v0, %v7781_v21  ;;  %v68_v21 = vld [vmem:[#allocation2 + $0x110] sm:$0xff]  ;;  %8532 = vst [vmem:[#allocation25_spill] sm:$0xff] %v5671_v13  ;;  %v5675_v61 = vsub.f32 %v81_v55, %v5626_v63  ;;  %v8537_v55 = vand.u32 4294901760, %v5197_v41  ;;  %v8543_v41 = vand.u32 4294901760, %v5618_v49 }
  0xe9   :  { %1367 = vmatpush2.msra.mxu0 %v8525_v50  ;;  %1516 = vmatpush2.msra.mxu1 %v8371_v60  ;;  %8528 = vst [vmem:[#allocation23_spill] sm:$0xff] %v5653_v27  ;;  %v73_v50 = vld [vmem:[#allocation2 + $0x138] sm:$0xff]  ;;  %v5661_v60 = vsub.f32 %v5591_v6, %v7783_v40  ;;  %8530 = vst [vmem:[#allocation6_spill] sm:$0xff] %v5663_v30 }
  0xea   :  { %1371 = vmatprep.subr.mxu0 %v8527_v54  ;;  %1518 = vmatprep.subr.mxu1 %v8372_v17  ;;  %v72_v54 = vld [vmem:[#allocation2 + $0x130] sm:$0xff]  ;;  %v69_v40 = vld [vmem:[#allocation2 + $0x118] sm:$0xff]  ;;  %8533 = vst [vmem:[#allocation7_spill] sm:$0xff] %v5675_v61  ;;  %v8559_v38 = vand.u32 4294901760, %v5675_v61 }
  0xeb   :  { %1375 = vmatpush2.msra.mxu0 %v8529_v11  ;;  %1520 = vmatpush2.msra.mxu1 %v8373_v52  ;;  %v8535_v52 = vand.u32 4294901760, %v5603_v4  ;;  %v65_v11 = vld [vmem:[#allocation2 + $0xf8] sm:$0xff]  ;;  %v5712_v53 = vand.u32 4294901760, %v69_v40 }
  0xec   :  { %1379 = vmatprep.subr.mxu0 %v8531_v25  ;;  %1522 = vmatprep.subr.mxu1 %v8374_v29  ;;  %v5685_v25 = vand.u32 4294901760, %v73_v50  ;;  %v5693_v29 = vand.u32 4294901760, %v72_v54  ;;  %v5767_v28 = vsub.f32 %v5675_v61, %v8559_v38 }
  0xed   :  { %1383 = vmatpush2.msra.mxu0 %v8534_v42  ;;  %v5683_v1 = vsub.f32 %v5603_v4, %v8535_v52  ;;  %1524 = vmatpush2.msra.mxu1 %v8375_v44  ;;  %v5695_v42 = vand.u32 4294901760, %v68_v21  ;;  %v5698_v52 = vsub.f32 %v77_v8, %v5653_v27  ;;  %v5705_v44 = vsub.f32 %v76_v36, %v5663_v30  ;;  %v8545_v8 = vld [vmem:[#allocation95_spill] sm:$0xff] }
  0xee   :  { %8536 = vst [vmem:[#allocation27_spill] sm:$0xff] %v5685_v25  ;;  %1387 = vmatprep.subr.mxu0 %v8537_v55  ;;  %8538 = vst [vmem:[#allocation8_spill] sm:$0xff] %v5693_v29  ;;  %1526 = vmatprep.subr.mxu1 %v8376_v16  ;;  %v5710_v55 = vsub.f32 %v5618_v49, %v8543_v41  ;;  %v8547_v16 = vand.u32 4294901760, %v5624_v48  ;;  %v61_v41 = vld [vmem:[#allocation2 + $0xd8] sm:$0xff]  ;;  %v5739_v36 = vsub.f32 %v73_v50, %v5685_v25 }
  0xef   :  { %8539 = vst [vmem:[#allocation29_spill] sm:$0xff] %v5695_v42  ;;  %8540 = vst [vmem:[#allocation9_spill] sm:$0xff] %v5698_v52  ;;  %1391 = vmatpush2.msra.mxu0 %v8541_v9  ;;  %1393 = vmatprep.mubr.f32.mxu0 %v8545_v8  ;;  %v5721_v9 = vand.u32 4294901760, %v65_v11  ;;  %v5747_v39 = vsub.f32 %v68_v21, %v5695_v42  ;;  %v8558_v21 = vld [vmem:[#allocation103_spill] sm:$0xff] }
  0xf0   :  { %8542 = vst [vmem:[#allocation31_spill] sm:$0xff] %v5705_v44  ;;  %8544 = vst [vmem:[#allocation10_spill] sm:$0xff] %v5712_v53  ;;  %1528 = vmatpush2.msra.mxu1 %v8546_v22  ;;  %v5719_v62 = vsub.f32 %v5624_v48, %v8547_v16  ;;  %1395 = vmatmul.mubr.f32.vlgmr.msra.gmra.mxu0 %v8549_v24  ;;  %v8550_v22 = vand.u32 4294901760, %v5643_v3  ;;  %v8551_v16 = vand.u32 4294901760, %v5639_v20 }
  0xf1   :  { %8548 = vst [vmem:[#allocation33_spill] sm:$0xff] %v5721_v9  ;;  %1530 = vmatprep.subr.mxu1 %v5008_v43  ;;  %8552 = vst [vmem:[#allocation11_spill] sm:$0xff] %v5739_v36  ;;  %1571 = vmatprep.subr.mxu0 %v5553_v45  ;;  %v5744_v43 = vsub.f32 %v72_v54, %v5693_v29  ;;  %v5759_v54 = vsub.f32 %v69_v40, %v5712_v53  ;;  %v8563_v45 = vld [vmem:[#allocation104_spill] sm:$0xff] }
  0xf2   :  { %v5731_v51 = vsub.f32 %v5643_v3, %v8550_v22  ;;  %v5736_v35 = vsub.f32 %v5639_v20, %v8551_v16  ;;  %1532 = vmatpush2.msra.mxu1 %v5019_v37  ;;  %8554 = vst [vmem:[#allocation12_spill] sm:$0xff] %v5747_v39  ;;  %v5749_v22 = vand.u32 4294901760, %v64_v58  ;;  %1573 = vmatpush1.msra.mxu0 %v5561_v10  ;;  %v5755_v16 = vand.u32 4294901760, %v61_v41  ;;  %v57_v37 = vld [vmem:[#allocation2 + $0xb8] sm:$0xff]  ;;  %v56_v10 = vld [vmem:[#allocation2 + $0xb0] sm:$0xff] }
  0xf3   :  { %8553 = vst [vmem:[#allocation35_spill] sm:$0xff] %v5744_v43  ;;  %1534 = vmatprep.subr.mxu1 %v8381_v46  ;;  %8557 = vst [vmem:[#allocation39_spill] sm:$0xff] %v5759_v54  ;;  %1575 = vmatprep.subr.mxu0 %v5566_v15  ;;  %v8560_v46 = vand.u32 4294901760, %v5671_v13  ;;  %v5775_v40 = vsub.f32 %v65_v11, %v5721_v9  ;;  %v5781_v15 = vand.u32 4294901760, %v60_v31  ;;  %v5803_v38 = vand.u32 4294901760, %v57_v37 }
  0xf4   :  { %8555 = vst [vmem:[#allocation37_spill] sm:$0xff] %v5749_v22  ;;  %8556 = vst [vmem:[#allocation13_spill] sm:$0xff] %v5755_v16  ;;  %1401 = vmatprep.mubr.f32.mxu0 %v8558_v21  ;;  %1536 = vmatpush2.msra.mxu1 %v8382_v19  ;;  %v5787_v11 = vsub.f32 %v64_v58, %v5749_v22  ;;  %v8565_v19 = vand.u32 4294901760, %v5698_v52  ;;  %v5813_v17 = vand.u32 4294901760, %v56_v10 }
  0xf5   :  { %v5772_v50 = vsub.f32 %v5671_v13, %v8560_v46  ;;  %8561 = vst [vmem:[#allocation14_spill] sm:$0xff] %v5775_v40  ;;  %1577 = vmatpush1.msra.mxu0 %v5577_v59  ;;  %8562 = vst [vmem:[#allocation41_spill] sm:$0xff] %v5781_v15  ;;  %1538 = vmatprep.subr.mxu1 %v8384_v18  ;;  %v52_v59 = vld [vmem:[#allocation2 + $0x90] sm:$0xff]  ;;  %v8566_v18 = vand.u32 4294901760, %v5705_v44 }
  0xf6   :  { %1403 = vmatmul.mubr.f32.gmra.mxu0 %v8563_v45  ;;  %8564 = vst [vmem:[#allocation15_spill] sm:$0xff] %v5787_v11  ;;  %v5792_v46 = vsub.f32 %v5698_v52, %v8565_v19  ;;  %1579 = vmatprep.subr.mxu0 %v5588_v57  ;;  %8567 = vst [vmem:[#allocation43_spill] sm:$0xff] %v5803_v38  ;;  %v5807_v52 = vsub.f32 %v61_v41, %v5755_v16  ;;  %v8570_v57 = vld [vmem:[#allocation106_spill] sm:$0xff]  ;;  %v8572_v41 = vand.u32 4294901760, %v5739_v36 }
  0xf7   :  { %1540 = vmatpush2.msra.mxu1 %v5074_v14  ;;  %v5801_v58 = vsub.f32 %v5705_v44, %v8566_v18  ;;  %1581 = vmatpush1.msra.mxu0 %v5596_v12  ;;  %8569 = vst [vmem:[#allocation45_spill] sm:$0xff] %v5813_v17  ;;  %v5819_v19 = vsub.f32 %v60_v31, %v5781_v15  ;;  %v5828_v13 = vand.u32 4294901760, %v52_v59  ;;  %v49_v14 = vld [vmem:[#allocation2 + $0x78] sm:$0xff]  ;;  %v48_v44 = vld [vmem:[#allocation2 + $0x70] sm:$0xff]  ;;  %v8575_v31 = vand.u32 4294901760, %v5744_v43 }
  0xf8   :  { %8568 = vst [vmem:[#allocation16_spill] sm:$0xff] %v5807_v52  ;;  %1542 = vmatprep.subr.mxu1 %v5087_v2  ;;  %1583 = vmatprep.subr.mxu0 %v5605_v5  ;;  %v5824_v12 = vsub.f32 %v5739_v36, %v8572_v41  ;;  %v5826_v2 = vand.u32 4294901760, %v53_v7  ;;  %v8576_v41 = vand.u32 4294901760, %v5747_v39  ;;  %v8577_v18 = vand.u32 4294901760, %v5759_v54 }
  0xf9   :  { %1409 = vmatprep.mubr.f32.mxu0 %v8570_v57  ;;  %8571 = vst [vmem:[#allocation17_spill] sm:$0xff] %v5819_v19  ;;  %8574 = vst [vmem:[#allocation18_spill] sm:$0xff] %v5828_v13  ;;  %1544 = vmatpush2.msra.mxu1 %v5109_v33  ;;  %v5836_v5 = vsub.f32 %v5744_v43, %v8575_v31  ;;  %v45_v31 = vld [vmem:[#allocation2 + $0x58] sm:$0xff]  ;;  %v5861_v61 = vand.u32 4294901760, %v49_v14  ;;  %v8581_v33 = vand.u32 4294901760, %v5775_v40  ;;  %v44_v43 = vld [vmem:[#allocation2 + $0x50] sm:$0xff] }
  0xfa   :  { %8573 = vst [vmem:[#allocation47_spill] sm:$0xff] %v5826_v2  ;;  %1546 = vmatprep.mubr.f32.mxu1 %v8545_v8  ;;  %v5841_v36 = vsub.f32 %v5747_v39, %v8576_v41  ;;  %1585 = vmatpush1.msra.mxu0 %v5607_v56  ;;  %v5850_v20 = vsub.f32 %v5759_v54, %v8577_v18  ;;  %v5868_v56 = vand.u32 4294901760, %v48_v44  ;;  %v40_v39 = vld [vmem:[#allocation2 + $0x30] sm:$0xff] }
  0xfb   :  { %1548 = vmatmul.mubr.f32.vlgmr.msra.gmra.mxu1 %v8549_v24  ;;  %v5854_v8 = vsub.f32 %v57_v37, %v5803_v38  ;;  %1411 = vmatmul.mubr.f32.gmra.mxu0 %v5320_v34  ;;  %v5859_v41 = vsub.f32 %v56_v10, %v5813_v17  ;;  %8580 = vst [vmem:[#allocation51_spill] sm:$0xff] %v5861_v61  ;;  %v8583_v37 = vand.u32 4294901760, %v5631_v47 }
  0xfc   :  { %1587 = vmatprep.subr.mxu0 %v5626_v63  ;;  %v5866_v18 = vsub.f32 %v5775_v40, %v8581_v33  ;;  %8582 = vst [vmem:[#allocation20_spill] sm:$0xff] %v5868_v56  ;;  %v5875_v10 = vsub.f32 %v52_v59, %v5828_v13  ;;  %v5879_v54 = vsub.f32 %v53_v7, %v5826_v2  ;;  %v8586_v33 = vand.u32 4294901760, %v5651_v26 }
  0xfd   :  { %8578 = vst [vmem:[#allocation49_spill] sm:$0xff] %v5854_v8  ;;  %8579 = vst [vmem:[#allocation19_spill] sm:$0xff] %v5859_v41  ;;  %1752 = vmatprep.subr.mxu1 %v8583_v37  ;;  %1589 = vmatpush1.msra.mxu0 %v5633_v32  ;;  %v8587_v32 = vand.u32 4294901760, %v5787_v11  ;;  %v5891_v59 = vand.u32 4294901760, %v45_v31  ;;  %v8589_v7 = vand.u32 4294901760, %v5661_v60  ;;  %v5902_v37 = vand.u32 4294901760, %v44_v43 }
  0xfe   :  { %8584 = vst [vmem:[#allocation53_spill] sm:$0xff] %v5875_v10  ;;  %8585 = vst [vmem:[#allocation21_spill] sm:$0xff] %v5879_v54  ;;  %1758 = vmatpush1.msra.mxu1 %v8586_v33  ;;  %1591 = vmatprep.subr.mxu0 %v5653_v27  ;;  %v8590_v33 = vand.u32 4294901760, %v5807_v52  ;;  %v41_v27 = vld [vmem:[#allocation2 + $0x38] sm:$0xff]  ;;  %v8592_v60 = vand.u32 4294901760, %v5683_v1  ;;  %v5910_v26 = vsub.f32 %v48_v44, %v5868_v56 }
  0xff   :  { %v5889_v63 = vsub.f32 %v5787_v11, %v8587_v32  ;;  %8588 = vst [vmem:[#allocation55_spill] sm:$0xff] %v5891_v59  ;;  %1764 = vmatprep.subr.mxu1 %v8589_v7  ;;  %1554 = vmatprep.mubr.f32.mxu1 %v8558_v21  ;;  %8591 = vst [vmem:[#allocation22_spill] sm:$0xff] %v5902_v37  ;;  %v36_v11 = vld [vmem:[#allocation2 + $0x10] sm:$0xff]  ;;  %v8595_v32 = vand.u32 4294901760, %v5819_v19  ;;  %v37_v7 = vld [vmem:[#allocation2 + $0x18] sm:$0xff]  ;;  %v8611_v21 = vand.u32 4294901760, %v5875_v10 }
 0x100   :  { %v5900_v47 = vsub.f32 %v5807_v52, %v8590_v33  ;;  %1593 = vmatpush1.msra.mxu0 %v5663_v30  ;;  %1770 = vmatpush1.msra.mxu1 %v8592_v60  ;;  %8593 = vst [vmem:[#allocation57_spill] sm:$0xff] %v5910_v26  ;;  %v5914_v33 = vsub.f32 %v49_v14, %v5861_v61  ;;  %v160_v52 = vld [vmem:[#allocation2 + $0x3f0] sm:$0xff]  ;;  %v5923_v60 = vand.u32 4294901760, %v40_v39  ;;  %v8597_v14 = vand.u32 4294901760, %v5710_v55  ;;  %v161_v44 = vld [vmem:[#allocation2 + $0x3f8] sm:$0xff] }
 0x101   :  { %1556 = vmatmul.mubr.f32.gmra.mxu1 %v8563_v45  ;;  %1595 = vmatprep.subr.mxu0 %v5685_v25  ;;  %v5921_v1 = vsub.f32 %v5819_v19, %v8595_v32  ;;  %v5931_v25 = vand.u32 4294901760, %v41_v27  ;;  %v5933_v30 = vand.u32 4294901760, %v36_v11  ;;  %v5936_v32 = vsub.f32 %v45_v31, %v5891_v59 }
 0x102   :  { %8594 = vst [vmem:[#allocation24_spill] sm:$0xff] %v5914_v33  ;;  %8596 = vst [vmem:[#allocation59_spill] sm:$0xff] %v5923_v60  ;;  %1776 = vmatprep.subr.mxu1 %v8597_v14  ;;  %1597 = vmatpush1.msra.mxu0 %v5693_v29  ;;  %v8601_v19 = vand.u32 4294901760, %v5719_v62  ;;  %v5943_v55 = vsub.f32 %v44_v43, %v5902_v37  ;;  %v8603_v14 = vand.u32 4294901760, %v5854_v8  ;;  %v5950_v29 = vand.u32 4294901760, %v160_v52 }
 0x103   :  { %8598 = vst [vmem:[#allocation26_spill] sm:$0xff] %v5931_v25  ;;  %8599 = vst [vmem:[#allocation61_spill] sm:$0xff] %v5933_v30  ;;  %1599 = vmatprep.subr.mxu0 %v5712_v53  ;;  %v8605_v31 = vand.u32 4294901760, %v5731_v51  ;;  %1562 = vmatprep.mubr.f32.mxu1 %v8570_v57  ;;  %v8606_v62 = vand.u32 4294901760, %v5859_v41  ;;  %v5960_v43 = vand.u32 4294901760, %v37_v7  ;;  %v156_v53 = vld [vmem:[#allocation2 + $0x3d0] sm:$0xff] }
 0x104   :  { %8600 = vst [vmem:[#allocation28_spill] sm:$0xff] %v5936_v32  ;;  %1782 = vmatpush1.msra.mxu1 %v8601_v19  ;;  %8602 = vst [vmem:[#allocation63_spill] sm:$0xff] %v5943_v55  ;;  %v5948_v45 = vsub.f32 %v5854_v8, %v8603_v14  ;;  %1601 = vmatpush1.msra.mxu0 %v5695_v42  ;;  %v8608_v8 = vand.u32 4294901760, %v5736_v35  ;;  %v5979_v14 = vsub.f32 %v5875_v10, %v8611_v21  ;;  %v152_v10 = vld [vmem:[#allocation2 + $0x3b0] sm:$0xff] }
 0x105   :  { %8604 = vst [vmem:[#allocation30_spill] sm:$0xff] %v5950_v29  ;;  %1788 = vmatprep.subr.mxu1 %v8605_v31  ;;  %v5958_v19 = vsub.f32 %v5859_v41, %v8606_v62  ;;  %8607 = vst [vmem:[#allocation65_spill] sm:$0xff] %v5960_v43  ;;  %v5969_v31 = vsub.f32 %v40_v39, %v5923_v60  ;;  %v8610_v62 = vand.u32 4294901760, %v5879_v54  ;;  %1564 = vmatmul.mubr.f32.gmra.mxu1 %v5320_v34  ;;  %v157_v39 = vld [vmem:[#allocation2 + $0x3d8] sm:$0xff] }
 0x106   :  { %1794 = vmatpush1.msra.mxu1 %v8608_v8  ;;  %1603 = vmatprep.subr.mxu0 %v5721_v9  ;;  %v5984_v35 = vsub.f32 %v36_v11, %v5933_v30  ;;  %v5986_v8 = vand.u32 4294901760, %v161_v44  ;;  %v8615_v42 = vand.u32 4294901760, %v5767_v28  ;;  %v5997_v34 = vsub.f32 %v160_v52, %v5950_v29  ;;  %v149_v28 = vld [vmem:[#allocation2 + $0x398] sm:$0xff] }
 0x107   :  { %8609 = vst [vmem:[#allocation32_spill] sm:$0xff] %v5969_v31  ;;  %v5974_v57 = vsub.f32 %v5879_v54, %v8610_v62  ;;  %v5990_v62 = vsub.f32 %v41_v27, %v5931_v25  ;;  %1605 = vmatpush1.msra.mxu0 %v5749_v22  ;;  %v5999_v11 = vand.u32 4294901760, %v156_v53  ;;  %v8618_v51 = vand.u32 4294901760, %v5772_v50  ;;  %v153_v22 = vld [vmem:[#allocation2 + $0x3b8] sm:$0xff] }
 0x108   :  { %8612 = vst [vmem:[#allocation67_spill] sm:$0xff] %v5984_v35  ;;  %8613 = vst [vmem:[#allocation34_spill] sm:$0xff] %v5986_v8  ;;  %1800 = vmatprep.subr.mxu1 %v8615_v42  ;;  %1607 = vmatprep.subr.mxu0 %v5755_v16  ;;  %v8619_v27 = vand.u32 4294901760, %v5914_v33  ;;  %v8620_v52 = vand.u32 4294901760, %v5910_v26  ;;  %v6017_v9 = vsub.f32 %v37_v7, %v5960_v43  ;;  %v8622_v50 = vand.u32 4294901760, %v5792_v46 }
 0x109   :  { %8614 = vst [vmem:[#allocation69_spill] sm:$0xff] %v5990_v62  ;;  %8616 = vst [vmem:[#allocation36_spill] sm:$0xff] %v5997_v34  ;;  %1806 = vmatpush1.msra.mxu1 %v8618_v51  ;;  %1609 = vmatpush1.msra.mxu0 %v5781_v15  ;;  %v8625_v7 = vand.u32 4294901760, %v5936_v32  ;;  %v6036_v51 = vand.u32 4294901760, %v152_v10  ;;  %v8627_v16 = vand.u32 4294901760, %v5824_v12  ;;  %v8632_v15 = vand.u32 4294901760, %v5836_v5 }
 0x10a   :  { %8617 = vst [vmem:[#allocation71_spill] sm:$0xff] %v5999_v11  ;;  %v6009_v42 = vsub.f32 %v5914_v33, %v8619_v27  ;;  %v6014_v21 = vsub.f32 %v5910_v26, %v8620_v52  ;;  %8621 = vst [vmem:[#allocation38_spill] sm:$0xff] %v6017_v9  ;;  %1812 = vmatprep.subr.mxu1 %v8622_v50  ;;  %v6024_v27 = vand.u32 4294901760, %v157_v39  ;;  %v148_v33 = vld [vmem:[#allocation2 + $0x390] sm:$0xff]  ;;  %v8624_v52 = vand.u32 4294901760, %v5801_v58 }
 0x10b   :  { %1611 = vmatprep.subr.mxu0 %v5803_v38  ;;  %v6033_v46 = vsub.f32 %v5936_v32, %v8625_v7  ;;  %8626 = vst [vmem:[#allocation40_spill] sm:$0xff] %v6036_v51  ;;  %v6043_v58 = vsub.f32 %v156_v53, %v5999_v11  ;;  %v6050_v38 = vand.u32 4294901760, %v153_v22  ;;  %v6053_v50 = vsub.f32 %v161_v44, %v5986_v8  ;;  %v144_v12 = vld [vmem:[#allocation2 + $0x370] sm:$0xff] }
 0x10c   :  { %8623 = vst [vmem:[#allocation73_spill] sm:$0xff] %v6024_v27  ;;  %1818 = vmatpush1.msra.mxu1 %v8624_v52  ;;  %1613 = vmatpush1.msra.mxu0 %v5813_v17  ;;  %v8629_v52 = vand.u32 4294901760, %v5943_v55  ;;  %v6061_v17 = vand.u32 4294901760, %v148_v33  ;;  %v8635_v44 = vand.u32 4294901760, %v5969_v31  ;;  %v8641_v53 = vand.u32 4294901760, %v5984_v35 }
 0x10d   :  { %1824 = vmatprep.subr.mxu1 %v8627_v16  ;;  %8628 = vst [vmem:[#allocation75_spill] sm:$0xff] %v6043_v58  ;;  %8630 = vst [vmem:[#allocation42_spill] sm:$0xff] %v6050_v38  ;;  %1615 = vmatprep.subr.mxu0 %v5826_v2  ;;  %v145_v2 = vld [vmem:[#allocation2 + $0x378] sm:$0xff]  ;;  %v6075_v16 = vsub.f32 %v157_v39, %v6024_v27 }
 0x10e   :  { %v6048_v7 = vsub.f32 %v5943_v55, %v8629_v52  ;;  %8631 = vst [vmem:[#allocation77_spill] sm:$0xff] %v6053_v50  ;;  %1830 = vmatpush1.msra.mxu1 %v8632_v15  ;;  %8633 = vst [vmem:[#allocation44_spill] sm:$0xff] %v6061_v17  ;;  %v8634_v52 = vand.u32 4294901760, %v5850_v20  ;;  %1617 = vmatpush1.msra.mxu0 %v5828_v13  ;;  %v6069_v5 = vsub.f32 %v5969_v31, %v8635_v44 }
 0x10f   :  { %v6071_v15 = vand.u32 4294901760, %v149_v28  ;;  %8637 = vst [vmem:[#allocation46_spill] sm:$0xff] %v6075_v16  ;;  %v8638_v55 = vand.u32 4294901760, %v5841_v36  ;;  %1619 = vmatprep.subr.mxu0 %v5861_v61  ;;  %v6087_v13 = vsub.f32 %v152_v10, %v6036_v51  ;;  %v6092_v39 = vsub.f32 %v5984_v35, %v8641_v53  ;;  %v141_v61 = vld [vmem:[#allocation2 + $0x358] sm:$0xff] }
 0x110   :  { %1836 = vmatprep.subr.mxu1 %v8634_v52  ;;  %v8639_v52 = vand.u32 4294901760, %v5990_v62  ;;  %v8642_v36 = vand.u32 4294901760, %v5866_v18  ;;  %1621 = vmatpush1.msra.mxu0 %v5868_v56  ;;  %v6101_v10 = vsub.f32 %v153_v22, %v6050_v38  ;;  %v8645_v18 = vand.u32 4294901760, %v6017_v9 }
 0x111   :  { %8636 = vst [vmem:[#allocation79_spill] sm:$0xff] %v6071_v15  ;;  %1842 = vmatpush1.msra.mxu1 %v8638_v55  ;;  %8640 = vst [vmem:[#allocation81_spill] sm:$0xff] %v6087_v13  ;;  %1623 = vmatprep.subr.mxu0 %v5891_v59  ;;  %v6114_v55 = vand.u32 4294901760, %v145_v2  ;;  %v6116_v20 = vand.u32 4294901760, %v144_v12  ;;  %v8649_v22 = vand.u32 4294901760, %v5900_v47  ;;  %v6129_v59 = vsub.f32 %v149_v28, %v6071_v15 }
 0x112   :  { %v6084_v44 = vsub.f32 %v5990_v62, %v8639_v52  ;;  %1848 = vmatprep.subr.mxu1 %v8642_v36  ;;  %v140_v52 = vld [vmem:[#allocation2 + $0x350] sm:$0xff]  ;;  %8643 = vst [vmem:[#allocation48_spill] sm:$0xff] %v6101_v10  ;;  %v8644_v62 = vand.u32 4294901760, %v5889_v63  ;;  %v6109_v53 = vsub.f32 %v6017_v9, %v8645_v18  ;;  %v6112_v36 = vsub.f32 %v148_v33, %v6061_v17 }
 0x113   :  { %8647 = vst [vmem:[#allocation50_spill] sm:$0xff] %v6114_v55  ;;  %8648 = vst [vmem:[#allocation85_spill] sm:$0xff] %v6116_v20  ;;  %1625 = vmatpush1.msra.mxu0 %v5902_v37  ;;  %v136_v33 = vld [vmem:[#allocation2 + $0x330] sm:$0xff]  ;;  %v8652_v56 = vand.u32 4294901760, %v5921_v1  ;;  %v6136_v63 = vand.u32 4294901760, %v141_v61  ;;  %v6138_v37 = vand.u32 4294901760, %v140_v52 }
 0x114   :  { %1854 = vmatpush1.msra.mxu1 %v8644_v62  ;;  %8646 = vst [vmem:[#allocation83_spill] sm:$0xff] %v6112_v36  ;;  %v8650_v62 = vand.u32 4294901760, %v5997_v34  ;;  %8651 = vst [vmem:[#allocation52_spill] sm:$0xff] %v6129_v59  ;;  %1627 = vmatprep.subr.mxu0 %v5931_v25  ;;  %v1919_v47 = vand.u32 4294901760, %v6084_v44  ;;  %v8655_v18 = vand.u32 4294901760, %v5948_v45  ;;  %v8656_v28 = vand.u32 4294901760, %v6053_v50 }
 0x115   :  { %1860 = vmatprep.subr.mxu1 %v8649_v22  ;;  %8653 = vst [vmem:[#allocation86_spill] sm:$0xff] %v6136_v63  ;;  %8654 = vst [vmem:[#allocation54_spill] sm:$0xff] %v6138_v37  ;;  %1629 = vmatpush1.msra.mxu0 %v5923_v60  ;;  %v8657_v1 = vand.u32 4294901760, %v6043_v58  ;;  %v8658_v45 = vand.u32 4294901760, %v5958_v19  ;;  %v6162_v60 = vand.u32 4294901760, %v136_v33  ;;  %v8662_v22 = vand.u32 4294901760, %v5974_v57 }
 0x116   :  { %v6125_v31 = vsub.f32 %v5997_v34, %v8650_v62  ;;  %1866 = vmatpush1.msra.mxu1 %v8652_v56  ;;  %v137_v62 = vld [vmem:[#allocation2 + $0x338] sm:$0xff]  ;;  %v6146_v56 = vsub.f32 %v6053_v50, %v8656_v28  ;;  %v132_v34 = vld [vmem:[#allocation2 + $0x310] sm:$0xff]  ;;  %1631 = vmatprep.subr.mxu0 %v5960_v43  ;;  %v6160_v28 = vsub.f32 %v144_v12, %v6116_v20  ;;  %v8670_v43 = vand.u32 4294901760, %v6101_v10 }
 0x117   :  { %1872 = vmatprep.subr.mxu1 %v8655_v18  ;;  %v6151_v44 = vsub.f32 %v6043_v58, %v8657_v1  ;;  %v1931_v18 = vand.u32 4294901760, %v6109_v53  ;;  %8660 = vst [vmem:[#allocation56_spill] sm:$0xff] %v6162_v60  ;;  %v6165_v1 = vsub.f32 %v145_v2, %v6114_v55  ;;  %1633 = vmatpush1.msra.mxu0 %v5933_v30  ;;  %v6176_v53 = vand.u32 4294901760, %v137_v62  ;;  %v133_v12 = vld [vmem:[#allocation2 + $0x318] sm:$0xff]  ;;  %v128_v58 = vld [vmem:[#allocation2 + $0x2f0] sm:$0xff] }
 0x118   :  { %1878 = vmatpush1.msra.mxu1 %v8658_v45  ;;  %8659 = vst [vmem:[#allocation87_spill] sm:$0xff] %v6160_v28  ;;  %v8663_v45 = vand.u32 4294901760, %v6075_v16  ;;  %v8665_v2 = vand.u32 4294901760, %v5979_v14  ;;  %1635 = vmatprep.subr.mxu0 %v5986_v8  ;;  %v6183_v57 = vsub.f32 %v140_v52, %v6138_v37  ;;  %v8669_v30 = vand.u32 4294901760, %v6009_v42 }
 0x119   :  { %8661 = vst [vmem:[#allocation89_spill] sm:$0xff] %v6165_v1  ;;  %1884 = vmatprep.subr.mxu1 %v8662_v22  ;;  %8664 = vst [vmem:[#allocation91_spill] sm:$0xff] %v6176_v53  ;;  %v6185_v22 = vand.u32 4294901760, %v132_v34  ;;  %1637 = vmatpush2.msra.mxu0 %v5950_v29  ;;  %v1943_v14 = vand.u32 4294901760, %v6146_v56  ;;  %v6199_v52 = vsub.f32 %v6101_v10, %v8670_v43  ;;  %v8671_v8 = vand.u32 4294901760, %v6087_v13  ;;  %v124_v29 = vld [vmem:[#allocation2 + $0x2d0] sm:$0xff] }
 0x11a   :  { %v6174_v25 = vsub.f32 %v6075_v16, %v8663_v45  ;;  %1890 = vmatpush1.msra.mxu1 %v8665_v2  ;;  %8666 = vst [vmem:[#allocation93_spill] sm:$0xff] %v6183_v57  ;;  %v6189_v45 = vsub.f32 %v141_v61, %v6136_v63  ;;  %v129_v61 = vld [vmem:[#allocation2 + $0x2f8] sm:$0xff]  ;;  %v8672_v42 = vand.u32 4294901760, %v6014_v21  ;;  %1639 = vmatprep.subr.mxu0 %v6024_v27  ;;  %v6212_v56 = vand.u32 4294901760, %v133_v12 }
 0x11b   :  { %8667 = vst [vmem:[#allocation62_spill] sm:$0xff] %v6185_v22  ;;  %1896 = vmatprep.subr.mxu1 %v8669_v30  ;;  %v6204_v19 = vsub.f32 %v6087_v13, %v8671_v8  ;;  %v6210_v30 = vsub.f32 %v136_v33, %v6162_v60  ;;  %v6215_v43 = vand.u32 4294901760, %v128_v58  ;;  %v8676_v10 = vand.u32 4294901760, %v6033_v46  ;;  %1641 = vmatpush2.msra.mxu0 %v5999_v11  ;;  %v125_v11 = vld [vmem:[#allocation2 + $0x2d8] sm:$0xff] }
 0x11c   :  { %8668 = vst [vmem:[#allocation64_spill] sm:$0xff] %v6189_v45  ;;  %1902 = vmatpush1.msra.mxu1 %v8672_v42  ;;  %8674 = vst [vmem:[#allocation84_spill] sm:$0xff] %v6212_v56  ;;  %v1955_v8 = vand.u32 4294901760, %v6174_v25  ;;  %v8677_v21 = vand.u32 4294901760, %v6129_v59  ;;  %v6228_v27 = vsub.f32 %v137_v62, %v6176_v53  ;;  %v8679_v2 = vand.u32 4294901760, %v6048_v7  ;;  %1643 = vmatprep.subr.mxu0 %v6050_v38  ;;  %v120_v38 = vld [vmem:[#allocation2 + $0x2b0] sm:$0xff] }
 0x11d   :  { %8673 = vst [vmem:[#allocation94_spill] sm:$0xff] %v6210_v30  ;;  %8675 = vst [vmem:[#allocation115_spill] sm:$0xff] %v6215_v43  ;;  %1908 = vmatprep.subr.mxu1 %v8676_v10  ;;  %v6234_v46 = vsub.f32 %v132_v34, %v6185_v22  ;;  %v8681_v25 = vand.u32 4294901760, %v6112_v36  ;;  %1645 = vmatpush2.msra.mxu0 %v6036_v51  ;;  %v1967_v7 = vand.u32 4294901760, %v6199_v52  ;;  %v1973_v62 = vand.u32 4294901760, %v6204_v19  ;;  %v121_v52 = vld [vmem:[#allocation2 + $0x2b8] sm:$0xff] }
 0x11e   :  { %v6224_v42 = vsub.f32 %v6129_v59, %v8677_v21  ;;  %8678 = vst [vmem:[#allocation116_spill] sm:$0xff] %v6228_v27  ;;  %1914 = vmatpush1.msra.mxu1 %v8679_v2  ;;  %v6241_v21 = vand.u32 4294901760, %v129_v61  ;;  %v6247_v2 = vand.u32 4294901760, %v124_v29  ;;  %1647 = vmatprep.subr.mxu0 %v6071_v15  ;;  %v6259_v33 = vsub.f32 %v128_v58, %v6215_v43  ;;  %v116_v15 = vld [vmem:[#allocation2 + $0x290] sm:$0xff] }
 0x11f   :  { %8680 = vst [vmem:[#allocation117_spill] sm:$0xff] %v6234_v46  ;;  %v6239_v10 = vsub.f32 %v6112_v36, %v8681_v25  ;;  %1920 = vmatprep.subr.mxu1 %v1919_v47  ;;  %v8684_v25 = vand.u32 4294901760, %v6069_v5  ;;  %v8685_v36 = vand.u32 4294901760, %v6165_v1  ;;  %v6263_v51 = vsub.f32 %v133_v12, %v6212_v56  ;;  %1649 = vmatpush2.msra.mxu0 %v6061_v17 }
 0x120   :  { %8682 = vst [vmem:[#allocation118_spill] sm:$0xff] %v6241_v21  ;;  %8683 = vst [vmem:[#allocation119_spill] sm:$0xff] %v6247_v2  ;;  %v1979_v5 = vand.u32 4294901760, %v6224_v42  ;;  %v8690_v19 = vand.u32 4294901760, %v6092_v39  ;;  %1651 = vmatprep.subr.mxu0 %v6114_v55  ;;  %v8691_v12 = vand.u32 4294901760, %v6189_v45  ;;  %v6284_v17 = vand.u32 4294901760, %v120_v38 }
 0x121   :  { %1926 = vmatpush1.msra.mxu1 %v8684_v25  ;;  %v6256_v47 = vsub.f32 %v6165_v1, %v8685_v36  ;;  %8686 = vst [vmem:[#allocation120_spill] sm:$0xff] %v6259_v33  ;;  %8687 = vst [vmem:[#allocation121_spill] sm:$0xff] %v6263_v51  ;;  %v8688_v25 = vand.u32 4294901760, %v6160_v28  ;;  %v6272_v36 = vand.u32 4294901760, %v125_v11  ;;  %1653 = vmatpush2.msra.mxu0 %v6116_v20  ;;  %v6296_v58 = vand.u32 4294901760, %v121_v52  ;;  %v112_v55 = vld [vmem:[#allocation2 + $0x270] sm:$0xff] }
 0x122   :  { %1932 = vmatprep.subr.mxu1 %v1931_v18  ;;  %v1985_v18 = vand.u32 4294901760, %v6239_v10  ;;  %v6282_v42 = vsub.f32 %v6189_v45, %v8691_v12  ;;  %8692 = vst [vmem:[#allocation123_spill] sm:$0xff] %v6284_v17  ;;  %v6289_v39 = vsub.f32 %v124_v29, %v6247_v2  ;;  %v6299_v12 = vsub.f32 %v129_v61, %v6241_v21 }
 0x123   :  { %v6270_v34 = vsub.f32 %v6160_v28, %v8688_v25  ;;  %8689 = vst [vmem:[#allocation122_spill] sm:$0xff] %v6272_v36  ;;  %1938 = vmatpush1.msra.mxu1 %v8690_v19  ;;  %v117_v25 = vld [vmem:[#allocation2 + $0x298] sm:$0xff]  ;;  %v8694_v19 = vand.u32 4294901760, %v6183_v57  ;;  %8695 = vst [vmem:[#allocation125_spill] sm:$0xff] %v6296_v58  ;;  %v8697_v45 = vand.u32 4294901760, %v6125_v31  ;;  %1655 = vmatprep.subr.mxu0 %v6136_v63  ;;  %v8698_v29 = vand.u32 4294901760, %v6210_v30 }
 0x124   :  { %1944 = vmatprep.subr.mxu1 %v1943_v14  ;;  %8693 = vst [vmem:[#allocation124_spill] sm:$0xff] %v6289_v39  ;;  %8696 = vst [vmem:[#allocation126_spill] sm:$0xff] %v6299_v12  ;;  %v1991_v14 = vand.u32 4294901760, %v6256_v47  ;;  %v6311_v20 = vand.u32 4294901760, %v116_v15  ;;  %1657 = vmatpush2.msra.mxu0 %v6138_v37  ;;  %v6320_v47 = vand.u32 4294901760, %v117_v25  ;;  %v6330_v37 = vsub.f32 %v120_v38, %v6284_v17 }
 0x125   :  { %v6294_v10 = vsub.f32 %v6183_v57, %v8694_v19  ;;  %1950 = vmatpush2.msra.mxu1 %v8697_v45  ;;  %v6308_v28 = vsub.f32 %v6210_v30, %v8698_v29  ;;  %v113_v57 = vld [vmem:[#allocation2 + $0x278] sm:$0xff]  ;;  %v1997_v31 = vand.u32 4294901760, %v6270_v34  ;;  %v8699_v45 = vand.u32 4294901760, %v6228_v27  ;;  %1659 = vmatprep.subr.mxu0 %v6176_v53 }
 0x126   :  { %1956 = vmatprep.subr.mxu1 %v1955_v8  ;;  %v6323_v29 = vsub.f32 %v125_v11, %v6272_v36  ;;  %v8700_v19 = vand.u32 4294901760, %v6151_v44  ;;  %v2003_v8 = vand.u32 4294901760, %v6282_v42  ;;  %8701 = vst [vmem:[#allocation127_spill] sm:$0xff] %v6330_v37  ;;  %v8702_v34 = vand.u32 4294901760, %v6234_v46  ;;  %v109_v30 = vld [vmem:[#allocation2 + $0x258] sm:$0xff]  ;;  %1661 = vmatpush2.msra.mxu0 %v6162_v60 }
 0x127   :  { %v6318_v61 = vsub.f32 %v6228_v27, %v8699_v45  ;;  %v6337_v63 = vand.u32 4294901760, %v112_v55  ;;  %v2009_v11 = vand.u32 4294901760, %v6294_v10  ;;  %v6341_v44 = vand.u32 4294901760, %v113_v57  ;;  %1663 = vmatprep.subr.mxu0 %v6212_v56  ;;  %v101_v10 = vld [vmem:[#allocation2 + $0x218] sm:$0xff] }
 0x128   :  { %1962 = vmatpush2.msra.mxu1 %v8700_v19  ;;  %v6335_v45 = vsub.f32 %v6234_v46, %v8702_v34  ;;  %v108_v19 = vld [vmem:[#allocation2 + $0x250] sm:$0xff]  ;;  %v6345_v38 = vsub.f32 %v121_v52, %v6296_v58  ;;  %v2021_v34 = vand.u32 4294901760, %v6308_v28  ;;  %v8704_v53 = vand.u32 4294901760, %v6263_v51  ;;  %v105_v46 = vld [vmem:[#allocation2 + $0x238] sm:$0xff]  ;;  %1665 = vmatpush2.msra.mxu0 %v6185_v22 }
 0x129   :  { %1968 = vmatprep.subr.mxu1 %v1967_v7  ;;  %v6353_v60 = vsub.f32 %v116_v15, %v6311_v20  ;;  %v2015_v52 = vand.u32 4294901760, %v6318_v61  ;;  %v104_v28 = vld [vmem:[#allocation2 + $0x230] sm:$0xff]  ;;  %v6362_v56 = vsub.f32 %v117_v25, %v6320_v47  ;;  %1667 = vmatprep.subr.mxu0 %v6241_v21  ;;  %v8707_v42 = vand.u32 4294901760, %v6299_v12 }
 0x12a   :  { %8703 = vst [vmem:[#allocation128_spill] sm:$0xff] %v6345_v38  ;;  %1974 = vmatpush2.msra.mxu1 %v1973_v62  ;;  %v2026_v7 = vsub.f32 %v6263_v51, %v8704_v53  ;;  %v6358_v62 = vand.u32 4294901760, %v109_v30  ;;  %v2033_v15 = vand.u32 4294901760, %v6335_v45  ;;  %v6367_v53 = vsub.f32 %v112_v55, %v6337_v63  ;;  %1669 = vmatpush2.msra.mxu0 %v6215_v43  ;;  %v100_v45 = vld [vmem:[#allocation2 + $0x210] sm:$0xff] }
 0x12b   :  { %1980 = vmatprep.subr.mxu1 %v1979_v5  ;;  %8705 = vst [vmem:[#allocation129_spill] sm:$0xff] %v6362_v56  ;;  %v6369_v5 = vand.u32 4294901760, %v108_v19  ;;  %v2038_v25 = vsub.f32 %v6299_v12, %v8707_v42  ;;  %v6380_v55 = vsub.f32 %v113_v57, %v6341_v44  ;;  %1671 = vmatprep.subr.mxu0 %v6272_v36  ;;  %v6386_v22 = vand.u32 4294901760, %v104_v28 }
 0x12c   :  { %1986 = vmatpush2.msra.mxu1 %v1985_v18  ;;  %8706 = vst [vmem:[#allocation130_spill] sm:$0xff] %v6367_v53  ;;  %v6376_v18 = vand.u32 4294901760, %v105_v46  ;;  %v2027_v61 = vand.u32 4294901760, %v2026_v7  ;;  %1673 = vmatpush2.msra.mxu0 %v6247_v2  ;;  %v8709_v21 = vand.u32 4294901760, %v6323_v29  ;;  %v6393_v12 = vand.u32 4294901760, %v101_v10 }
 0x12d   :  { %1992 = vmatprep.subr.mxu1 %v1991_v14  ;;  %v8708_v14 = vand.u32 4294901760, %v6259_v33  ;;  %v6397_v7 = vsub.f32 %v109_v30, %v6358_v62  ;;  %1675 = vmatprep.subr.mxu0 %v6296_v58  ;;  %v6406_v2 = vand.u32 4294901760, %v100_v45  ;;  %v8711_v30 = vand.u32 4294901760, %v6345_v38 }
 0x12e   :  { %1998 = vmatpush2.msra.mxu1 %v1997_v31  ;;  %v2050_v57 = vsub.f32 %v6323_v29, %v8709_v21  ;;  %1677 = vmatpush2.msra.mxu0 %v6284_v17  ;;  %v2039_v31 = vand.u32 4294901760, %v2038_v25  ;;  %v6419_v36 = vsub.f32 %v104_v28, %v6386_v22  ;;  %v8723_v21 = vld [vmem:[#allocation101_spill] sm:$0xff] }
 0x12f   :  { %v2044_v43 = vsub.f32 %v6259_v33, %v8708_v14  ;;  %2004 = vmatprep.subr.mxu1 %v2003_v8  ;;  %v6401_v14 = vsub.f32 %v108_v19, %v6369_v5  ;;  %v8710_v8 = vand.u32 4294901760, %v6289_v39  ;;  %v6415_v19 = vsub.f32 %v105_v46, %v6376_v18  ;;  %1679 = vmatprep.subr.mxu0 %v6320_v47 }
 0x130   :  { %2010 = vmatpush2.msra.mxu1 %v2009_v11  ;;  %v2062_v11 = vsub.f32 %v6345_v38, %v8711_v30  ;;  %1681 = vmatpush2.msra.mxu0 %v6311_v20  ;;  %v2051_v30 = vand.u32 4294901760, %v2050_v57  ;;  %v8713_v46 = vand.u32 4294901760, %v6362_v56 }
 0x131   :  { %v2056_v42 = vsub.f32 %v6289_v39, %v8710_v8  ;;  %2016 = vmatprep.subr.mxu1 %v2015_v52  ;;  %v2045_v8 = vand.u32 4294901760, %v2044_v43  ;;  %v8712_v52 = vand.u32 4294901760, %v6330_v37  ;;  %v6431_v43 = vsub.f32 %v101_v10, %v6393_v12  ;;  %1683 = vmatprep.subr.mxu0 %v6341_v44 }
 0x132   :  { %2022 = vmatpush2.msra.mxu1 %v2021_v34  ;;  %v2074_v34 = vsub.f32 %v6362_v56, %v8713_v46  ;;  %1685 = vmatpush2.msra.mxu0 %v6337_v63  ;;  %v2063_v46 = vand.u32 4294901760, %v2062_v11  ;;  %v8716_v10 = vand.u32 4294901760, %v6380_v55  ;;  %v8718_v11 = vand.u32 4294901760, %v6397_v7 }
 0x133   :  { %v2068_v25 = vsub.f32 %v6330_v37, %v8712_v52  ;;  %2028 = vmatprep.subr.mxu1 %v2027_v61  ;;  %8714 = vst [vmem:[#allocation131_spill] sm:$0xff] %v6431_v43  ;;  %v2057_v28 = vand.u32 4294901760, %v2056_v42  ;;  %v6435_v52 = vsub.f32 %v100_v45, %v6406_v2  ;;  %v8715_v61 = vand.u32 4294901760, %v6353_v60  ;;  %1687 = vmatprep.subr.mxu0 %v6358_v62 }
 0x134   :  { %2034 = vmatpush2.msra.mxu1 %v2033_v15  ;;  %v2086_v15 = vsub.f32 %v6380_v55, %v8716_v10  ;;  %v8717_v42 = vand.u32 4294901760, %v6367_v53  ;;  %1689 = vmatpush2.msra.mxu0 %v6369_v5  ;;  %v2098_v10 = vsub.f32 %v6397_v7, %v8718_v11 }
 0x135   :  { %v2080_v57 = vsub.f32 %v6353_v60, %v8715_v61  ;;  %2040 = vmatprep.subr.mxu1 %v2039_v31  ;;  %v2069_v45 = vand.u32 4294901760, %v2068_v25  ;;  %v2075_v31 = vand.u32 4294901760, %v2074_v34  ;;  %1691 = vmatprep.subr.mxu0 %v6376_v18  ;;  %v8719_v25 = vand.u32 4294901760, %v6401_v14 }
 0x136   :  { %2046 = vmatpush2.msra.mxu1 %v2045_v8  ;;  %v2092_v61 = vsub.f32 %v6367_v53, %v8717_v42  ;;  %1693 = vmatpush2.msra.mxu0 %v6386_v22  ;;  %v8720_v34 = vand.u32 4294901760, %v6415_v19 }
 0x137   :  { %2052 = vmatprep.subr.mxu1 %v2051_v30  ;;  %v2081_v8 = vand.u32 4294901760, %v2080_v57  ;;  %v2104_v42 = vsub.f32 %v6401_v14, %v8719_v25  ;;  %v2087_v30 = vand.u32 4294901760, %v2086_v15  ;;  %1695 = vmatprep.subr.mxu0 %v6393_v12  ;;  %v8721_v57 = vand.u32 4294901760, %v6419_v36 }
 0x138   :  { %2058 = vmatpush2.msra.mxu1 %v2057_v28  ;;  %v2110_v11 = vsub.f32 %v6415_v19, %v8720_v34  ;;  %v2093_v28 = vand.u32 4294901760, %v2092_v61  ;;  %1697 = vmatpush2.msra.mxu0 %v6406_v2  ;;  %v2099_v25 = vand.u32 4294901760, %v2098_v10 }
 0x139   :  { %2064 = vmatprep.subr.mxu1 %v2063_v46  ;;  %v2116_v58 = vsub.f32 %v6419_v36, %v8721_v57  ;;  %v8722_v46 = vand.u32 4294901760, %v6431_v43  ;;  %1703 = vmatprep.mubr.f32.mxu0 %v8723_v21  ;;  %v2105_v34 = vand.u32 4294901760, %v2104_v42  ;;  %v8728_v42 = vld [vmem:[#allocation7_spill] sm:$0xff] }
 0x13a   :  { %2070 = vmatpush2.msra.mxu1 %v2069_v45  ;;  %v8724_v45 = vand.u32 4294901760, %v6435_v52  ;;  %2158 = vmatprep.subr.mxu0 %v5572_v23  ;;  %v2111_v57 = vand.u32 4294901760, %v2110_v11  ;;  %v8730_v11 = vld [vmem:[#allocation25_spill] sm:$0xff] }
 0x13b   :  { %2076 = vmatprep.subr.mxu1 %v2075_v31  ;;  %v2122_v15 = vsub.f32 %v6431_v43, %v8722_v46  ;;  %v8725_v31 = vld [vmem:[#allocation102_spill] sm:$0xff]  ;;  %v2117_v10 = vand.u32 4294901760, %v2116_v58  ;;  %v8726_v58 = vld [vmem:[#allocation95_spill] sm:$0xff] }
 0x13c   :  { %2082 = vmatpush2.msra.mxu1 %v2081_v8  ;;  %v2128_v61 = vsub.f32 %v6435_v52, %v8724_v45  ;;  %1709 = vmatmul.mubr.f32.vlgmr.msra.gmra.mxu0 %v8725_v31  ;;  %v8727_v8 = vld [vmem:[#allocation5_spill] sm:$0xff]  ;;  %v8735_v45 = vld [vmem:[#allocation76_spill] sm:$0xff]  ;;  %v8738_v31 = vld [vmem:[#allocation35_spill] sm:$0xff] }
 0x13d   :  { %2088 = vmatprep.subr.mxu1 %v2087_v30  ;;  %2161 = vmatpush1.msra.mxu0 %v5583_v0  ;;  %v2123_v46 = vand.u32 4294901760, %v2122_v15  ;;  %v8729_v30 = vld [vmem:[#allocation70_spill] sm:$0xff] }
 0x13e   :  { %2094 = vmatpush2.msra.mxu1 %v2093_v28  ;;  %2164 = vmatprep.subr.mxu0 %v5591_v6  ;;  %v2129_v21 = vand.u32 4294901760, %v2128_v61  ;;  %v8731_v28 = vld [vmem:[#allocation72_spill] sm:$0xff]  ;;  %v8733_v15 = vld [vmem:[#allocation74_spill] sm:$0xff]  ;;  %v8736_v61 = vld [vmem:[#allocation11_spill] sm:$0xff] }
 0x13f   :  { %2100 = vmatprep.subr.mxu1 %v2099_v25  ;;  %2167 = vmatpush1.msra.mxu0 %v5603_v4  ;;  %v8732_v25 = vld [vmem:[#allocation9_spill] sm:$0xff] }
 0x140   :  { %2106 = vmatpush2.msra.mxu1 %v2105_v34  ;;  %2170 = vmatprep.subr.mxu0 %v5618_v49  ;;  %v8734_v34 = vld [vmem:[#allocation31_spill] sm:$0xff] }
 0x141   :  { %2112 = vmatprep.subr.mxu1 %v2111_v57  ;;  %2173 = vmatpush1.msra.mxu0 %v5624_v48  ;;  %v8737_v57 = vld [vmem:[#allocation78_spill] sm:$0xff] }
 0x142   :  { %2118 = vmatpush2.msra.mxu1 %v2117_v10  ;;  %2176 = vmatprep.subr.mxu0 %v5643_v3  ;;  %v8739_v10 = vld [vmem:[#allocation80_spill] sm:$0xff] }
 0x143   :  { %2124 = vmatprep.subr.mxu1 %v2123_v46  ;;  %2132 = vmatprep.mubr.f32.mxu1 %v8726_v58  ;;  %v8740_v46 = vld [vmem:[#allocation39_spill] sm:$0xff]  ;;  %v8743_v58 = vld [vmem:[#allocation88_spill] sm:$0xff] }
 0x144   :  { %2130 = vmatpush2.msra.mxu1 %v2129_v21  ;;  %2179 = vmatpush1.msra.mxu0 %v8727_v8  ;;  %v8741_v21 = vld [vmem:[#allocation82_spill] sm:$0xff] }
 0x145   :  { %2134 = vmatmul.mubr.f32.vlgmr.msra.gmra.mxu1 %v8549_v24  ;;  %2182 = vmatprep.subr.mxu0 %v8728_v42  ;;  %v8742_v24 = vld [vmem:[#allocation12_spill] sm:$0xff] }
 0x146   :  { %2380 = vmatprep.subr.mxu1 %v8729_v30  ;;  %2185 = vmatpush1.msra.mxu0 %v8730_v11 }
 0x147   :  { %2382 = vmatpush1.msra.mxu1 %v8731_v28  ;;  %2188 = vmatprep.subr.mxu0 %v8732_v25 }
 0x148   :  { %2384 = vmatprep.subr.mxu1 %v8733_v15  ;;  %2191 = vmatpush1.msra.mxu0 %v8734_v34  ;;  %v8744_v34 = vld [vmem:[#allocation90_spill] sm:$0xff] }
 0x149   :  { %2386 = vmatpush1.msra.mxu1 %v8735_v45  ;;  %2194 = vmatprep.subr.mxu0 %v8736_v61  ;;  %v8745_v45 = vld [vmem:[#allocation15_spill] sm:$0xff]  ;;  %v8746_v61 = vld [vmem:[#allocation92_spill] sm:$0xff] }
 0x14a   :  { %2388 = vmatprep.subr.mxu1 %v8737_v57  ;;  %2197 = vmatpush1.msra.mxu0 %v8738_v31  ;;  %v8747_v57 = vld [vmem:[#allocation16_spill] sm:$0xff]  ;;  %v8748_v31 = vld [vmem:[#allocation23_spill] sm:$0xff] }
 0x14b   :  { %2390 = vmatpush1.msra.mxu1 %v8739_v10  ;;  %2200 = vmatprep.subr.mxu0 %v8740_v46  ;;  %v8749_v10 = vld [vmem:[#allocation17_spill] sm:$0xff]  ;;  %v8750_v46 = vld [vmem:[#allocation6_spill] sm:$0xff] }
 0x14c   :  { %2392 = vmatprep.subr.mxu1 %v8741_v21  ;;  %2203 = vmatpush1.msra.mxu0 %v8742_v24  ;;  %v8751_v21 = vld [vmem:[#allocation49_spill] sm:$0xff]  ;;  %v8752_v24 = vld [vmem:[#allocation27_spill] sm:$0xff] }
 0x14d   :  { %2394 = vmatpush1.msra.mxu1 %v8743_v58  ;;  %2206 = vmatprep.subr.mxu0 %v5775_v40  ;;  %v8753_v40 = vld [vmem:[#allocation8_spill] sm:$0xff] }
 0x14e   :  { %2396 = vmatprep.subr.mxu1 %v8744_v34  ;;  %2209 = vmatpush1.msra.mxu0 %v8745_v45  ;;  %v8754_v45 = vld [vmem:[#allocation10_spill] sm:$0xff] }
 0x14f   :  { %2398 = vmatpush1.msra.mxu1 %v8746_v61  ;;  %2212 = vmatprep.subr.mxu0 %v8747_v57  ;;  %v8755_v61 = vld [vmem:[#allocation53_spill] sm:$0xff] }
 0x150   :  { %2400 = vmatprep.subr.mxu1 %v8748_v31  ;;  %2215 = vmatpush1.msra.mxu0 %v8749_v10  ;;  %v8756_v57 = vld [vmem:[#allocation29_spill] sm:$0xff]  ;;  %v8757_v31 = vld [vmem:[#allocation24_spill] sm:$0xff] }
 0x151   :  { %2402 = vmatpush1.msra.mxu1 %v8750_v46  ;;  %2218 = vmatprep.subr.mxu0 %v8751_v21  ;;  %v8758_v10 = vld [vmem:[#allocation33_spill] sm:$0xff] }
 0x152   :  { %2404 = vmatprep.subr.mxu1 %v8752_v24  ;;  %2221 = vmatpush1.msra.mxu0 %v5859_v41  ;;  %v8759_v21 = vld [vmem:[#allocation37_spill] sm:$0xff] }
 0x153   :  { %2406 = vmatpush1.msra.mxu1 %v8753_v40  ;;  %2224 = vmatprep.subr.mxu0 %v5879_v54  ;;  %v8760_v41 = vld [vmem:[#allocation13_spill] sm:$0xff]  ;;  %v8761_v40 = vld [vmem:[#allocation63_spill] sm:$0xff] }
 0x154   :  { %2408 = vmatprep.subr.mxu1 %v8754_v45  ;;  %2227 = vmatpush1.msra.mxu0 %v8755_v61  ;;  %v8762_v54 = vld [vmem:[#allocation41_spill] sm:$0xff]  ;;  %v8764_v61 = vld [vmem:[#allocation43_spill] sm:$0xff] }
 0x155   :  { %2410 = vmatpush1.msra.mxu1 %v8756_v57  ;;  %2230 = vmatprep.subr.mxu0 %v8757_v31  ;;  %v8763_v45 = vld [vmem:[#allocation69_spill] sm:$0xff]  ;;  %v8765_v57 = vld [vmem:[#allocation32_spill] sm:$0xff] }
 0x156   :  { %2412 = vmatprep.subr.mxu1 %v8758_v10  ;;  %2233 = vmatpush1.msra.mxu0 %v5910_v26  ;;  %v8766_v31 = vld [vmem:[#allocation45_spill] sm:$0xff]  ;;  %v8767_v26 = vld [vmem:[#allocation47_spill] sm:$0xff] }
 0x157   :  { %2414 = vmatpush1.msra.mxu1 %v8759_v21  ;;  %2236 = vmatprep.subr.mxu0 %v5936_v32  ;;  %v8768_v32 = vld [vmem:[#allocation18_spill] sm:$0xff] }
 0x158   :  { %2416 = vmatprep.subr.mxu1 %v8760_v41  ;;  %2239 = vmatpush1.msra.mxu0 %v8761_v40  ;;  %v8769_v40 = vld [vmem:[#allocation51_spill] sm:$0xff] }
 0x159   :  { %2418 = vmatpush1.msra.mxu1 %v8762_v54  ;;  %2242 = vmatprep.subr.mxu0 %v8763_v45  ;;  %v8770_v54 = vld [vmem:[#allocation36_spill] sm:$0xff] }
 0x15a   :  { %2420 = vmatprep.subr.mxu1 %v8764_v61  ;;  %2245 = vmatpush1.msra.mxu0 %v8765_v57  ;;  %v8771_v45 = vld [vmem:[#allocation20_spill] sm:$0xff]  ;;  %v8772_v57 = vld [vmem:[#allocation55_spill] sm:$0xff] }
 0x15b   :  { %2422 = vmatpush1.msra.mxu1 %v8766_v31  ;;  %2248 = vmatprep.subr.mxu0 %v6017_v9  ;;  %v8773_v31 = vld [vmem:[#allocation75_spill] sm:$0xff]  ;;  %v8774_v9 = vld [vmem:[#allocation22_spill] sm:$0xff] }
 0x15c   :  { %2424 = vmatprep.subr.mxu1 %v8767_v26  ;;  %2251 = vmatpush1.msra.mxu0 %v5984_v35  ;;  %v8775_v26 = vld [vmem:[#allocation48_spill] sm:$0xff]  ;;  %v8776_v35 = vld [vmem:[#allocation26_spill] sm:$0xff] }
 0x15d   :  { %2426 = vmatpush1.msra.mxu1 %v8768_v32  ;;  %2254 = vmatprep.subr.mxu0 %v6053_v50  ;;  %v8777_v50 = vld [vmem:[#allocation59_spill] sm:$0xff] }
 0x15e   :  { %2428 = vmatprep.subr.mxu1 %v8769_v40  ;;  %2257 = vmatpush2.msra.mxu0 %v8770_v54  ;;  %v8778_v54 = vld [vmem:[#allocation65_spill] sm:$0xff] }
 0x15f   :  { %2430 = vmatpush1.msra.mxu1 %v8771_v45  ;;  %2260 = vmatprep.subr.mxu0 %v6075_v16  ;;  %v8779_v45 = vld [vmem:[#allocation83_spill] sm:$0xff]  ;;  %v8780_v16 = vld [vmem:[#allocation61_spill] sm:$0xff] }
 0x160   :  { %2432 = vmatprep.subr.mxu1 %v8772_v57  ;;  %2263 = vmatpush2.msra.mxu0 %v8773_v31  ;;  %v8781_v31 = vld [vmem:[#allocation34_spill] sm:$0xff] }
 0x161   :  { %2434 = vmatpush1.msra.mxu1 %v8774_v9  ;;  %2266 = vmatprep.subr.mxu0 %v8775_v26  ;;  %v8782_v9 = vld [vmem:[#allocation87_spill] sm:$0xff]  ;;  %v8783_v26 = vld [vmem:[#allocation30_spill] sm:$0xff] }
 0x162   :  { %2436 = vmatprep.subr.mxu1 %v8776_v35  ;;  %2269 = vmatpush2.msra.mxu0 %v6087_v13  ;;  %v8784_v35 = vld [vmem:[#allocation64_spill] sm:$0xff]  ;;  %v8785_v13 = vld [vmem:[#allocation73_spill] sm:$0xff] }
 0x163   :  { %2438 = vmatpush1.msra.mxu1 %v8777_v50  ;;  %2272 = vmatprep.subr.mxu0 %v6129_v59  ;;  %v8786_v50 = vld [vmem:[#allocation93_spill] sm:$0xff]  ;;  %v8787_v59 = vld [vmem:[#allocation71_spill] sm:$0xff] }
 0x164   :  { %2440 = vmatprep.subr.mxu1 %v8778_v54  ;;  %2275 = vmatpush2.msra.mxu0 %v8779_v45  ;;  %v8788_v45 = vld [vmem:[#allocation42_spill] sm:$0xff] }
 0x165   :  { %2442 = vmatpush1.msra.mxu1 %v8780_v16  ;;  %2278 = vmatprep.subr.mxu0 %v6165_v1  ;;  %v8789_v16 = vld [vmem:[#allocation94_spill] sm:$0xff]  ;;  %v8790_v1 = vld [vmem:[#allocation40_spill] sm:$0xff] }
 0x166   :  { %2444 = vmatprep.subr.mxu1 %v8781_v31  ;;  %2281 = vmatpush2.msra.mxu0 %v8782_v9  ;;  %v8791_v9 = vld [vmem:[#allocation79_spill] sm:$0xff] }
 0x167   :  { %2446 = vmatpush2.msra.mxu1 %v8783_v26  ;;  %2284 = vmatprep.subr.mxu0 %v8784_v35  ;;  %v8792_v26 = vld [vmem:[#allocation117_spill] sm:$0xff]  ;;  %v8793_v35 = vld [vmem:[#allocation44_spill] sm:$0xff] }
 0x168   :  { %2448 = vmatprep.subr.mxu1 %v8785_v13  ;;  %2287 = vmatpush2.msra.mxu0 %v8786_v50  ;;  %v8794_v13 = vld [vmem:[#allocation126_spill] sm:$0xff] }
 0x169   :  { %2450 = vmatpush2.msra.mxu1 %v8787_v59  ;;  %2290 = vmatprep.subr.mxu0 %v6228_v27  ;;  %v8795_v50 = vld [vmem:[#allocation50_spill] sm:$0xff]  ;;  %v8796_v27 = vld [vmem:[#allocation85_spill] sm:$0xff] }
 0x16a   :  { %2452 = vmatprep.subr.mxu1 %v8788_v45  ;;  %2293 = vmatpush2.msra.mxu0 %v8789_v16  ;;  %v8797_v16 = vld [vmem:[#allocation86_spill] sm:$0xff] }
 0x16b   :  { %2454 = vmatpush2.msra.mxu1 %v8790_v1  ;;  %2296 = vmatprep.subr.mxu0 %v6263_v51  ;;  %v8798_v51 = vld [vmem:[#allocation54_spill] sm:$0xff] }
 0x16c   :  { %2456 = vmatprep.subr.mxu1 %v8791_v9  ;;  %2299 = vmatpush2.msra.mxu0 %v8792_v26  ;;  %v8799_v26 = vld [vmem:[#allocation91_spill] sm:$0xff] }
 0x16d   :  { %2458 = vmatpush2.msra.mxu1 %v8793_v35  ;;  %2302 = vmatprep.subr.mxu0 %v8794_v13  ;;  %v8800_v13 = vld [vmem:[#allocation56_spill] sm:$0xff] }
 0x16e   :  { %2460 = vmatprep.subr.mxu1 %v8795_v50  ;;  %2305 = vmatpush2.msra.mxu0 %v6259_v33  ;;  %v8801_v33 = vld [vmem:[#allocation84_spill] sm:$0xff] }
 0x16f   :  { %2462 = vmatpush2.msra.mxu1 %v8796_v27  ;;  %2308 = vmatprep.subr.mxu0 %v6323_v29  ;;  %v8802_v27 = vld [vmem:[#allocation58_spill] sm:$0xff] }
 0x170   :  { %2464 = vmatprep.subr.mxu1 %v8797_v16  ;;  %2311 = vmatpush2.msra.mxu0 %v6289_v39  ;;  %v8803_v16 = vld [vmem:[#allocation62_spill] sm:$0xff]  ;;  %v8804_v39 = vld [vmem:[#allocation60_spill] sm:$0xff] }
 0x171   :  { %2466 = vmatpush2.msra.mxu1 %v8798_v51  ;;  %2314 = vmatprep.subr.mxu0 %v6345_v38  ;;  %v8805_v38 = vld [vmem:[#allocation118_spill] sm:$0xff] }
 0x172   :  { %2468 = vmatprep.subr.mxu1 %v8799_v26  ;;  %2317 = vmatpush2.msra.mxu0 %v6330_v37  ;;  %v8806_v37 = vld [vmem:[#allocation115_spill] sm:$0xff] }
 0x173   :  { %2470 = vmatpush2.msra.mxu1 %v8800_v13  ;;  %2320 = vmatprep.subr.mxu0 %v6362_v56  ;;  %v8807_v56 = vld [vmem:[#allocation122_spill] sm:$0xff] }
 0x174   :  { %2472 = vmatprep.subr.mxu1 %v8801_v33  ;;  %1719 = vmatprep.mubr.f32.mxu0 %v8802_v27  ;;  %v8808_v33 = vld [vmem:[#allocation66_spill] sm:$0xff]  ;;  %v8809_v27 = vld [vmem:[#allocation119_spill] sm:$0xff] }
 0x175   :  { %2323 = vmatpush2.msra.mxu0 %v6353_v60  ;;  %2474 = vmatpush2.msra.mxu1 %v8803_v16  ;;  %v8810_v16 = vld [vmem:[#allocation68_spill] sm:$0xff] }
 0x176   :  { %1725 = vmatmul.mubr.f32.gmra.mxu0 %v8804_v39  ;;  %2326 = vmatprep.subr.mxu0 %v6380_v55  ;;  %v8811_v39 = vld [vmem:[#allocation103_spill] sm:$0xff] }
 0x177   :  { %2476 = vmatprep.subr.mxu1 %v8805_v38  ;;  %2329 = vmatpush2.msra.mxu0 %v6367_v53  ;;  %v8812_v38 = vld [vmem:[#allocation125_spill] sm:$0xff]  ;;  %v8813_v53 = vld [vmem:[#allocation104_spill] sm:$0xff] }
 0x178   :  { %2478 = vmatpush2.msra.mxu1 %v8806_v37  ;;  %2332 = vmatprep.subr.mxu0 %v6397_v7 }
 0x179   :  { %2480 = vmatprep.subr.mxu1 %v8807_v56  ;;  %1735 = vmatprep.mubr.f32.mxu0 %v8808_v33  ;;  %v8814_v33 = vld [vmem:[#allocation97_spill] sm:$0xff] }
 0x17a   :  { %2335 = vmatpush2.msra.mxu0 %v6401_v14  ;;  %2482 = vmatpush2.msra.mxu1 %v8809_v27 }
 0x17b   :  { %1741 = vmatmul.mubr.f32.gmra.mxu0 %v8810_v16  ;;  %2140 = vmatprep.mubr.f32.mxu1 %v8811_v39  ;;  %v8815_v16 = vld [vmem:[#allocation106_spill] sm:$0xff] }
 0x17c   :  { %2338 = vmatprep.subr.mxu0 %v6415_v19  ;;  %2484 = vmatprep.subr.mxu1 %v8812_v38  ;;  %v8816_v39 = vld [vmem:[#allocation98_spill] sm:$0xff] }
 0x17d   :  { %2142 = vmatmul.mubr.f32.gmra.mxu1 %v8813_v53  ;;  %2341 = vmatpush2.msra.mxu0 %v6419_v36  ;;  %v8817_v53 = vand.u32 4294901760, %v5572_v23  ;;  %v8823_v23 = vld [vmem:[#allocation107_spill] sm:$0xff] }
 0x17e   :  { %2486 = vmatpush2.msra.mxu1 %v6284_v17  ;;  %2344 = vmatprep.subr.mxu0 %v6431_v43  ;;  %v8818_v17 = vld [vmem:[#allocation108_spill] sm:$0xff]  ;;  %v8819_v43 = vand.u32 4294901760, %v5583_v0  ;;  %v8824_v0 = vand.u32 4294901760, %v5618_v49 }
 0x17f   :  { %2488 = vmatprep.subr.mxu1 %v6320_v47  ;;  %2347 = vmatpush2.msra.mxu0 %v6435_v52  ;;  %v8830_v49 = vld [vmem:[#allocation100_spill] sm:$0xff] }
 0x180   :  { %2350 = vmatprep.mubr.f32.mxu0 %v8814_v33  ;;  %2490 = vmatpush2.msra.mxu1 %v6311_v20  ;;  %v8820_v33 = vand.u32 4294901760, %v5591_v6  ;;  %v8825_v6 = vand.u32 4294901760, %v5624_v48  ;;  %v8832_v48 = vand.u32 4294901760, %v8728_v42  ;;  %v8839_v42 = vld [vmem:[#allocation111_spill] sm:$0xff] }
 0x181   :  { %2148 = vmatprep.mubr.f32.mxu1 %v8815_v16  ;;  %2353 = vmatmul.mubr.f32.vlgmr.msra.gmra.mxu0 %v8816_v39  ;;  %v8821_v16 = vld [vmem:[#allocation105_spill] sm:$0xff]  ;;  %v8822_v39 = vand.u32 4294901760, %v5603_v4  ;;  %v8828_v4 = vld [vmem:[#allocation99_spill] sm:$0xff] }
 0x182   :  { %2492 = vmatprep.subr.mxu1 %v6341_v44  ;;  %2547 = vmatprep.subr.mxu0 %v8817_v53  ;;  %v8826_v53 = vand.u32 4294901760, %v5643_v3  ;;  %v8833_v3 = vand.u32 4294901760, %v8730_v11  ;;  %v8842_v11 = vld [vmem:[#allocation78_spill] sm:$0xff] }
 0x183   :  { %2150 = vmatmul.mubr.f32.gmra.mxu1 %v8818_v17  ;;  %2551 = vmatpush1.msra.mxu0 %v8819_v43  ;;  %v8827_v43 = vld [vmem:[#allocation110_spill] sm:$0xff] }
 0x184   :  { %2494 = vmatpush2.msra.mxu1 %v6337_v63  ;;  %2555 = vmatprep.subr.mxu0 %v8820_v33  ;;  %v8831_v33 = vld [vmem:[#allocation112_spill] sm:$0xff] }
 0x185   :  { %2496 = vmatprep.subr.mxu1 %v6358_v62  ;;  %2360 = vmatprep.mubr.f32.mxu0 %v8821_v16  ;;  %v8829_v16 = vand.u32 4294901760, %v8727_v8  ;;  %v8835_v8 = vld [vmem:[#allocation109_spill] sm:$0xff] }
 0x186   :  { %2498 = vmatpush2.msra.mxu1 %v6369_v5  ;;  %2559 = vmatpush1.msra.mxu0 %v8822_v39  ;;  %v8834_v39 = vand.u32 4294901760, %v8732_v25  ;;  %v8845_v25 = vld [vmem:[#allocation80_spill] sm:$0xff] }
 0x187   :  { %2363 = vmatmul.mubr.f32.gmra.mxu0 %v8823_v23  ;;  %2500 = vmatprep.subr.mxu1 %v6376_v18  ;;  %v8836_v23 = vld [vmem:[#allocation31_spill] sm:$0xff] }
 0x188   :  { %2563 = vmatprep.subr.mxu0 %v8824_v0  ;;  %2502 = vmatpush2.msra.mxu1 %v6386_v22  ;;  %v8837_v0 = vand.u32 4294901760, %v8836_v23  ;;  %v8855_v23 = vld [vmem:[#allocation15_spill] sm:$0xff] }
 0x189   :  { %2567 = vmatpush1.msra.mxu0 %v8825_v6  ;;  %2504 = vmatprep.subr.mxu1 %v6393_v12  ;;  %v8838_v6 = vld [vmem:[#allocation76_spill] sm:$0xff] }
 0x18a   :  { %2571 = vmatprep.subr.mxu0 %v8826_v53  ;;  %2370 = vmatprep.mubr.f32.mxu0 %v8827_v43 }
 0x18b   :  { %2506 = vmatpush2.msra.mxu1 %v6406_v2  ;;  %2510 = vmatprep.mubr.f32.mxu1 %v8828_v4 }
 0x18c   :  { %2575 = vmatpush1.msra.mxu0 %v8829_v16  ;;  %2514 = vmatmul.mubr.f32.vlgmr.msra.gmra.mxu1 %v8830_v49  ;;  %v8848_v16 = vld [vmem:[#allocation82_spill] sm:$0xff]  ;;  %v8849_v49 = vld [vmem:[#allocation113_spill] sm:$0xff] }
 0x18d   :  { %2373 = vmatmul.mubr.f32.gmra.mxu0 %v8831_v33  ;;  %2579 = vmatprep.subr.mxu0 %v8832_v48  ;;  %v8850_v33 = vld [vmem:[#allocation12_spill] sm:$0xff] }
 0x18e   :  { %2826 = vmatprep.subr.mxu1 %v8729_v30  ;;  %2583 = vmatpush1.msra.mxu0 %v8833_v3  ;;  %v8840_v30 = vld [vmem:[#allocation11_spill] sm:$0xff]  ;;  %v8851_v48 = vand.u32 4294901760, %v8850_v33  ;;  %v8852_v3 = vld [vmem:[#allocation114_spill] sm:$0xff]  ;;  %v8871_v33 = vld [vmem:[#allocation53_spill] sm:$0xff] }
 0x18f   :  { %2828 = vmatpush1.msra.mxu1 %v8731_v28  ;;  %2587 = vmatprep.subr.mxu0 %v8834_v39  ;;  %v8841_v53 = vand.u32 4294901760, %v8840_v30  ;;  %v8843_v28 = vld [vmem:[#allocation35_spill] sm:$0xff]  ;;  %v8853_v39 = vld [vmem:[#allocation14_spill] sm:$0xff] }
 0x190   :  { %2830 = vmatprep.subr.mxu1 %v8733_v15  ;;  %2522 = vmatprep.mubr.f32.mxu1 %v8835_v8  ;;  %v8844_v43 = vand.u32 4294901760, %v8843_v28  ;;  %v8846_v15 = vld [vmem:[#allocation39_spill] sm:$0xff]  ;;  %v8854_v8 = vand.u32 4294901760, %v8853_v39 }
 0x191   :  { %2591 = vmatpush1.msra.mxu0 %v8837_v0  ;;  %2832 = vmatpush1.msra.mxu1 %v8838_v6  ;;  %v8847_v4 = vand.u32 4294901760, %v8846_v15  ;;  %v8856_v0 = vand.u32 4294901760, %v8855_v23  ;;  %v8857_v6 = vld [vmem:[#allocation92_spill] sm:$0xff] }
 0x192   :  { %2526 = vmatmul.mubr.f32.gmra.mxu1 %v8839_v42  ;;  %2595 = vmatprep.subr.mxu0 %v8841_v53  ;;  %v8858_v42 = vld [vmem:[#allocation16_spill] sm:$0xff]  ;;  %v8860_v53 = vld [vmem:[#allocation23_spill] sm:$0xff] }
 0x193   :  { %2834 = vmatprep.subr.mxu1 %v8842_v11  ;;  %2599 = vmatpush1.msra.mxu0 %v8844_v43  ;;  %v8859_v30 = vand.u32 4294901760, %v8858_v42  ;;  %v8861_v11 = vld [vmem:[#allocation17_spill] sm:$0xff]  ;;  %v8867_v15 = vld [vmem:[#allocation8_spill] sm:$0xff] }
 0x194   :  { %2836 = vmatpush1.msra.mxu1 %v8845_v25  ;;  %2603 = vmatprep.subr.mxu0 %v8847_v4  ;;  %v8862_v28 = vand.u32 4294901760, %v8861_v11  ;;  %v8868_v4 = vld [vmem:[#allocation21_spill] sm:$0xff]  ;;  %v8878_v23 = vld [vmem:[#allocation28_spill] sm:$0xff] }
 0x195   :  { %2838 = vmatprep.subr.mxu1 %v8848_v16  ;;  %2534 = vmatprep.mubr.f32.mxu1 %v8849_v49  ;;  %v8869_v16 = vand.u32 4294901760, %v8868_v4  ;;  %v8870_v49 = vld [vmem:[#allocation10_spill] sm:$0xff] }
 0x196   :  { %2607 = vmatpush1.msra.mxu0 %v8851_v48  ;;  %2840 = vmatpush1.msra.mxu1 %v8743_v58  ;;  %v8863_v58 = vld [vmem:[#allocation49_spill] sm:$0xff]  ;;  %v8872_v48 = vand.u32 4294901760, %v8871_v33  ;;  %v8898_v33 = vld [vmem:[#allocation46_spill] sm:$0xff] }
 0x197   :  { %2538 = vmatmul.mubr.f32.gmra.mxu1 %v8852_v3  ;;  %2611 = vmatprep.subr.mxu0 %v8854_v8  ;;  %v8864_v43 = vand.u32 4294901760, %v8863_v58  ;;  %v8873_v3 = vld [vmem:[#allocation29_spill] sm:$0xff] }
 0x198   :  { %2842 = vmatprep.subr.mxu1 %v8744_v34  ;;  %2615 = vmatpush1.msra.mxu0 %v8856_v0  ;;  %v8865_v34 = vld [vmem:[#allocation19_spill] sm:$0xff]  ;;  %v8879_v0 = vand.u32 4294901760, %v8878_v23  ;;  %v8887_v58 = vld [vmem:[#allocation45_spill] sm:$0xff] }
 0x199   :  { %2844 = vmatpush1.msra.mxu1 %v8857_v6  ;;  %2619 = vmatprep.subr.mxu0 %v8859_v30  ;;  %v8866_v25 = vand.u32 4294901760, %v8865_v34  ;;  %v8880_v6 = vld [vmem:[#allocation63_spill] sm:$0xff]  ;;  %v8882_v30 = vld [vmem:[#allocation41_spill] sm:$0xff] }
 0x19a   :  { %2846 = vmatprep.subr.mxu1 %v8860_v53  ;;  %2623 = vmatpush1.msra.mxu0 %v8862_v28  ;;  %v8881_v42 = vand.u32 4294901760, %v8880_v6  ;;  %v8883_v53 = vld [vmem:[#allocation69_spill] sm:$0xff]  ;;  %v8890_v34 = vld [vmem:[#allocation47_spill] sm:$0xff]  ;;  %v8909_v6 = vld [vmem:[#allocation52_spill] sm:$0xff] }
 0x19b   :  { %2848 = vmatpush1.msra.mxu1 %v8750_v46  ;;  %2627 = vmatprep.subr.mxu0 %v8864_v43  ;;  %v8874_v46 = vld [vmem:[#allocation24_spill] sm:$0xff]  ;;  %v8884_v11 = vand.u32 4294901760, %v8883_v53  ;;  %v8913_v53 = vld [vmem:[#allocation61_spill] sm:$0xff] }
 0x19c   :  { %2850 = vmatprep.subr.mxu1 %v8752_v24  ;;  %2631 = vmatpush1.msra.mxu0 %v8866_v25  ;;  %v8875_v39 = vand.u32 4294901760, %v8874_v46  ;;  %v8876_v24 = vld [vmem:[#allocation57_spill] sm:$0xff] }
 0x19d   :  { %2852 = vmatpush1.msra.mxu1 %v8867_v15  ;;  %2635 = vmatprep.subr.mxu0 %v8869_v16  ;;  %v8877_v8 = vand.u32 4294901760, %v8876_v24  ;;  %v8893_v15 = vld [vmem:[#allocation77_spill] sm:$0xff] }
 0x19e   :  { %2854 = vmatprep.subr.mxu1 %v8870_v49  ;;  %2639 = vmatpush1.msra.mxu0 %v8872_v48  ;;  %v8894_v4 = vand.u32 4294901760, %v8893_v15  ;;  %v8897_v49 = vld [vmem:[#allocation20_spill] sm:$0xff]  ;;  %v8899_v48 = vand.u32 4294901760, %v8898_v33  ;;  %v8930_v33 = vld [vmem:[#allocation117_spill] sm:$0xff] }
 0x19f   :  { %2856 = vmatpush1.msra.mxu1 %v8873_v3  ;;  %2643 = vmatprep.subr.mxu0 %v8875_v39  ;;  %v8900_v3 = vld [vmem:[#allocation75_spill] sm:$0xff]  ;;  %v8902_v39 = vld [vmem:[#allocation22_spill] sm:$0xff]  ;;  %v8924_v15 = vld [vmem:[#allocation116_spill] sm:$0xff] }
 0x1a0   :  { %2858 = vmatprep.subr.mxu1 %v8758_v10  ;;  %2647 = vmatpush1.msra.mxu0 %v8877_v8  ;;  %v8885_v10 = vld [vmem:[#allocation32_spill] sm:$0xff]  ;;  %v8901_v46 = vand.u32 4294901760, %v8900_v3  ;;  %v8905_v8 = vld [vmem:[#allocation26_spill] sm:$0xff] }
 0x1a1   :  { %2860 = vmatpush1.msra.mxu1 %v8759_v21  ;;  %2651 = vmatprep.subr.mxu0 %v8879_v0  ;;  %v8886_v28 = vand.u32 4294901760, %v8885_v10  ;;  %v8888_v21 = vld [vmem:[#allocation38_spill] sm:$0xff]  ;;  %v8908_v0 = vld [vmem:[#allocation59_spill] sm:$0xff] }
 0x1a2   :  { %2862 = vmatprep.subr.mxu1 %v8760_v41  ;;  %2655 = vmatpush1.msra.mxu0 %v8881_v42  ;;  %v8889_v43 = vand.u32 4294901760, %v8888_v21  ;;  %v8891_v41 = vld [vmem:[#allocation67_spill] sm:$0xff]  ;;  %v8910_v42 = vand.u32 4294901760, %v8909_v6  ;;  %v8918_v21 = vld [vmem:[#allocation30_spill] sm:$0xff]  ;;  %v8948_v6 = vand.u32 4294901760, %v6353_v60  ;;  %v8955_v60 = vand.u32 4294901760, %v6401_v14 }
 0x1a3   :  { %2864 = vmatpush1.msra.mxu1 %v8882_v30  ;;  %2659 = vmatprep.subr.mxu0 %v8884_v11  ;;  %v8892_v25 = vand.u32 4294901760, %v8891_v41  ;;  %v8914_v11 = vld [vmem:[#allocation89_spill] sm:$0xff]  ;;  %v8962_v14 = vld [vmem:[#allocation95_spill] sm:$0xff] }
 0x1a4   :  { %2866 = vmatprep.subr.mxu1 %v8764_v61  ;;  %2663 = vmatpush1.msra.mxu0 %v8886_v28  ;;  %v8895_v61 = vld [vmem:[#allocation36_spill] sm:$0xff]  ;;  %v8915_v10 = vand.u32 4294901760, %v8914_v11  ;;  %v8916_v28 = vld [vmem:[#allocation87_spill] sm:$0xff]  ;;  %v8921_v41 = vld [vmem:[#allocation73_spill] sm:$0xff] }
 0x1a5   :  { %2868 = vmatpush1.msra.mxu1 %v8887_v58  ;;  %2667 = vmatprep.subr.mxu0 %v8889_v43  ;;  %v8896_v16 = vand.u32 4294901760, %v8895_v61  ;;  %v8917_v58 = vand.u32 4294901760, %v8916_v28  ;;  %v8919_v43 = vld [vmem:[#allocation64_spill] sm:$0xff]  ;;  %v8958_v11 = vld [vmem:[#allocation123_spill] sm:$0xff]  ;;  %v3008_v28 = vld [vmem:[%s7553_s2 + $0x60] sm:$0xff] }
 0x1a6   :  { %2870 = vmatprep.subr.mxu1 %v8890_v34  ;;  %2671 = vmatpush1.msra.mxu0 %v8892_v25  ;;  %v8920_v34 = vand.u32 4294901760, %v8919_v43 }
 0x1a7   :  { %2872 = vmatpush1.msra.mxu1 %v8768_v32  ;;  %2675 = vmatprep.subr.mxu0 %v8894_v4  ;;  %v8903_v32 = vld [vmem:[#allocation48_spill] sm:$0xff]  ;;  %v8925_v4 = vand.u32 4294901760, %v8924_v15  ;;  %v6889_v15 = vand.u32 4294901760, %v3008_v28 }
 0x1a8   :  { %2874 = vmatprep.subr.mxu1 %v8769_v40  ;;  %2679 = vmatpush2.msra.mxu0 %v8896_v16  ;;  %v8904_v24 = vand.u32 4294901760, %v8903_v32  ;;  %v8906_v40 = vld [vmem:[#allocation81_spill] sm:$0xff]  ;;  %v8938_v32 = vld [vmem:[#allocation86_spill] sm:$0xff] }
 0x1a9   :  { %2876 = vmatpush1.msra.mxu1 %v8897_v49  ;;  %2683 = vmatprep.subr.mxu0 %v8899_v48  ;;  %v8907_v23 = vand.u32 4294901760, %v8906_v40  ;;  %v8928_v16 = vld [vmem:[#allocation121_spill] sm:$0xff]  ;;  %v8931_v48 = vand.u32 4294901760, %v8930_v33  ;;  %8980 = vst [vmem:[#allocation33_spill] sm:$0xff] %v6889_v15 }
 0x1aa   :  { %2878 = vmatprep.subr.mxu1 %v8772_v57  ;;  %2687 = vmatpush2.msra.mxu0 %v8901_v46  ;;  %v8911_v57 = vld [vmem:[#allocation83_spill] sm:$0xff]  ;;  %v8929_v49 = vand.u32 4294901760, %v8928_v16 }
 0x1ab   :  { %2880 = vmatpush1.msra.mxu1 %v8902_v39  ;;  %2691 = vmatprep.subr.mxu0 %v8904_v24  ;;  %v8912_v30 = vand.u32 4294901760, %v8911_v57  ;;  %v8936_v39 = vld [vmem:[#allocation85_spill] sm:$0xff]  ;;  %v8951_v57 = vld [vmem:[#allocation118_spill] sm:$0xff] }
 0x1ac   :  { %2882 = vmatprep.subr.mxu1 %v8905_v8  ;;  %2695 = vmatpush2.msra.mxu0 %v8907_v23  ;;  %v8945_v23 = vld [vmem:[#allocation129_spill] sm:$0xff] }
 0x1ad   :  { %2884 = vmatpush1.msra.mxu1 %v8908_v0  ;;  %2699 = vmatprep.subr.mxu0 %v8910_v42  ;;  %v8947_v0 = vld [vmem:[#allocation84_spill] sm:$0xff]  ;;  %v8949_v42 = vld [vmem:[#allocation62_spill] sm:$0xff] }
 0x1ae   :  { %2886 = vmatprep.subr.mxu1 %v8778_v54  ;;  %2703 = vmatpush2.msra.mxu0 %v8912_v30  ;;  %v8922_v54 = vld [vmem:[#allocation93_spill] sm:$0xff] }
 0x1af   :  { %2888 = vmatpush1.msra.mxu1 %v8913_v53  ;;  %2707 = vmatprep.subr.mxu0 %v8915_v10  ;;  %v8923_v25 = vand.u32 4294901760, %v8922_v54  ;;  %v8957_v53 = vand.u32 4294901760, %v6419_v36  ;;  %v8964_v36 = vld [vmem:[#allocation103_spill] sm:$0xff]  ;;  %v3024_v10 = vld [vmem:[%s7553_s2 + $0xe0] sm:$0xff] }
 0x1b0   :  { %2890 = vmatprep.subr.mxu1 %v8781_v31  ;;  %2711 = vmatpush2.msra.mxu0 %v8917_v58  ;;  %v8926_v31 = vld [vmem:[#allocation94_spill] sm:$0xff] }
 0x1b1   :  { %2892 = vmatpush2.msra.mxu1 %v8918_v21  ;;  %2715 = vmatprep.subr.mxu0 %v8920_v34  ;;  %v8927_v61 = vand.u32 4294901760, %v8926_v31  ;;  %v6877_v34 = vand.u32 4294901760, %v3024_v10 }
 0x1b2   :  { %2894 = vmatprep.subr.mxu1 %v8921_v41  ;;  %2719 = vmatpush2.msra.mxu0 %v8923_v25 }
 0x1b3   :  { %2896 = vmatpush2.msra.mxu1 %v8787_v59  ;;  %2723 = vmatprep.subr.mxu0 %v8925_v4  ;;  %v8932_v59 = vld [vmem:[#allocation126_spill] sm:$0xff]  ;;  %8976 = vst [vmem:[#allocation88_spill] sm:$0xff] %v6877_v34  ;;  %v6896_v16 = vsub.f32 %v3024_v10, %v6877_v34 }
 0x1b4   :  { %2898 = vmatprep.subr.mxu1 %v8788_v45  ;;  %2727 = vmatpush2.msra.mxu0 %v8927_v61  ;;  %v8933_v3 = vand.u32 4294901760, %v8932_v59  ;;  %v8934_v45 = vld [vmem:[#allocation120_spill] sm:$0xff]  ;;  %v6903_v59 = vsub.f32 %v3008_v28, %v6889_v15 }
 0x1b5   :  { %2900 = vmatpush2.msra.mxu1 %v8790_v1  ;;  %2731 = vmatprep.subr.mxu0 %v8929_v49  ;;  %v8935_v46 = vand.u32 4294901760, %v8934_v45  ;;  %v8937_v1 = vand.u32 4294901760, %v6323_v29  ;;  %v8946_v29 = vand.u32 4294901760, %v8945_v23  ;;  %8981 = vst [vmem:[#allocation37_spill] sm:$0xff] %v6896_v16 }
 0x1b6   :  { %2902 = vmatprep.subr.mxu1 %v8791_v9  ;;  %2735 = vmatpush2.msra.mxu0 %v8931_v48  ;;  %v8939_v9 = vld [vmem:[#allocation124_spill] sm:$0xff]  ;;  %8982 = vst [vmem:[#allocation13_spill] sm:$0xff] %v6903_v59 }
 0x1b7   :  { %2904 = vmatpush2.msra.mxu1 %v8793_v35  ;;  %2739 = vmatprep.subr.mxu0 %v8933_v3  ;;  %v8940_v24 = vand.u32 4294901760, %v8939_v9  ;;  %v8941_v35 = vld [vmem:[#allocation128_spill] sm:$0xff] }
 0x1b8   :  { %2906 = vmatprep.subr.mxu1 %v8795_v50  ;;  %2743 = vmatpush2.msra.mxu0 %v8935_v46  ;;  %v8942_v8 = vand.u32 4294901760, %v8941_v35  ;;  %v8943_v50 = vld [vmem:[#allocation127_spill] sm:$0xff]  ;;  %v3023_v35 = vld [vmem:[%s7553_s2 + $0xd8] sm:$0xff] }
 0x1b9   :  { %2908 = vmatpush2.msra.mxu1 %v8936_v39  ;;  %2747 = vmatprep.subr.mxu0 %v8937_v1  ;;  %v8944_v40 = vand.u32 4294901760, %v8943_v50  ;;  %v7994_v39 = vand.u32 4294901760, %v6896_v16  ;;  %v3022_v50 = vld [vmem:[%s7553_s2 + $0xd0] sm:$0xff] }
 0x1ba   :  { %2910 = vmatprep.subr.mxu1 %v8938_v32  ;;  %2751 = vmatpush2.msra.mxu0 %v8940_v24  ;;  %v7992_v24 = vand.u32 4294901760, %v6903_v59 }
 0x1bb   :  { %2912 = vmatpush2.msra.mxu1 %v8798_v51  ;;  %2755 = vmatprep.subr.mxu0 %v8942_v8  ;;  %v8950_v51 = vand.u32 4294901760, %v6380_v55  ;;  %v8956_v55 = vand.u32 4294901760, %v6415_v19  ;;  %v8963_v19 = vld [vmem:[#allocation96_spill] sm:$0xff] }
 0x1bc   :  { %2914 = vmatprep.subr.mxu1 %v8799_v26  ;;  %2759 = vmatpush2.msra.mxu0 %v8944_v40  ;;  %v8952_v26 = vld [vmem:[#allocation130_spill] sm:$0xff]  ;;  %v3007_v8 = vld [vmem:[%s7553_s2 + $0x58] sm:$0xff] }
 0x1bd   :  { %2916 = vmatpush2.msra.mxu1 %v8800_v13  ;;  %2763 = vmatprep.subr.mxu0 %v8946_v29  ;;  %v8953_v30 = vand.u32 4294901760, %v8952_v26  ;;  %v8954_v13 = vand.u32 4294901760, %v6397_v7 }
 0x1be   :  { %2918 = vmatprep.subr.mxu1 %v8947_v0  ;;  %2767 = vmatpush2.msra.mxu0 %v8948_v6  ;;  %v3307_v0 = vsub.f32 %v6896_v16, %v7994_v39  ;;  %v3006_v6 = vld [vmem:[%s7553_s2 + $0x50] sm:$0xff] }
 0x1bf   :  { %2920 = vmatpush2.msra.mxu1 %v8949_v42  ;;  %2771 = vmatprep.subr.mxu0 %v8950_v51  ;;  %v3021_v42 = vld [vmem:[%s7553_s2 + $0xc8] sm:$0xff] }
 0x1c0   :  { %2922 = vmatprep.subr.mxu1 %v8951_v57  ;;  %2775 = vmatpush2.msra.mxu0 %v8953_v30  ;;  %v3195_v57 = vsub.f32 %v6903_v59, %v7992_v24  ;;  %v6951_v30 = vand.u32 4294901760, %v3023_v35 }
 0x1c1   :  { %2924 = vmatpush2.msra.mxu1 %v8806_v37  ;;  %2779 = vmatprep.subr.mxu0 %v8954_v13  ;;  %v8959_v37 = vld [vmem:[#allocation131_spill] sm:$0xff]  ;;  %v6953_v13 = vand.u32 4294901760, %v3007_v8 }
 0x1c2   :  { %2926 = vmatprep.subr.mxu1 %v8807_v56  ;;  %2783 = vmatpush2.msra.mxu0 %v8955_v60  ;;  %v8960_v7 = vand.u32 4294901760, %v8959_v37  ;;  %v8961_v56 = vand.u32 4294901760, %v6435_v52  ;;  %8983 = vst [vmem:[#allocation43_spill] sm:$0xff] %v6951_v30  ;;  %v6955_v60 = vand.u32 4294901760, %v3022_v50  ;;  %v3308_v37 = vand.u32 4294901760, %v3307_v0 }
 0x1c3   :  { %2928 = vmatpush2.msra.mxu1 %v8809_v27  ;;  %2787 = vmatprep.subr.mxu0 %v8956_v55  ;;  %8984 = vst [vmem:[#allocation18_spill] sm:$0xff] %v6953_v13 }
 0x1c4   :  { %2930 = vmatprep.subr.mxu1 %v8812_v38  ;;  %2791 = vmatpush2.msra.mxu0 %v8957_v53  ;;  %8985 = vst [vmem:[#allocation51_spill] sm:$0xff] %v6955_v60  ;;  %v6957_v53 = vand.u32 4294901760, %v3006_v6 }
 0x1c5   :  { %2932 = vmatpush2.msra.mxu1 %v8958_v11  ;;  %2795 = vmatprep.subr.mxu0 %v8960_v7  ;;  %v6959_v11 = vand.u32 4294901760, %v3021_v42  ;;  %v6962_v7 = vsub.f32 %v3023_v35, %v6951_v30  ;;  %v3005_v35 = vld [vmem:[%s7553_s2 + $0x48] sm:$0xff] }
 0x1c6   :  { %2934 = vmatprep.subr.mxu1 %v6320_v47  ;;  %2799 = vmatpush2.msra.mxu0 %v8961_v56  ;;  %v8965_v47 = vld [vmem:[#allocation104_spill] sm:$0xff]  ;;  %8986 = vst [vmem:[#allocation55_spill] sm:$0xff] %v6957_v53  ;;  %v6965_v56 = vsub.f32 %v3007_v8, %v6953_v13  ;;  %v7004_v8 = vand.u32 4294901760, %v3005_v35 }
 0x1c7   :  { %2801 = vmatprep.mubr.f32.mxu0 %v8962_v14  ;;  %2936 = vmatpush2.msra.mxu1 %v6311_v20  ;;  %v8966_v20 = vld [vmem:[#allocation106_spill] sm:$0xff]  ;;  %8987 = vst [vmem:[#allocation65_spill] sm:$0xff] %v6959_v11  ;;  %8988 = vst [vmem:[#allocation34_spill] sm:$0xff] %v6962_v7 }
 0x1c8   :  { %2803 = vmatmul.mubr.f32.vlgmr.msra.gmra.mxu0 %v8963_v19  ;;  %2938 = vmatprep.subr.mxu1 %v6341_v44  ;;  %8989 = vst [vmem:[#allocation71_spill] sm:$0xff] %v6965_v56  ;;  %8993 = vst [vmem:[#allocation44_spill] sm:$0xff] %v7004_v8 }
 0x1c9   :  { %2940 = vmatpush2.msra.mxu1 %v6337_v63  ;;  %2809 = vmatprep.mubr.f32.mxu0 %v8964_v36  ;;  %v3027_v63 = vld [vmem:[%s7553_s2 + $0xf8] sm:$0xff] }
 0x1ca   :  { %2942 = vmatprep.subr.mxu1 %v6358_v62  ;;  %2954 = vmatprep.mubr.f32.mxu1 %v8962_v14  ;;  %v3025_v62 = vld [vmem:[%s7553_s2 + $0xe8] sm:$0xff]  ;;  %v6968_v14 = vsub.f32 %v3022_v50, %v6955_v60  ;;  %v3020_v50 = vld [vmem:[%s7553_s2 + $0xc0] sm:$0xff] }
 0x1cb   :  { %2944 = vmatpush2.msra.mxu1 %v6369_v5  ;;  %v3009_v5 = vld [vmem:[%s7553_s2 + $0x68] sm:$0xff]  ;;  %v6858_v52 = vand.u32 4294901760, %v3025_v62 }
 0x1cc   :  { %2811 = vmatmul.mubr.f32.gmra.mxu0 %v8965_v47  ;;  %2946 = vmatprep.subr.mxu1 %v6376_v18  ;;  %v6860_v27 = vand.u32 4294901760, %v3009_v5  ;;  %8990 = vst [vmem:[#allocation42_spill] sm:$0xff] %v6968_v14 }
 0x1cd   :  { %2948 = vmatpush2.msra.mxu1 %v6386_v22  ;;  %2817 = vmatprep.mubr.f32.mxu0 %v8966_v20  ;;  %v3011_v22 = vld [vmem:[%s7553_s2 + $0x78] sm:$0xff]  ;;  %8971 = vst [vmem:[#allocation70_spill] sm:$0xff] %v6858_v52  ;;  %v6884_v54 = vsub.f32 %v3025_v62, %v6858_v52 }
 0x1ce   :  { %2950 = vmatprep.subr.mxu1 %v6393_v12  ;;  %v6841_v12 = vand.u32 4294901760, %v3027_v63  ;;  %v6843_v44 = vand.u32 4294901760, %v3011_v22  ;;  %8972 = vst [vmem:[#allocation25_spill] sm:$0xff] %v6860_v27  ;;  %v6887_v25 = vsub.f32 %v3009_v5, %v6860_v27 }
 0x1cf   :  { %2952 = vmatpush2.msra.mxu1 %v6406_v2  ;;  %v3026_v2 = vld [vmem:[%s7553_s2 + $0xf0] sm:$0xff]  ;;  %8978 = vst [vmem:[#allocation6_spill] sm:$0xff] %v6884_v54  ;;  %v7997_v33 = vand.u32 4294901760, %v6884_v54 }
 0x1d0   :  { %2819 = vmatmul.mubr.f32.gmra.mxu0 %v8818_v17  ;;  %2956 = vmatmul.mubr.f32.vlgmr.msra.gmra.mxu1 %v8963_v19  ;;  %8967 = vst [vmem:[#allocation101_spill] sm:$0xff] %v6841_v12  ;;  %8968 = vst [vmem:[#allocation102_spill] sm:$0xff] %v6843_v44  ;;  %v6845_v38 = vand.u32 4294901760, %v3026_v2  ;;  %v6869_v58 = vsub.f32 %v3027_v63, %v6841_v12  ;;  %v6872_v21 = vsub.f32 %v3011_v22, %v6843_v44 }
 0x1d1   :  { %2962 = vmatprep.mubr.f32.mxu1 %v8964_v36  ;;  %4022 = vmatprep.subr.mxu0 %v6841_v12  ;;  %8979 = vst [vmem:[#allocation27_spill] sm:$0xff] %v6887_v25  ;;  %v7995_v48 = vand.u32 4294901760, %v6887_v25  ;;  %v3300_v32 = vsub.f32 %v6884_v54, %v7997_v33  ;;  %v3196_v19 = vand.u32 4294901760, %v3195_v57  ;;  %v6972_v36 = vsub.f32 %v3006_v6, %v6957_v53  ;;  %v3019_v6 = vld [vmem:[%s7553_s2 + $0xb8] sm:$0xff] }
 0x1d2   :  { %8969 = vst [vmem:[#allocation5_spill] sm:$0xff] %v6845_v38  ;;  %8973 = vst [vmem:[#allocation72_spill] sm:$0xff] %v6869_v58  ;;  %v6875_v43 = vsub.f32 %v3026_v2, %v6845_v38  ;;  %4023 = vmatpush3.msra.mxu0 %v6843_v44  ;;  %v8003_v4 = vand.u32 4294901760, %v6869_v58  ;;  %v8002_v31 = vand.u32 4294901760, %v6872_v21  ;;  %v7990_v63 = vand.u32 4294901760, %v6965_v56  ;;  %v3003_v57 = vld [vmem:[%s7553_s2 + $0x38] sm:$0xff] }
 0x1d3   :  { %8974 = vst [vmem:[#allocation9_spill] sm:$0xff] %v6872_v21  ;;  %4024 = vmatprep.subr.mxu0 %v6845_v38  ;;  %v3188_v9 = vsub.f32 %v6887_v25, %v7995_v48  ;;  %v3301_v26 = vand.u32 4294901760, %v3300_v32  ;;  %8991 = vst [vmem:[#allocation40_spill] sm:$0xff] %v6972_v36  ;;  %v7988_v22 = vand.u32 4294901760, %v6968_v14  ;;  %v7986_v2 = vand.u32 4294901760, %v6972_v36 }
 0x1d4   :  { %2964 = vmatmul.mubr.f32.gmra.mxu1 %v8965_v47  ;;  %8975 = vst [vmem:[#allocation74_spill] sm:$0xff] %v6875_v43  ;;  %v7999_v61 = vand.u32 4294901760, %v6875_v43  ;;  %v3286_v3 = vsub.f32 %v6869_v58, %v8003_v4  ;;  %v3174_v45 = vsub.f32 %v6872_v21, %v8002_v31  ;;  %v6975_v47 = vsub.f32 %v3021_v42, %v6959_v11 }
 0x1d5   :  { %2970 = vmatprep.mubr.f32.mxu1 %v8966_v20  ;;  %v3189_v55 = vand.u32 4294901760, %v3188_v9  ;;  %v7991_v20 = vand.u32 4294901760, %v6962_v7  ;;  %v3202_v5 = vsub.f32 %v6965_v56, %v7990_v63  ;;  %v3321_v10 = vsub.f32 %v6968_v14, %v7988_v22  ;;  %v3000_v22 = vld [vmem:[%s7553_s2 + $0x20] sm:$0xff] }
 0x1d6   :  { %v3293_v46 = vsub.f32 %v6875_v43, %v7999_v61  ;;  %v3287_v40 = vand.u32 4294901760, %v3286_v3  ;;  %v3175_v23 = vand.u32 4294901760, %v3174_v45  ;;  %8992 = vst [vmem:[#allocation79_spill] sm:$0xff] %v6975_v47  ;;  %v3209_v28 = vsub.f32 %v6972_v36, %v7986_v2 }
 0x1d7   :  { %v3314_v62 = vsub.f32 %v6962_v7, %v7991_v20 }
 0x1d8   :  { %2972 = vmatmul.mubr.f32.gmra.mxu1 %v8818_v17  ;;  %v3010_v17 = vld [vmem:[%s7553_s2 + $0x70] sm:$0xff]  ;;  %v3294_v29 = vand.u32 4294901760, %v3293_v46  ;;  %4063 = vmatprep.subr.mxu1 %v3287_v40  ;;  %v3203_v46 = vand.u32 4294901760, %v3202_v5  ;;  %v3210_v32 = vand.u32 4294901760, %v3209_v28  ;;  %v7009_v40 = vand.u32 4294901760, %v3020_v50 }
 0x1d9   :  { %v6856_v18 = vand.u32 4294901760, %v3010_v17  ;;  %4064 = vmatpush3.msra.mxu1 %v3175_v23  ;;  %v3315_v45 = vand.u32 4294901760, %v3314_v62  ;;  %v3004_v23 = vld [vmem:[%s7553_s2 + $0x40] sm:$0xff]  ;;  %v3002_v28 = vld [vmem:[%s7553_s2 + $0x30] sm:$0xff] }
 0x1da   :  { %4065 = vmatprep.subr.mxu1 %v3294_v29  ;;  %8994 = vst [vmem:[#allocation50_spill] sm:$0xff] %v7009_v40  ;;  %v7015_v29 = vsub.f32 %v3005_v35, %v7004_v8  ;;  %v7017_v0 = vand.u32 4294901760, %v3004_v23  ;;  %v7024_v42 = vsub.f32 %v3020_v50, %v7009_v40 }
 0x1db   :  { %8970 = vst [vmem:[#allocation7_spill] sm:$0xff] %v6856_v18  ;;  %v6881_v41 = vsub.f32 %v3010_v17, %v6856_v18  ;;  %4025 = vmatpush3.msra.mxu0 %v6856_v18  ;;  %v7985_v17 = vand.u32 4294901760, %v6975_v47 }
 0x1dc   :  { %4026 = vmatprep.subr.mxu0 %v6858_v52  ;;  %8995 = vst [vmem:[#allocation54_spill] sm:$0xff] %v7015_v29  ;;  %8996 = vst [vmem:[#allocation91_spill] sm:$0xff] %v7017_v0  ;;  %v7984_v62 = vand.u32 4294901760, %v7024_v42 }
 0x1dd   :  { %8977 = vst [vmem:[#allocation90_spill] sm:$0xff] %v6881_v41  ;;  %v7998_v49 = vand.u32 4294901760, %v6881_v41  ;;  %4027 = vmatpush3.msra.mxu0 %v6860_v27  ;;  %v3328_v3 = vsub.f32 %v6975_v47, %v7985_v17  ;;  %8997 = vst [vmem:[#allocation56_spill] sm:$0xff] %v7024_v42 }
 0x1de   :  { %4028 = vmatprep.subr.mxu0 %v6877_v34 }
 0x1df   :  { %v3181_v1 = vsub.f32 %v6881_v41, %v7998_v49  ;;  %4029 = vmatpush3.msra.mxu0 %v6889_v15  ;;  %v3329_v9 = vand.u32 4294901760, %v3328_v3 }
 0x1e0   :  { %4030 = vmatprep.subr.mxu0 %v6951_v30 }
 0x1e1   :  { %v3182_v51 = vand.u32 4294901760, %v3181_v1  ;;  %4031 = vmatpush3.msra.mxu0 %v6953_v13  ;;  %v3322_v1 = vand.u32 4294901760, %v3321_v10 }
 0x1e2   :  { %4032 = vmatprep.subr.mxu0 %v6955_v60 }
 0x1e3   :  { %4066 = vmatpush3.msra.mxu1 %v3182_v51  ;;  %4033 = vmatpush3.msra.mxu0 %v6957_v53  ;;  %v7026_v51 = vand.u32 4294901760, %v3019_v6 }
 0x1e4   :  { %4067 = vmatprep.subr.mxu1 %v3301_v26  ;;  %4034 = vmatprep.subr.mxu0 %v6959_v11  ;;  %v7983_v26 = vand.u32 4294901760, %v7015_v29 }
 0x1e5   :  { %4068 = vmatpush3.msra.mxu1 %v3189_v55  ;;  %4035 = vmatpush3.msra.mxu0 %v7004_v8  ;;  %8998 = vst [vmem:[#allocation58_spill] sm:$0xff] %v7026_v51  ;;  %v7034_v55 = vsub.f32 %v3004_v23, %v7017_v0  ;;  %v7044_v5 = vsub.f32 %v3019_v6, %v7026_v51 }
 0x1e6   :  { %4069 = vmatprep.subr.mxu1 %v3308_v37  ;;  %4036 = vmatprep.subr.mxu0 %v7009_v40  ;;  %v7036_v37 = vand.u32 4294901760, %v3003_v57  ;;  %v3216_v3 = vsub.f32 %v7015_v29, %v7983_v26 }
 0x1e7   :  { %4070 = vmatpush3.msra.mxu1 %v3196_v19  ;;  %8999 = vst [vmem:[#allocation60_spill] sm:$0xff] %v7034_v55  ;;  %v3018_v19 = vld [vmem:[%s7553_s2 + $0xb0] sm:$0xff]  ;;  %4037 = vmatpush3.msra.mxu0 %v7017_v0  ;;  %9001 = vst [vmem:[#allocation122_spill] sm:$0xff] %v7044_v5  ;;  %v7989_v35 = vand.u32 4294901760, %v7044_v5 }
 0x1e8   :  { %4071 = vmatprep.subr.mxu1 %v3315_v45  ;;  %9000 = vst [vmem:[#allocation115_spill] sm:$0xff] %v7036_v37  ;;  %v7046_v10 = vand.u32 4294901760, %v3018_v19  ;;  %4038 = vmatprep.subr.mxu0 %v7026_v51  ;;  %v7987_v45 = vand.u32 4294901760, %v7034_v55  ;;  %v3217_v6 = vand.u32 4294901760, %v3216_v3 }
 0x1e9   :  { %4072 = vmatpush3.msra.mxu1 %v3203_v46  ;;  %v7057_v46 = vsub.f32 %v3003_v57, %v7036_v37  ;;  %4039 = vmatpush3.msra.mxu0 %v7036_v37 }
 0x1ea   :  { %4073 = vmatprep.subr.mxu1 %v3322_v1  ;;  %9002 = vst [vmem:[#allocation66_spill] sm:$0xff] %v7046_v10  ;;  %v7059_v1 = vand.u32 4294901760, %v3002_v28  ;;  %v7070_v50 = vsub.f32 %v3018_v19, %v7046_v10  ;;  %4040 = vmatprep.subr.mxu0 %v7046_v10  ;;  %v3223_v57 = vsub.f32 %v7034_v55, %v7987_v45  ;;  %v3016_v45 = vld [vmem:[%s7553_s2 + $0xa0] sm:$0xff] }
 0x1eb   :  { %4074 = vmatpush3.msra.mxu1 %v3210_v32  ;;  %9003 = vst [vmem:[#allocation119_spill] sm:$0xff] %v7057_v46  ;;  %v3017_v32 = vld [vmem:[%s7553_s2 + $0xa8] sm:$0xff]  ;;  %v7993_v26 = vand.u32 4294901760, %v7057_v46  ;;  %v3342_v19 = vsub.f32 %v7044_v5, %v7989_v35  ;;  %v7116_v48 = vand.u32 4294901760, %v3016_v45 }
 0x1ec   :  { %4075 = vmatprep.subr.mxu1 %v3329_v9  ;;  %9004 = vst [vmem:[#allocation68_spill] sm:$0xff] %v7059_v1  ;;  %v3335_v9 = vsub.f32 %v7024_v42, %v7984_v62  ;;  %9005 = vst [vmem:[#allocation125_spill] sm:$0xff] %v7070_v50  ;;  %v7072_v23 = vand.u32 4294901760, %v3017_v32  ;;  %v3001_v62 = vld [vmem:[%s7553_s2 + $0x28] sm:$0xff]  ;;  %4041 = vmatpush3.msra.mxu0 %v7059_v1  ;;  %v7996_v2 = vand.u32 4294901760, %v7070_v50 }
 0x1ed   :  { %v7088_v3 = vsub.f32 %v3002_v28, %v7059_v1  ;;  %4076 = vmatpush3.msra.mxu1 %v3217_v6  ;;  %v3230_v35 = vsub.f32 %v7057_v46, %v7993_v26  ;;  %v3015_v28 = vld [vmem:[%s7553_s2 + $0x98] sm:$0xff]  ;;  %v3343_v20 = vand.u32 4294901760, %v3342_v19  ;;  %9010 = vst [vmem:[#allocation107_spill] sm:$0xff] %v7116_v48  ;;  %v3014_v19 = vld [vmem:[%s7553_s2 + $0x90] sm:$0xff]  ;;  %v7136_v61 = vsub.f32 %v3016_v45, %v7116_v48 }
 0x1ee   :  { %9006 = vst [vmem:[#allocation97_spill] sm:$0xff] %v7072_v23  ;;  %v3336_v17 = vand.u32 4294901760, %v3335_v9  ;;  %4042 = vmatprep.subr.mxu0 %v7072_v23  ;;  %v3224_v9 = vand.u32 4294901760, %v3223_v57  ;;  %v7101_v63 = vsub.f32 %v3017_v32, %v7072_v23  ;;  %v3349_v24 = vsub.f32 %v7070_v50, %v7996_v2  ;;  %v2999_v26 = vld [vmem:[%s7553_s2 + $0x18] sm:$0xff] }
 0x1ef   :  { %9007 = vst [vmem:[#allocation98_spill] sm:$0xff] %v7088_v3  ;;  %v8000_v6 = vand.u32 4294901760, %v7088_v3  ;;  %v7110_v57 = vand.u32 4294901760, %v3001_v62  ;;  %v3231_v32 = vand.u32 4294901760, %v3230_v35  ;;  %v7129_v35 = vand.u32 4294901760, %v3015_v28  ;;  %9014 = vst [vmem:[#allocation112_spill] sm:$0xff] %v7136_v61 }
 0x1f0   :  { %9008 = vst [vmem:[#allocation108_spill] sm:$0xff] %v7101_v63  ;;  %4077 = vmatprep.subr.mxu1 %v3336_v17  ;;  %v8001_v39 = vand.u32 4294901760, %v7101_v63  ;;  %v7118_v17 = vand.u32 4294901760, %v3000_v22  ;;  %v3350_v2 = vand.u32 4294901760, %v3349_v24  ;;  %v7151_v45 = vand.u32 4294901760, %v3014_v19 }
 0x1f1   :  { %9009 = vst [vmem:[#allocation105_spill] sm:$0xff] %v7110_v57  ;;  %4078 = vmatpush3.msra.mxu1 %v3224_v9  ;;  %v3237_v33 = vsub.f32 %v7088_v3, %v8000_v6  ;;  %v7127_v49 = vsub.f32 %v3001_v62, %v7110_v57  ;;  %9013 = vst [vmem:[#allocation100_spill] sm:$0xff] %v7129_v35  ;;  %4043 = vmatpush3.msra.mxu0 %v7110_v57  ;;  %v2998_v62 = vld [vmem:[%s7553_s2 + $0x10] sm:$0xff]  ;;  %v8013_v4 = vand.u32 4294901760, %v7136_v61 }
 0x1f2   :  { %9011 = vst [vmem:[#allocation110_spill] sm:$0xff] %v7118_v17  ;;  %4079 = vmatprep.subr.mxu1 %v3343_v20  ;;  %v3356_v9 = vsub.f32 %v7101_v63, %v8001_v39  ;;  %v7139_v24 = vsub.f32 %v3000_v22, %v7118_v17  ;;  %v7141_v20 = vand.u32 4294901760, %v2999_v26  ;;  %4044 = vmatprep.subr.mxu0 %v7116_v48  ;;  %9018 = vst [vmem:[#allocation111_spill] sm:$0xff] %v7151_v45  ;;  %v3013_v22 = vld [vmem:[%s7553_s2 + $0x88] sm:$0xff] }
 0x1f3   :  { %9012 = vst [vmem:[#allocation99_spill] sm:$0xff] %v7127_v49  ;;  %4080 = vmatpush3.msra.mxu1 %v3231_v32  ;;  %v3238_v32 = vand.u32 4294901760, %v3237_v33  ;;  %v8008_v6 = vand.u32 4294901760, %v7127_v49  ;;  %v7149_v39 = vsub.f32 %v3015_v28, %v7129_v35  ;;  %4045 = vmatpush3.msra.mxu0 %v7118_v17  ;;  %v7168_v3 = vsub.f32 %v3014_v19, %v7151_v45  ;;  %v2997_v19 = vld [vmem:[%s7553_s2 + $0x8] sm:$0xff] }
 0x1f4   :  { %9015 = vst [vmem:[#allocation109_spill] sm:$0xff] %v7139_v24  ;;  %9016 = vst [vmem:[#allocation31_spill] sm:$0xff] %v7141_v20  ;;  %4081 = vmatprep.subr.mxu1 %v3350_v2  ;;  %v3357_v31 = vand.u32 4294901760, %v3356_v9  ;;  %v8016_v63 = vand.u32 4294901760, %v7139_v24  ;;  %v7160_v33 = vsub.f32 %v2999_v26, %v7141_v20  ;;  %4046 = vmatprep.subr.mxu0 %v7129_v35  ;;  %v7170_v9 = vand.u32 4294901760, %v2998_v62 }
 0x1f5   :  { %9017 = vst [vmem:[#allocation76_spill] sm:$0xff] %v7149_v39  ;;  %4082 = vmatpush3.msra.mxu1 %v3238_v32  ;;  %v3244_v2 = vsub.f32 %v7127_v49, %v8008_v6  ;;  %9020 = vst [vmem:[#allocation78_spill] sm:$0xff] %v7168_v3  ;;  %4047 = vmatpush3.msra.mxu0 %v7141_v20  ;;  %v3363_v26 = vsub.f32 %v7136_v61, %v8013_v4  ;;  %v7180_v49 = vand.u32 4294901760, %v3013_v22  ;;  %v2996_v6 = vld [vmem:[%s7553_s2] sm:$0xff] }
 0x1f6   :  { %9019 = vst [vmem:[#allocation11_spill] sm:$0xff] %v7160_v33  ;;  %9021 = vst [vmem:[#allocation35_spill] sm:$0xff] %v7170_v9  ;;  %4083 = vmatprep.subr.mxu1 %v3357_v31  ;;  %v3251_v32 = vsub.f32 %v7139_v24, %v8016_v63  ;;  %4048 = vmatprep.subr.mxu0 %v7151_v45  ;;  %v9023_v31 = vand.u32 4294901760, %v7149_v39  ;;  %v7191_v61 = vsub.f32 %v2998_v62, %v7170_v9  ;;  %v3012_v63 = vld [vmem:[%s7553_s2 + $0x80] sm:$0xff] }
 0x1f7   :  { %9022 = vst [vmem:[#allocation80_spill] sm:$0xff] %v7180_v49  ;;  %v3245_v28 = vand.u32 4294901760, %v3244_v2  ;;  %4049 = vmatpush3.msra.mxu0 %v7170_v9  ;;  %v3364_v2 = vand.u32 4294901760, %v3363_v26  ;;  %v9025_v45 = vand.u32 4294901760, %v7160_v33  ;;  %v7204_v4 = vsub.f32 %v3013_v22, %v7180_v49 }
 0x1f8   :  { %v3370_v50 = vsub.f32 %v7149_v39, %v9023_v31  ;;  %9024 = vst [vmem:[#allocation39_spill] sm:$0xff] %v7191_v61  ;;  %v3252_v24 = vand.u32 4294901760, %v3251_v32  ;;  %4050 = vmatprep.subr.mxu0 %v7180_v49  ;;  %v9027_v39 = vand.u32 4294901760, %v7168_v3  ;;  %v8032_v46 = vand.u32 4294901760, %v7191_v61 }
 0x1f9   :  { %v3258_v31 = vsub.f32 %v7160_v33, %v9025_v45  ;;  %9026 = vst [vmem:[#allocation82_spill] sm:$0xff] %v7204_v4  ;;  %4084 = vmatpush3.msra.mxu1 %v3245_v28  ;;  %v7211_v9 = vand.u32 4294901760, %v2997_v19  ;;  %v8031_v32 = vand.u32 4294901760, %v7204_v4  ;;  %v7214_v45 = vand.u32 4294901760, %v3012_v63 }
 0x1fa   :  { %v3371_v62 = vand.u32 4294901760, %v3370_v50  ;;  %v3377_v20 = vsub.f32 %v7168_v3, %v9027_v39  ;;  %4085 = vmatprep.subr.mxu1 %v3364_v2  ;;  %v7216_v22 = vand.u32 4294901760, %v2996_v6  ;;  %v3265_v50 = vsub.f32 %v7191_v61, %v8032_v46 }
 0x1fb   :  { %9028 = vst [vmem:[#allocation113_spill] sm:$0xff] %v7211_v9  ;;  %v3259_v26 = vand.u32 4294901760, %v3258_v31  ;;  %9029 = vst [vmem:[#allocation12_spill] sm:$0xff] %v7214_v45  ;;  %4086 = vmatpush3.msra.mxu1 %v3252_v24  ;;  %v7222_v39 = vsub.f32 %v2997_v19, %v7211_v9  ;;  %4051 = vmatpush3.msra.mxu0 %v7211_v9  ;;  %v3384_v28 = vsub.f32 %v7204_v4, %v8031_v32 }
 0x1fc   :  { %9030 = vst [vmem:[#allocation114_spill] sm:$0xff] %v7216_v22  ;;  %v3378_v33 = vand.u32 4294901760, %v3377_v20  ;;  %4087 = vmatprep.subr.mxu1 %v3371_v62  ;;  %v7229_v2 = vsub.f32 %v3012_v63, %v7214_v45  ;;  %v7232_v24 = vsub.f32 %v2996_v6, %v7216_v22  ;;  %4052 = vmatprep.subr.mxu0 %v7214_v45  ;;  %v3266_v20 = vand.u32 4294901760, %v3265_v50  ;;  %v7243_v6 = vpop.f32.mrf.mxu0 }
 0x1fd   :  { %9031 = vst [vmem:[#allocation14_spill] sm:$0xff] %v7222_v39  ;;  %4088 = vmatpush3.msra.mxu1 %v3259_v26  ;;  %v8034_v19 = vand.u32 4294901760, %v7222_v39  ;;  %4053 = vmatpush3.msra.mxu0 %v7216_v22  ;;  %v3385_v31 = vand.u32 4294901760, %v3384_v28 }
 0x1fe   :  { %9032 = vst [vmem:[#allocation15_spill] sm:$0xff] %v7229_v2  ;;  %9033 = vst [vmem:[#allocation92_spill] sm:$0xff] %v7232_v24  ;;  %4089 = vmatprep.subr.mxu1 %v3378_v33  ;;  %v8041_v62 = vand.u32 4294901760, %v7229_v2  ;;  %v8048_v32 = vand.u32 4294901760, %v7232_v24  ;;  %4104 = vmatprep.subr.mxu0 %v6869_v58 }
 0x1ff   :  { %4090 = vmatpush3.msra.mxu1 %v3266_v20  ;;  %v3272_v63 = vsub.f32 %v7222_v39, %v8034_v19  ;;  %v304_v20 = vpop.f32.mrf.mxu0 }
 0x200   :  { %4091 = vmatprep.subr.mxu1 %v3385_v31  ;;  %v3391_v26 = vsub.f32 %v7229_v2, %v8041_v62  ;;  %v3279_v33 = vsub.f32 %v7232_v24, %v8048_v32  ;;  %v727_v31 = vpop.f32.mrf.mxu1 }
 0x201   :  { %v3273_v50 = vand.u32 4294901760, %v3272_v63  ;;  %v318_v58 = vpop.f32.mrf.mxu0  ;;  %v728_v30 = vadd.f32 %v727_v31, %v7243_v6 }
 0x202   :  { %v3392_v28 = vand.u32 4294901760, %v3391_v26  ;;  %v3280_v46 = vand.u32 4294901760, %v3279_v33  ;;  %v729_v4 = vpop.f32.mrf.mxu1 }
 0x203   :  { %4092 = vmatpush3.msra.mxu1 %v3273_v50  ;;  %v320_v19 = vpop.f32.mrf.mxu0  ;;  %v730_v27 = vadd.f32 %v729_v4, %v304_v20 }
 0x204   :  { %4093 = vmatprep.subr.mxu1 %v3392_v28  ;;  %v735_v61 = vpop.f32.mrf.mxu1 }
 0x205   :  { %4094 = vmatpush3.msra.mxu1 %v3280_v46  ;;  %v334_v39 = vpop.f32.mrf.mxu0  ;;  %v736_v38 = vadd.f32 %v735_v61, %v318_v58 }
 0x206   :  { %4145 = vmatprep.subr.mxu1 %v6841_v12  ;;  %v737_v2 = vpop.f32.mrf.mxu1 }
 0x207   :  { %v336_v62 = vpop.f32.mrf.mxu0  ;;  %v738_v44 = vadd.f32 %v737_v2, %v320_v19 }
 0x208   :  { %v743_v22 = vpop.f32.mrf.mxu1 }
 0x209   :  { %v946_v3 = vpop.f32.mrf.mxu0 }
 0x20a   :  { %v745_v63 = vpop.f32.mrf.mxu1  ;;  %v947_v52 = vadd.f32 %v946_v3, %v728_v30 }
 0x20b   :  { %v948_v32 = vpop.f32.mrf.mxu0 }
 0x20c   :  { %v1107_v33 = vpop.f32.mrf.mxu1 }
 0x20d   :  { %v956_v26 = vpop.f32.mrf.mxu0 }
 0x20e   :  { %v1109_v24 = vpop.f32.mrf.mxu1 }
 0x20f   :  { %v958_v50 = vpop.f32.mrf.mxu0 }
 0x210   :  { %v1119_v46 = vpop.f32.mrf.mxu1 }
 0x211   :  { %v966_v28 = vpop.f32.mrf.mxu0 }
 0x212   :  { %v7252_v9 = vpop.f32.mrf.mxu1 }
 0x213   :  { %v968_v45 = vpop.f32.mrf.mxu0 }
 0x214   :  { %v1131_v49 = vpop.f32.mrf.mxu1 }
 0x215   :  { %v1396_v12 = vpop.f32.mrf.mxu0 }
 0x216   :  { %v7254_v5 = vpop.f32.mrf.mxu1 }
 0x217   :  { %v1398_v35 = vpop.f32.mrf.mxu0 }
 0x218   :  { %v1549_v55 = vpop.f32.mrf.mxu1 }
 0x219   :  { %v7256_v17 = vpop.f32.mrf.mxu0 }
 0x21a   :  { %9034 = vst [vmem:[#allocation16_spill] sm:$0xff] %v7256_v17  ;;  %v7260_v42 = vpop.f32.mrf.mxu1 }
 0x21b   :  { %v7258_v48 = vpop.f32.mrf.mxu0  ;;  %9036 = vst [vmem:[#allocation17_spill] sm:$0xff] %v7260_v42 }
 0x21c   :  { %9035 = vst [vmem:[#allocation23_spill] sm:$0xff] %v7258_v48  ;;  %v7264_v29 = vpop.f32.mrf.mxu1 }
 0x21d   :  { %v7262_v57 = vpop.f32.mrf.mxu0  ;;  %9038 = vst [vmem:[#allocation19_spill] sm:$0xff] %v7264_v29  ;;  %v957_v29 = vadd.f32 %v956_v26, %v736_v38 }
 0x21e   :  { %9037 = vst [vmem:[#allocation49_spill] sm:$0xff] %v7262_v57  ;;  %v7268_v47 = vpop.f32.mrf.mxu1  ;;  %v959_v57 = vadd.f32 %v958_v50, %v738_v44 }
 0x21f   :  { %v7266_v23 = vpop.f32.mrf.mxu0  ;;  %9040 = vst [vmem:[#allocation21_spill] sm:$0xff] %v7268_v47  ;;  %v1120_v30 = vadd.f32 %v1119_v46, %v957_v29 }
 0x220   :  { %9039 = vst [vmem:[#allocation8_spill] sm:$0xff] %v7266_v23  ;;  %v7270_v36 = vpop.f32.mrf.mxu1  ;;  %v949_v23 = vadd.f32 %v948_v32, %v730_v27 }
 0x221   :  { %v1710_v1 = vpop.f32.mrf.mxu0  ;;  %9041 = vst [vmem:[#allocation10_spill] sm:$0xff] %v7270_v36  ;;  %v744_v36 = vadd.f32 %v743_v22, %v334_v39 }
 0x222   :  { %v7272_v56 = vpop.f32.mrf.mxu1 }
 0x223   :  { %v1712_v10 = vpop.f32.mrf.mxu0  ;;  %9042 = vst [vmem:[#allocation53_spill] sm:$0xff] %v7272_v56  ;;  %v967_v6 = vadd.f32 %v966_v28, %v744_v36 }
 0x224   :  { %v2135_v37 = vpop.f32.mrf.mxu1 }
 0x225   :  { %v2136_v56 = vadd.f32 %v2135_v37, %v1710_v1  ;;  %v1122_v37 = vadd.f32 %v7252_v9, %v959_v57  ;;  %v1132_v27 = vadd.f32 %v1131_v49, %v967_v6 }
 0x226   :  { %v2137_v7 = vpop.f32.mrf.mxu1  ;;  %v9053_v9 = vld [vmem:[#allocation21_spill] sm:$0xff] }
 0x227   :  { %v2138_v42 = vadd.f32 %v2137_v7, %v1712_v10 }
 0x236   :  { %v1726_v14 = vpop.f32.mrf.mxu0 }
 0x238   :  { %v1728_v51 = vpop.f32.mrf.mxu0 }
 0x23b   :  { %v7274_v59 = vpop.f32.mrf.mxu0 }
 0x23c   :  { %9043 = vst [vmem:[#allocation29_spill] sm:$0xff] %v7274_v59 }
 0x23d   :  { %v2143_v0 = vpop.f32.mrf.mxu1  ;;  %v7276_v16 = vpop.f32.mrf.mxu0 }
 0x23e   :  { %9044 = vst [vmem:[#allocation24_spill] sm:$0xff] %v7276_v16  ;;  %v1108_v16 = vadd.f32 %v1107_v33, %v947_v52  ;;  %v2144_v3 = vadd.f32 %v2143_v0, %v1726_v14  ;;  %v9049_v14 = vld [vmem:[#allocation17_spill] sm:$0xff] }
 0x23f   :  { %v2145_v40 = vpop.f32.mrf.mxu1  ;;  %v9050_v0 = vld [vmem:[#allocation49_spill] sm:$0xff] }
 0x240   :  { %v1397_v17 = vadd.f32 %v1396_v12, %v1108_v16  ;;  %v2146_v22 = vadd.f32 %v2145_v40, %v1728_v51  ;;  %v9048_v16 = vld [vmem:[#allocation23_spill] sm:$0xff] }
 0x241   :  { %v2354_v25 = vpop.f32.mrf.mxu0  ;;  %v1407_v36 = vadd.f32 %v9048_v16, %v1122_v37 }
 0x242   :  { %v2355_v48 = vadd.f32 %v2354_v25, %v2136_v56  ;;  %v1550_v52 = vadd.f32 %v1549_v55, %v1397_v17  ;;  %v9047_v56 = vld [vmem:[#allocation16_spill] sm:$0xff] }
 0x243   :  { %v2151_v8 = vpop.f32.mrf.mxu1  ;;  %v2356_v11 = vpop.f32.mrf.mxu0  ;;  %v1405_v12 = vadd.f32 %v9047_v56, %v1120_v30 }
 0x244   :  { %v2357_v58 = vadd.f32 %v2356_v11, %v2138_v42  ;;  %v1413_v42 = vadd.f32 %v9050_v0, %v1132_v27  ;;  %v2978_v40 = vmul.f32 %v1550_v52, %v1550_v52 }
 0x245   :  { %v7278_v54 = vpop.f32.mrf.mxu1 }
 0x246   :  { %9045 = vst [vmem:[#allocation57_spill] sm:$0xff] %v7278_v54  ;;  %v746_v54 = vadd.f32 %v745_v63, %v336_v62  ;;  %v9056_v63 = vld [vmem:[#allocation8_spill] sm:$0xff] }
 0x247   :  { %v2364_v53 = vpop.f32.mrf.mxu0 }
 0x248   :  { %v969_v31 = vadd.f32 %v968_v45, %v746_v54  ;;  %v2365_v38 = vadd.f32 %v2364_v53, %v2144_v3  ;;  %v9051_v53 = vld [vmem:[#allocation19_spill] sm:$0xff]  ;;  %v1560_v45 = vadd.f32 %v9053_v9, %v1407_v36 }
 0x249   :  { %v2366_v60 = vpop.f32.mrf.mxu0 }
 0x24a   :  { %v1134_v54 = vadd.f32 %v7254_v5, %v969_v31  ;;  %v2983_v3 = vmul.f32 %v1560_v45, %v1560_v45 }
 0x24c   :  { %v2515_v41 = vpop.f32.mrf.mxu1 }
 0x24d   :  { %v2374_v13 = vpop.f32.mrf.mxu0  ;;  %v2516_v61 = vadd.f32 %v2515_v41, %v2355_v48  ;;  %v2367_v48 = vadd.f32 %v2366_v60, %v2146_v22  ;;  %v9054_v60 = vld [vmem:[#allocation24_spill] sm:$0xff] }
 0x24e   :  { %v2517_v43 = vpop.f32.mrf.mxu1 }
 0x24f   :  { %v7281_v15 = vpop.f32.mrf.mxu0  ;;  %v2518_v44 = vadd.f32 %v2517_v43, %v2357_v58  ;;  %v1558_v43 = vadd.f32 %v9051_v53, %v1405_v12 }
 0x250   :  { %9046 = vst [vmem:[#allocation28_spill] sm:$0xff] %v7281_v15  ;;  %v1110_v15 = vadd.f32 %v1109_v24, %v949_v23 }
 0x251   :  { %v2982_v26 = vmul.f32 %v1558_v43, %v1558_v43 }
 0x252   :  { %v2527_v21 = vpop.f32.mrf.mxu1  ;;  %v1399_v1 = vadd.f32 %v1398_v35, %v1110_v15 }
 0x253   :  { %v2528_v29 = vadd.f32 %v2527_v21, %v2365_v38  ;;  %v9055_v21 = vld [vmem:[#allocation57_spill] sm:$0xff] }
 0x254   :  { %v2529_v34 = vpop.f32.mrf.mxu1  ;;  %v1552_v11 = vadd.f32 %v9049_v14, %v1399_v1  ;;  %v9060_v38 = vld [vmem:[#allocation53_spill] sm:$0xff] }
 0x255   :  { %v2530_v5 = vadd.f32 %v2529_v34, %v2367_v48 }
 0x256   :  { %v2979_v35 = vmul.f32 %v1552_v11, %v1552_v11 }
 0x257   :  { %v2539_v47 = vpop.f32.mrf.mxu1  ;;  %v9057_v34 = vld [vmem:[#allocation28_spill] sm:$0xff] }
 0x259   :  { %v2541_v32 = vpop.f32.mrf.mxu1 }
 0x288   :  { %v2804_v18 = vpop.f32.mrf.mxu0 }
 0x289   :  { %v2805_v7 = vadd.f32 %v2804_v18, %v2516_v61  ;;  %v9052_v18 = vld [vmem:[#allocation29_spill] sm:$0xff] }
 0x28a   :  { %v2806_v59 = vpop.f32.mrf.mxu0  ;;  %v2152_v51 = vadd.f32 %v2151_v8, %v9052_v18  ;;  %v1415_v8 = vadd.f32 %v9056_v63, %v1134_v54  ;;  %v9065_v18 = vld [vmem:[#allocation7_spill] sm:$0xff]  ;;  %v9074_v63 = vld [vmem:[#allocation18_spill] sm:$0xff] }
 0x28b   :  { %v2807_v49 = vadd.f32 %v2806_v59, %v2518_v44  ;;  %v2154_v59 = vadd.f32 %v9055_v21, %v9054_v60  ;;  %v9070_v60 = vld [vmem:[#allocation88_spill] sm:$0xff] }
 0x28c   :  { %v2812_v4 = vpop.f32.mrf.mxu0  ;;  %v2375_v39 = vadd.f32 %v2374_v13, %v2152_v51  ;;  %v9059_v13 = vld [vmem:[#allocation10_spill] sm:$0xff]  ;;  %v1568_v44 = vadd.f32 %v9060_v38, %v1415_v8 }
 0x28d   :  { %v2813_v10 = vadd.f32 %v2812_v4, %v2528_v29  ;;  %v2377_v33 = vadd.f32 %v9057_v34, %v2154_v59  ;;  %v1566_v58 = vadd.f32 %v9059_v13, %v1413_v42  ;;  %v9063_v29 = vld [vmem:[#allocation102_spill] sm:$0xff]  ;;  %v9071_v59 = vld [vmem:[#allocation33_spill] sm:$0xff] }
 0x28e   :  { %v2814_v25 = vpop.f32.mrf.mxu0  ;;  %v2540_v50 = vadd.f32 %v2539_v47, %v2375_v39  ;;  %v9075_v34 = vld [vmem:[#allocation74_spill] sm:$0xff] }
 0x28f   :  { %v2815_v24 = vadd.f32 %v2814_v25, %v2530_v5  ;;  %v2542_v61 = vadd.f32 %v2541_v32, %v2377_v33  ;;  %v2986_v36 = vmul.f32 %v1566_v58, %v1566_v58  ;;  %v9076_v33 = vld [vmem:[#allocation51_spill] sm:$0xff]  ;;  %v9081_v58 = vld [vmem:[#allocation44_spill] sm:$0xff] }
 0x290   :  { %v2957_v41 = vpop.f32.mrf.mxu1  ;;  %v2820_v23 = vpop.f32.mrf.mxu0 }
 0x291   :  { %v2958_v15 = vadd.f32 %v2957_v41, %v2805_v7  ;;  %v2821_v37 = vadd.f32 %v2820_v23, %v2540_v50  ;;  %v9068_v23 = vld [vmem:[#allocation25_spill] sm:$0xff]  ;;  %v9077_v50 = vld [vmem:[#allocation90_spill] sm:$0xff] }
 0x292   :  { %v2959_v55 = vpop.f32.mrf.mxu1  ;;  %v2822_v6 = vpop.f32.mrf.mxu0 }
 0x293   :  { %v2980_v57 = vmul.f32 %v2958_v15, %v2958_v15  ;;  %v2960_v17 = vadd.f32 %v2959_v55, %v2807_v49  ;;  %v2823_v7 = vadd.f32 %v2822_v6, %v2542_v61  ;;  %v2987_v15 = vmul.f32 %v1568_v44, %v1568_v44  ;;  %v9078_v6 = vld [vmem:[#allocation55_spill] sm:$0xff]  ;;  %v9087_v44 = vld [vmem:[#allocation34_spill] sm:$0xff] }
 0x294   :  { %v2965_v2 = vpop.f32.mrf.mxu1  ;;  %v9082_v61 = vld [vmem:[#allocation27_spill] sm:$0xff] }
 0x295   :  { %v2990_v19 = vadd.f32 %v2980_v57, %v2978_v40  ;;  %v2981_v62 = vmul.f32 %v2960_v17, %v2960_v17  ;;  %v2966_v20 = vadd.f32 %v2965_v2, %v2813_v10  ;;  %v9064_v40 = vld [vmem:[#allocation5_spill] sm:$0xff]  ;;  %v9067_v10 = vld [vmem:[#allocation70_spill] sm:$0xff] }
 0x296   :  { %v2967_v28 = vpop.f32.mrf.mxu1 }
 0x297   :  { %v7296_v46 = vand.u32 4294901760, %v2990_v19  ;;  %v2991_v31 = vadd.f32 %v2981_v62, %v2979_v35  ;;  %v2984_v4 = vmul.f32 %v2966_v20, %v2966_v20  ;;  %v2968_v30 = vadd.f32 %v2967_v28, %v2815_v24  ;;  %v9072_v24 = vld [vmem:[#allocation43_spill] sm:$0xff]  ;;  %v9073_v20 = vld [vmem:[#allocation9_spill] sm:$0xff] }
 0x298   :  { %v2973_v27 = vpop.f32.mrf.mxu1 }
 0x299   :  { %9058 = vst [vmem:[#allocation63_spill] sm:$0xff] %v7296_v46  ;;  %v7300_v1 = vsub.f32 %v2990_v19, %v7296_v46  ;;  %v7302_v52 = vand.u32 4294901760, %v2991_v31  ;;  %v2992_v22 = vadd.f32 %v2984_v4, %v2982_v26  ;;  %v2985_v47 = vmul.f32 %v2968_v30, %v2968_v30  ;;  %v9079_v4 = vld [vmem:[#allocation6_spill] sm:$0xff]  ;;  %v9080_v30 = vld [vmem:[#allocation65_spill] sm:$0xff] }
 0x29a   :  { %v2974_v25 = vadd.f32 %v2973_v27, %v2821_v37  ;;  %v2975_v54 = vpop.f32.mrf.mxu1  ;;  %v9083_v37 = vld [vmem:[#allocation50_spill] sm:$0xff]  ;;  %v9084_v27 = vld [vmem:[#allocation37_spill] sm:$0xff] }
 0x29b   :  { %v8142_v56 = vand.u32 4294901760, %v7300_v1  ;;  %v7307_v12 = vsub.f32 %v2991_v31, %v7302_v52  ;;  %v7309_v32 = vand.u32 4294901760, %v2992_v22  ;;  %v2993_v16 = vadd.f32 %v2985_v47, %v2983_v3  ;;  %3395 = vmatprep.mubr.f32.mxu1 %v7302_v52  ;;  %v9086_v47 = vld [vmem:[#allocation13_spill] sm:$0xff] }
 0x29c   :  { %v2988_v14 = vmul.f32 %v2974_v25, %v2974_v25  ;;  %v2976_v11 = vadd.f32 %v2975_v54, %v2823_v7  ;;  %3397 = vmatmul.mubr.f32.vlgmr.msra.gmra.mxu1 %v7296_v46  ;;  %v9088_v7 = vld [vmem:[#allocation58_spill] sm:$0xff]  ;;  %v9089_v25 = vld [vmem:[#allocation115_spill] sm:$0xff] }
 0x29d   :  { %9061 = vst [vmem:[#allocation41_spill] sm:$0xff] %v7309_v32  ;;  %v7314_v41 = vsub.f32 %v2992_v22, %v7309_v32  ;;  %v7316_v48 = vand.u32 4294901760, %v2993_v16  ;;  %4146 = vmatpush3.msra.mxu1 %v9063_v29  ;;  %v3126_v49 = vand.u32 4294901760, %v7307_v12  ;;  %v3133_v53 = vsub.f32 %v7300_v1, %v8142_v56  ;;  %v9085_v22 = vld [vmem:[#allocation91_spill] sm:$0xff]  ;;  %v9117_v56 = vld [vmem:[#allocation109_spill] sm:$0xff] }
 0x29e   :  { %v2994_v0 = vadd.f32 %v2988_v14, %v2986_v36  ;;  %v2989_v42 = vmul.f32 %v2976_v11, %v2976_v11  ;;  %4147 = vmatprep.subr.mxu1 %v9064_v40  ;;  %v9090_v54 = vld [vmem:[#allocation71_spill] sm:$0xff]  ;;  %v9092_v36 = vld [vmem:[#allocation66_spill] sm:$0xff]  ;;  %v9093_v14 = vld [vmem:[#allocation40_spill] sm:$0xff] }
 0x29f   :  { %9062 = vst [vmem:[#allocation69_spill] sm:$0xff] %v7316_v48  ;;  %v7325_v43 = vsub.f32 %v2993_v16, %v7316_v48  ;;  %4148 = vmatpush3.msra.mxu1 %v9065_v18  ;;  %3402 = vmatprep.mubr.f32.mxu1 %v7316_v48  ;;  %v3127_v51 = vsub.f32 %v7307_v12, %v3126_v49  ;;  %v8140_v35 = vand.u32 4294901760, %v7314_v41  ;;  %v3134_v21 = vand.u32 4294901760, %v3133_v53  ;;  %v9091_v16 = vld [vmem:[#allocation42_spill] sm:$0xff]  ;;  %v9094_v11 = vld [vmem:[#allocation68_spill] sm:$0xff]  ;;  %v9121_v48 = vld [vmem:[#allocation101_spill] sm:$0xff] }
 0x2a0   :  { %v7330_v55 = vand.u32 4294901760, %v2994_v0  ;;  %v2995_v5 = vadd.f32 %v2989_v42, %v2987_v15  ;;  %4149 = vmatprep.subr.mxu1 %v9067_v10  ;;  %3404 = vmatmul.mubr.f32.gmra.mxu1 %v7309_v32  ;;  %v9096_v15 = vld [vmem:[#allocation97_spill] sm:$0xff]  ;;  %v9099_v53 = vld [vmem:[#allocation56_spill] sm:$0xff]  ;;  %v9120_v32 = vand.u32 4294901760, %v7300_v1  ;;  %v9122_v46 = vld [vmem:[#allocation11_spill] sm:$0xff] }
 0x2a1   :  { %4150 = vmatpush3.msra.mxu1 %v9068_v23  ;;  %v3128_v57 = vand.u32 4294901760, %v3127_v51  ;;  %v8141_v17 = vand.u32 4294901760, %v7325_v43  ;;  %v3148_v62 = vsub.f32 %v7314_v41, %v8140_v35  ;;  %v9098_v42 = vld [vmem:[#allocation105_spill] sm:$0xff]  ;;  %v9100_v51 = vld [vmem:[#allocation107_spill] sm:$0xff]  ;;  %v9115_v35 = vld [vmem:[#allocation112_spill] sm:$0xff] }
 0x2a2   :  { %9066 = vst [vmem:[#allocation32_spill] sm:$0xff] %v7330_v55  ;;  %v7338_v9 = vsub.f32 %v2994_v0, %v7330_v55  ;;  %v7340_v45 = vand.u32 4294901760, %v2995_v5  ;;  %4151 = vmatprep.subr.mxu1 %v9070_v60  ;;  %v9097_v0 = vld [vmem:[#allocation54_spill] sm:$0xff] }
 0x2a3   :  { %4152 = vmatpush3.msra.mxu1 %v9071_v59  ;;  %3129 = vmatprep.mubr.f32.mxu0 %v3128_v57  ;;  %v3142_v39 = vsub.f32 %v7325_v43, %v8141_v17  ;;  %v3149_v31 = vand.u32 4294901760, %v3148_v62  ;;  %v9103_v57 = vld [vmem:[#allocation122_spill] sm:$0xff]  ;;  %v9107_v62 = vld [vmem:[#allocation125_spill] sm:$0xff]  ;;  %v9116_v17 = vld [vmem:[#allocation12_spill] sm:$0xff] }
 0x2a4   :  { %9069 = vst [vmem:[#allocation45_spill] sm:$0xff] %v7340_v45  ;;  %v7348_v2 = vsub.f32 %v2995_v5, %v7340_v45  ;;  %3409 = vmatprep.mubr.f32.mxu1 %v7340_v45  ;;  %4153 = vmatprep.subr.mxu1 %v9072_v24  ;;  %v8138_v26 = vand.u32 4294901760, %v7338_v9  ;;  %v9102_v5 = vld [vmem:[#allocation110_spill] sm:$0xff]  ;;  %v9119_v45 = vld [vmem:[#allocation76_spill] sm:$0xff] }
 0x2a5   :  { %3135 = vmatmul.mubr.f32.vlgmr.msra.gmra.mxu0 %v3134_v21  ;;  %3411 = vmatmul.mubr.f32.gmra.mxu1 %v7330_v55  ;;  %v3143_v19 = vand.u32 4294901760, %v3142_v39  ;;  %v9104_v21 = vld [vmem:[#allocation100_spill] sm:$0xff]  ;;  %v9105_v39 = vld [vmem:[#allocation119_spill] sm:$0xff]  ;;  %v9118_v55 = vld [vmem:[#allocation114_spill] sm:$0xff] }
 0x2a6   :  { %4105 = vmatpush3.msra.mxu0 %v9073_v20  ;;  %4154 = vmatpush3.msra.mxu1 %v9074_v63  ;;  %v8139_v8 = vand.u32 4294901760, %v7348_v2  ;;  %v3163_v13 = vsub.f32 %v7338_v9, %v8138_v26  ;;  %v9113_v26 = vld [vmem:[#allocation99_spill] sm:$0xff] }
 0x2a7   :  { %4106 = vmatprep.subr.mxu0 %v9075_v34  ;;  %4155 = vmatprep.subr.mxu1 %v9076_v33 }
 0x2a8   :  { %3671 = vmatprep.mubr.f32.mxu1 %v3126_v49  ;;  %4107 = vmatpush3.msra.mxu0 %v9077_v50  ;;  %v3157_v28 = vsub.f32 %v7348_v2, %v8139_v8  ;;  %v3164_v38 = vand.u32 4294901760, %v3163_v13  ;;  %v9095_v49 = vld [vmem:[#allocation79_spill] sm:$0xff]  ;;  %v9111_v13 = vld [vmem:[#allocation108_spill] sm:$0xff]  ;;  %v9114_v8 = vld [vmem:[#allocation113_spill] sm:$0xff] }
 0x2a9   :  { %4156 = vmatpush3.msra.mxu1 %v9078_v6  ;;  %3144 = vmatprep.mubr.f32.mxu0 %v3143_v19  ;;  %v9106_v19 = vld [vmem:[#allocation31_spill] sm:$0xff] }
 0x2aa   :  { %4108 = vmatprep.subr.mxu0 %v9079_v4  ;;  %4157 = vmatprep.subr.mxu1 %v9080_v30  ;;  %v3158_v3 = vand.u32 4294901760, %v3157_v28  ;;  %v9108_v28 = vld [vmem:[#allocation111_spill] sm:$0xff] }
 0x2ab   :  { %3150 = vmatmul.mubr.f32.gmra.mxu0 %v3149_v31  ;;  %4158 = vmatpush3.msra.mxu1 %v9081_v58  ;;  %v9109_v31 = vld [vmem:[#allocation98_spill] sm:$0xff] }
 0x2ac   :  { %4109 = vmatpush3.msra.mxu0 %v9082_v61  ;;  %4159 = vmatprep.subr.mxu1 %v9083_v37 }
 0x2ad   :  { %4110 = vmatprep.subr.mxu0 %v9084_v27  ;;  %4160 = vmatpush3.msra.mxu1 %v9085_v22 }
 0x2ae   :  { %4111 = vmatpush3.msra.mxu0 %v9086_v47  ;;  %3159 = vmatprep.mubr.f32.mxu0 %v3158_v3  ;;  %v9110_v3 = vld [vmem:[#allocation35_spill] sm:$0xff] }
 0x2af   :  { %4112 = vmatprep.subr.mxu0 %v9087_v44  ;;  %4161 = vmatprep.subr.mxu1 %v9088_v7 }
 0x2b0   :  { %3165 = vmatmul.mubr.f32.gmra.mxu0 %v3164_v38  ;;  %4162 = vmatpush3.msra.mxu1 %v9089_v25  ;;  %v9112_v38 = vld [vmem:[#allocation80_spill] sm:$0xff] }
 0x2b1   :  { %4113 = vmatpush3.msra.mxu0 %v9090_v54  ;;  %3546 = vmatprep.mubr.f32.mxu0 %v7307_v12  ;;  %v9101_v12 = vld [vmem:[#allocation60_spill] sm:$0xff] }
 0x2b2   :  { %4114 = vmatprep.subr.mxu0 %v9091_v16  ;;  %4163 = vmatprep.subr.mxu1 %v9092_v36 }
 0x2b3   :  { %4115 = vmatpush3.msra.mxu0 %v9093_v14  ;;  %4164 = vmatpush3.msra.mxu1 %v9094_v11 }
 0x2b4   :  { %4116 = vmatprep.subr.mxu0 %v9095_v49  ;;  %4165 = vmatprep.subr.mxu1 %v9096_v15 }
 0x2b5   :  { %4117 = vmatpush3.msra.mxu0 %v9097_v0  ;;  %4166 = vmatpush3.msra.mxu1 %v9098_v42 }
 0x2b6   :  { %4118 = vmatprep.subr.mxu0 %v9099_v53  ;;  %4167 = vmatprep.subr.mxu1 %v9100_v51 }
 0x2b7   :  { %4119 = vmatpush3.msra.mxu0 %v9101_v12  ;;  %4168 = vmatpush3.msra.mxu1 %v9102_v5 }
 0x2b8   :  { %4120 = vmatprep.subr.mxu0 %v9103_v57  ;;  %4169 = vmatprep.subr.mxu1 %v9104_v21 }
 0x2b9   :  { %4121 = vmatpush3.msra.mxu0 %v9105_v39  ;;  %4170 = vmatpush3.msra.mxu1 %v9106_v19 }
 0x2ba   :  { %4122 = vmatprep.subr.mxu0 %v9107_v62  ;;  %4171 = vmatprep.subr.mxu1 %v9108_v28 }
 0x2bb   :  { %4123 = vmatpush3.msra.mxu0 %v9109_v31  ;;  %4172 = vmatpush3.msra.mxu1 %v9110_v3 }
 0x2bc   :  { %4124 = vmatprep.subr.mxu0 %v9111_v13  ;;  %4173 = vmatprep.subr.mxu1 %v9112_v38 }
 0x2bd   :  { %4125 = vmatpush3.msra.mxu0 %v9113_v26  ;;  %4174 = vmatpush3.msra.mxu1 %v9114_v8  ;;  %v9123_v26 = vand.u32 4294901760, %v7325_v43 }
 0x2be   :  { %4126 = vmatprep.subr.mxu0 %v9115_v35  ;;  %4175 = vmatprep.subr.mxu1 %v9116_v17  ;;  %v9124_v35 = vld [vmem:[#allocation78_spill] sm:$0xff] }
 0x2bf   :  { %4127 = vmatpush3.msra.mxu0 %v9117_v56  ;;  %4176 = vmatpush3.msra.mxu1 %v9118_v55  ;;  %v9125_v56 = vld [vmem:[#allocation39_spill] sm:$0xff] }
 0x2c0   :  { %4128 = vmatprep.subr.mxu0 %v9119_v45  ;;  %3675 = vmatmul.mubr.f32.vlgmr.msra.gmra.mxu1 %v9120_v32  ;;  %v9126_v45 = vld [vmem:[#allocation82_spill] sm:$0xff]  ;;  %v9127_v32 = vand.u32 4294901760, %v7314_v41 }
 0x2c1   :  { %4227 = vmatprep.subr.mxu1 %v9121_v48  ;;  %4129 = vmatpush3.msra.mxu0 %v9122_v46  ;;  %v9128_v48 = vld [vmem:[#allocation14_spill] sm:$0xff] }
 0x2c2   :  { %3682 = vmatprep.mubr.f32.mxu1 %v9123_v26  ;;  %4228 = vmatpush3.msra.mxu1 %v9063_v29  ;;  %v9129_v26 = vand.u32 4294901760, %v7348_v2  ;;  %v9130_v29 = vld [vmem:[#allocation15_spill] sm:$0xff] }
 0x2c3   :  { %4130 = vmatprep.subr.mxu0 %v9124_v35  ;;  %4229 = vmatprep.subr.mxu1 %v9064_v40  ;;  %v9131_v40 = vld [vmem:[#allocation92_spill] sm:$0xff] }
 0x2c4   :  { %4131 = vmatpush3.msra.mxu0 %v9125_v56  ;;  %4230 = vmatpush3.msra.mxu1 %v9065_v18  ;;  %v9132_v18 = vand.u32 4294901760, %v7338_v9 }
 0x2c5   :  { %4132 = vmatprep.subr.mxu0 %v9126_v45  ;;  %3686 = vmatmul.mubr.f32.gmra.mxu1 %v9127_v32 }
 0x2c6   :  { %4231 = vmatprep.subr.mxu1 %v9067_v10  ;;  %4133 = vmatpush3.msra.mxu0 %v9128_v48  ;;  %v9133_v10 = vld [vmem:[#allocation72_spill] sm:$0xff] }
 0x2c7   :  { %3693 = vmatprep.mubr.f32.mxu1 %v9129_v26  ;;  %4232 = vmatpush3.msra.mxu1 %v9068_v23  ;;  %v9134_v32 = vand.u32 4294901760, %v9133_v10  ;;  %v9135_v23 = vand.u32 4294901760, %v9073_v20  ;;  %v9141_v20 = vand.u32 4294901760, %v9086_v47 }
 0x2c8   :  { %4134 = vmatprep.subr.mxu0 %v9130_v29  ;;  %4233 = vmatprep.subr.mxu1 %v9070_v60  ;;  %v9136_v60 = vand.u32 4294901760, %v9075_v34  ;;  %v9145_v34 = vand.u32 4294901760, %v9093_v14  ;;  %v9165_v14 = vld [vmem:[#allocation69_spill] sm:$0xff] }
 0x2c9   :  { %4135 = vmatpush3.msra.mxu0 %v9131_v40  ;;  %4234 = vmatpush3.msra.mxu1 %v9071_v59  ;;  %v9139_v59 = vand.u32 4294901760, %v9082_v61  ;;  %v9154_v61 = vand.u32 4294901760, %v9111_v13 }
 0x2ca   :  { %3549 = vmatmul.mubr.f32.vlgmr.msra.gmra.mxu0 %v7300_v1  ;;  %3697 = vmatmul.mubr.f32.gmra.mxu1 %v9132_v18  ;;  %v9137_v1 = vand.u32 4294901760, %v9077_v50  ;;  %v9149_v50 = vand.u32 4294901760, %v9101_v12 }
 0x2cb   :  { %4186 = vmatprep.subr.mxu0 %v9134_v32  ;;  %4235 = vmatprep.subr.mxu1 %v9072_v24  ;;  %v9140_v24 = vand.u32 4294901760, %v9084_v27 }
 0x2cc   :  { %3555 = vmatprep.mubr.f32.mxu0 %v7325_v43  ;;  %4187 = vmatpush3.msra.mxu0 %v9135_v23  ;;  %v9138_v43 = vand.u32 4294901760, %v9079_v4  ;;  %v9151_v4 = vand.u32 4294901760, %v9105_v39 }
 0x2cd   :  { %4236 = vmatpush3.msra.mxu1 %v9074_v63  ;;  %3981 = vmatprep.mubr.f32.mxu1 %v7302_v52  ;;  %v9144_v63 = vand.u32 4294901760, %v9091_v16  ;;  %v9163_v16 = vld [vmem:[#allocation63_spill] sm:$0xff] }
 0x2ce   :  { %4188 = vmatprep.subr.mxu0 %v9136_v60  ;;  %4237 = vmatprep.subr.mxu1 %v9076_v33  ;;  %v9147_v33 = vand.u32 4294901760, %v9097_v0  ;;  %v9173_v0 = vand.u32 4294901760, %v9131_v40 }
 0x2cf   :  { %4189 = vmatpush3.msra.mxu0 %v9137_v1  ;;  %4238 = vmatpush3.msra.mxu1 %v9078_v6  ;;  %v9150_v6 = vand.u32 4294901760, %v9103_v57 }
 0x2d0   :  { %3558 = vmatmul.mubr.f32.gmra.mxu0 %v7314_v41  ;;  %4190 = vmatprep.subr.mxu0 %v9138_v43  ;;  %v9142_v41 = vand.u32 4294901760, %v9087_v44  ;;  %v9159_v44 = vld [vmem:[#allocation109_spill] sm:$0xff] }
 0x2d1   :  { %4239 = vmatprep.subr.mxu1 %v9080_v30  ;;  %3564 = vmatprep.mubr.f32.mxu0 %v7348_v2  ;;  %v9143_v2 = vand.u32 4294901760, %v9090_v54  ;;  %v9152_v30 = vand.u32 4294901760, %v9107_v62 }
 0x2d2   :  { %4191 = vmatpush3.msra.mxu0 %v9139_v59  ;;  %4240 = vmatpush3.msra.mxu1 %v9081_v58  ;;  %v9153_v58 = vand.u32 4294901760, %v9109_v31 }
 0x2d3   :  { %4192 = vmatprep.subr.mxu0 %v9140_v24  ;;  %4241 = vmatprep.subr.mxu1 %v9083_v37  ;;  %v9155_v37 = vld [vmem:[#allocation99_spill] sm:$0xff] }
 0x2d4   :  { %4193 = vmatpush3.msra.mxu0 %v9141_v20  ;;  %4242 = vmatpush3.msra.mxu1 %v9085_v22  ;;  %v9156_v27 = vand.u32 4294901760, %v9155_v37  ;;  %v9157_v22 = vld [vmem:[#allocation112_spill] sm:$0xff] }
 0x2d5   :  { %3567 = vmatmul.mubr.f32.gmra.mxu0 %v7338_v9  ;;  %4194 = vmatprep.subr.mxu0 %v9142_v41  ;;  %v9146_v9 = vand.u32 4294901760, %v9095_v49  ;;  %v9158_v47 = vand.u32 4294901760, %v9157_v22  ;;  %v9170_v49 = vand.u32 4294901760, %v9128_v48 }
 0x2d6   :  { %4243 = vmatprep.subr.mxu1 %v9088_v7  ;;  %4195 = vmatpush3.msra.mxu0 %v9143_v2  ;;  %v9160_v7 = vand.u32 4294901760, %v9159_v44 }
 0x2d7   :  { %3863 = vmatprep.mubr.f32.mxu0 %v7302_v52  ;;  %4244 = vmatpush3.msra.mxu1 %v9089_v25  ;;  %v9148_v52 = vand.u32 4294901760, %v9099_v53  ;;  %v9161_v25 = vld [vmem:[#allocation76_spill] sm:$0xff] }
 0x2d8   :  { %4196 = vmatprep.subr.mxu0 %v9144_v63  ;;  %4245 = vmatprep.subr.mxu1 %v9092_v36  ;;  %v9162_v54 = vand.u32 4294901760, %v9161_v25  ;;  %v9164_v36 = vand.u32 4294901760, %v9122_v46  ;;  %v9172_v46 = vand.u32 4294901760, %v9130_v29 }
 0x2d9   :  { %4197 = vmatpush3.msra.mxu0 %v9145_v34  ;;  %4246 = vmatpush3.msra.mxu1 %v9094_v11  ;;  %v9168_v11 = vand.u32 4294901760, %v9126_v45 }
 0x2da   :  { %4198 = vmatprep.subr.mxu0 %v9146_v9  ;;  %4247 = vmatprep.subr.mxu1 %v9096_v15  ;;  %v9171_v15 = vld [vmem:[#allocation45_spill] sm:$0xff] }
 0x2db   :  { %4199 = vmatpush3.msra.mxu0 %v9147_v33  ;;  %4248 = vmatpush3.msra.mxu1 %v9098_v42 }
 0x2dc   :  { %4200 = vmatprep.subr.mxu0 %v9148_v52  ;;  %4249 = vmatprep.subr.mxu1 %v9100_v51 }
 0x2dd   :  { %4201 = vmatpush3.msra.mxu0 %v9149_v50  ;;  %4250 = vmatpush3.msra.mxu1 %v9102_v5 }
 0x2de   :  { %4202 = vmatprep.subr.mxu0 %v9150_v6  ;;  %4251 = vmatprep.subr.mxu1 %v9104_v21 }
 0x2df   :  { %4203 = vmatpush3.msra.mxu0 %v9151_v4  ;;  %4252 = vmatpush3.msra.mxu1 %v9106_v19 }
 0x2e0   :  { %4204 = vmatprep.subr.mxu0 %v9152_v30  ;;  %4253 = vmatprep.subr.mxu1 %v9108_v28 }
 0x2e1   :  { %4205 = vmatpush3.msra.mxu0 %v9153_v58  ;;  %4254 = vmatpush3.msra.mxu1 %v9110_v3 }
 0x2e2   :  { %4206 = vmatprep.subr.mxu0 %v9154_v61  ;;  %4255 = vmatprep.subr.mxu1 %v9112_v38 }
 0x2e3   :  { %4207 = vmatpush3.msra.mxu0 %v9156_v27  ;;  %4256 = vmatpush3.msra.mxu1 %v9114_v8  ;;  %v9166_v8 = vand.u32 4294901760, %v9124_v35 }
 0x2e4   :  { %4208 = vmatprep.subr.mxu0 %v9158_v47  ;;  %4257 = vmatprep.subr.mxu1 %v9116_v17  ;;  %v9167_v17 = vand.u32 4294901760, %v9125_v56  ;;  %v9174_v56 = vld [vmem:[#allocation32_spill] sm:$0xff] }
 0x2e5   :  { %4209 = vmatpush3.msra.mxu0 %v9160_v7  ;;  %4258 = vmatpush3.msra.mxu1 %v9118_v55  ;;  %v9169_v55 = vld [vmem:[#allocation41_spill] sm:$0xff] }
 0x2e6   :  { %4210 = vmatprep.subr.mxu0 %v9162_v54  ;;  %3983 = vmatmul.mubr.f32.vlgmr.msra.gmra.mxu1 %v9163_v16 }
 0x2e7   :  { %4211 = vmatpush3.msra.mxu0 %v9164_v36  ;;  %3988 = vmatprep.mubr.f32.mxu1 %v9165_v14 }
 0x2e8   :  { %4212 = vmatprep.subr.mxu0 %v9166_v8 }
 0x2e9   :  { %4213 = vmatpush3.msra.mxu0 %v9167_v17 }
 0x2ea   :  { %4214 = vmatprep.subr.mxu0 %v9168_v11  ;;  %3990 = vmatmul.mubr.f32.gmra.mxu1 %v9169_v55 }
 0x2eb   :  { %4215 = vmatpush3.msra.mxu0 %v9170_v49  ;;  %3995 = vmatprep.mubr.f32.mxu1 %v9171_v15 }
 0x2ec   :  { %4216 = vmatprep.subr.mxu0 %v9172_v46 }
 0x2ed   :  { %4217 = vmatpush3.msra.mxu0 %v9173_v0 }
 0x2ee   :  { %3865 = vmatmul.mubr.f32.vlgmr.msra.gmra.mxu0 %v9163_v16  ;;  %3997 = vmatmul.mubr.f32.gmra.mxu1 %v9174_v56 }
 0x2ef   :  { %3870 = vmatprep.mubr.f32.mxu0 %v9165_v14 }
 0x2f2   :  { %3872 = vmatmul.mubr.f32.gmra.mxu0 %v9169_v55 }
 0x2f3   :  { %3877 = vmatprep.mubr.f32.mxu0 %v9171_v15 }
 0x2f6   :  { %3879 = vmatmul.mubr.f32.gmra.mxu0 %v9174_v56 }
 0x35c   :  { %v4095_v35 = vpop.f32.mrf.mxu1 }
 0x35e   :  { %v4096_v45 = vpop.f32.mrf.mxu1 }
 0x35f   :  { %v4097_v1 = vadd.f32 %v4096_v45, %v4095_v35 }
 0x360   :  { %v4098_v42 = vpop.f32.mrf.mxu1 }
 0x362   :  { %v4099_v51 = vpop.f32.mrf.mxu1 }
 0x363   :  { %v4100_v2 = vadd.f32 %v4099_v51, %v4098_v42 }
 0x365   :  { %v4054_v53 = vpop.f32.mrf.mxu0  ;;  %v4101_v5 = vpop.f32.mrf.mxu1 }
 0x367   :  { %v4055_v12 = vpop.f32.mrf.mxu0  ;;  %v4102_v21 = vpop.f32.mrf.mxu1 }
 0x368   :  { %v4056_v32 = vadd.f32 %v4055_v12, %v4054_v53  ;;  %v4103_v6 = vadd.f32 %v4102_v21, %v4101_v5 }
 0x36a   :  { %v3399_v59 = vadd.f32 %v4097_v1, %v4056_v32 }
 0x36b   :  { %v4057_v57 = vpop.f32.mrf.mxu0 }
 0x36d   :  { %v4058_v39 = vpop.f32.mrf.mxu0 }
 0x36e   :  { %v4059_v24 = vadd.f32 %v4058_v39, %v4057_v57 }
 0x370   :  { %v4060_v62 = vpop.f32.mrf.mxu0  ;;  %v3406_v33 = vadd.f32 %v4100_v2, %v4059_v24 }
 0x372   :  { %v4061_v31 = vpop.f32.mrf.mxu0 }
 0x373   :  { %v4062_v52 = vadd.f32 %v4061_v31, %v4060_v62 }
 0x375   :  { %v3413_v47 = vadd.f32 %v4103_v6, %v4062_v52 }
 0x380   :  { %v4177_v19 = vpop.f32.mrf.mxu1 }
 0x382   :  { %v4178_v28 = vpop.f32.mrf.mxu1 }
 0x383   :  { %v4179_v50 = vadd.f32 %v4178_v28, %v4177_v19 }
 0x385   :  { %v4180_v3 = vpop.f32.mrf.mxu1 }
 0x387   :  { %v4181_v38 = vpop.f32.mrf.mxu1 }
 0x388   :  { %v4182_v44 = vadd.f32 %v4181_v38, %v4180_v3 }
 0x38a   :  { %v4136_v13 = vpop.f32.mrf.mxu0  ;;  %v4183_v26 = vpop.f32.mrf.mxu1 }
 0x38c   :  { %v4137_v48 = vpop.f32.mrf.mxu0  ;;  %v4184_v40 = vpop.f32.mrf.mxu1 }
 0x38d   :  { %v4138_v43 = vadd.f32 %v4137_v48, %v4136_v13  ;;  %v4185_v55 = vadd.f32 %v4184_v40, %v4183_v26 }
 0x38f   :  { %v3551_v63 = vadd.f32 %v4138_v43, %v3399_v59 }
 0x390   :  { %v4139_v29 = vpop.f32.mrf.mxu0 }
 0x391   :  { %v3677_v37 = vadd.f32 %v4179_v50, %v3551_v63 }
 0x392   :  { %v4140_v18 = vpop.f32.mrf.mxu0 }
 0x393   :  { %v4141_v34 = vadd.f32 %v4140_v18, %v4139_v29 }
 0x395   :  { %v4142_v23 = vpop.f32.mrf.mxu0  ;;  %v3560_v58 = vadd.f32 %v4141_v34, %v3406_v33 }
 0x397   :  { %v4143_v20 = vpop.f32.mrf.mxu0  ;;  %v3688_v8 = vadd.f32 %v4182_v44, %v3560_v58 }
 0x398   :  { %v4144_v61 = vadd.f32 %v4143_v20, %v4142_v23 }
 0x39a   :  { %v3569_v36 = vadd.f32 %v4144_v61, %v3413_v47 }
 0x39c   :  { %v3699_v45 = vadd.f32 %v4185_v55, %v3569_v36 }
 0x3a6   :  { %v4259_v10 = vpop.f32.mrf.mxu1 }
 0x3a8   :  { %v4260_v60 = vpop.f32.mrf.mxu1 }
 0x3a9   :  { %v4261_v7 = vadd.f32 %v4260_v60, %v4259_v10 }
 0x3aa   :  { %v4262_v41 = vpop.f32.mrf.mxu1 }
 0x3ac   :  { %v4263_v4 = vpop.f32.mrf.mxu1 }
 0x3ad   :  { %v4264_v49 = vadd.f32 %v4263_v4, %v4262_v41 }
 0x3ae   :  { %v4218_v9 = vpop.f32.mrf.mxu0  ;;  %v4265_v54 = vpop.f32.mrf.mxu1 }
 0x3b0   :  { %v4219_v30 = vpop.f32.mrf.mxu0  ;;  %v4266_v0 = vpop.f32.mrf.mxu1 }
 0x3b1   :  { %v4220_v27 = vadd.f32 %v4219_v30, %v4218_v9  ;;  %v4267_v53 = vadd.f32 %v4266_v0, %v4265_v54 }
 0x3b2   :  { %v4221_v22 = vpop.f32.mrf.mxu0 }
 0x3b3   :  { %v3867_v25 = vadd.f32 %v4220_v27, %v3677_v37 }
 0x3b4   :  { %v4222_v16 = vpop.f32.mrf.mxu0 }
 0x3b5   :  { %v3985_v14 = vadd.f32 %v4261_v7, %v3867_v25  ;;  %v4223_v17 = vadd.f32 %v4222_v16, %v4221_v22 }
 0x3b6   :  { %v4224_v11 = vpop.f32.mrf.mxu0 }
 0x3b7   :  { %v4002_v15 = vmax.f32 %v3985_v14, 1e-10  ;;  %v3874_v46 = vadd.f32 %v4223_v17, %v3688_v8 }
 0x3b8   :  { %v4225_v56 = vpop.f32.mrf.mxu0 }
 0x3b9   :  { %4271 = vlog2.f32 %v4002_v15  ;;  %v3992_v35 = vadd.f32 %v4264_v49, %v3874_v46  ;;  %v4226_v42 = vadd.f32 %v4225_v56, %v4224_v11 }
 0x3bb   :  { %v4003_v51 = vmax.f32 %v3992_v35, 1e-10  ;;  %v3881_v12 = vadd.f32 %v4226_v42, %v3699_v45 }
 0x3bd   :  { %4273 = vlog2.f32 %v4003_v51  ;;  %v3999_v5 = vadd.f32 %v4267_v53, %v3881_v12 }
 0x3bf   :  { %v4004_v57 = vmax.f32 %v3999_v5, 1e-10 }
 0x3c1   :  { %4275 = vlog2.f32 %v4004_v57 }
 0x3c6   :  { %v4272_v21 = vpop.eup %4271 }
 0x3c7   :  { %v4006_v39 = vmul.f32 0.6931472, %v4272_v21 }
 0x3c9   :  { %v4011_v19 = vmul.f32 4.3429446, %v4006_v39 }
 0x3ca   :  { %v4274_v62 = vpop.eup %4273 }
 0x3cb   :  { %4014 = vst [vmem:[%s7554_s3] sm:$0xff] %v4011_v19  ;;  %v4008_v28 = vmul.f32 0.6931472, %v4274_v62 }
 0x3cd   :  { %v4012_v31 = vmul.f32 4.3429446, %v4008_v28 }
 0x3ce   :  { %v4276_v3 = vpop.eup %4275 }
 0x3cf   :  { %4015 = vst [vmem:[%s7554_s3 + $0x8] sm:$0xff] %v4012_v31  ;;  %v4010_v13 = vmul.f32 0.6931472, %v4276_v3 }
 0x3d1   :  { %v4013_v38 = vmul.f32 4.3429446, %v4010_v13 }
 0x3d3   :  { %4016 = vst [vmem:[%s7554_s3 + $0x10] sm:$0xff] %v4013_v38 }
 0x3d4   :  { %4021 = vsyncpa [#allocation3], 1 }

</bundles_post_ra>
